<compile_context>
chip_gen: v7x
topology: tpu7x:2x2x1
jax: 0.10.0
libtpu: 0.0.40
codegen_flags: <defaults>
</compile_context>

<pallas_src>
import functools

import jax
import jax.numpy as jnp
from jax.experimental import pallas as pl
from jax.experimental.pallas import tpu as pltpu


def _frame_warping_kernel(xyz2_ref, xyz1t_ref, f1_ref, o_ref, *, k):
    # xyz2_ref : (1, TM, 3)   tile of query points   (queries -> sublanes)
    # xyz1t_ref: (1, 3, N1)   frame-1 points, transposed (points -> lanes)
    # f1_ref   : (1, N1, Cf)  frame-1 features
    # o_ref    : (1, TM, Cf)  warped features for this query tile
    x2 = xyz2_ref[0]        # (TM, 3)
    x1t = xyz1t_ref[0]      # (3, N1)
    f1 = f1_ref[0]          # (N1, Cf)

    tm = x2.shape[0]
    n1 = x1t.shape[1]

    # Squared pairwise distances (TM, N1), exact differences per coordinate
    # (no |a|^2+|b|^2-2ab cancellation). N1 on lanes -> lane-dense VPU work.
    d2 = jnp.zeros((tm, n1), jnp.float32)
    for c in range(3):                       # C == 3, static
        diff = x2[:, c:c + 1] - x1t[c:c + 1, :]
        d2 = d2 + diff * diff

    # k-NN selection on squared distance (sqrt is monotone -> same neighbours).
    # Per pass: 1 XLU row-min, 1 broadcast compare, 2 VPU selects. The chosen
    # neighbour's inverse distance is rsqrt(max(row_min,1e-20)) on a (TM,1)
    # vector, identical to 1/max(sqrt(d2),1e-10) of the reference. Exact f32
    # ties at the row minimum all get selected in one pass (see header note).
    big = jnp.float32(3.0e38)
    working = d2
    wsel = jnp.zeros((tm, n1), jnp.float32)
    for t in range(k):                       # k small & static, unrolls
        row_min = jnp.min(working, axis=-1, keepdims=True)        # (TM, 1)
        inv_min = jax.lax.rsqrt(jnp.maximum(row_min, 1e-20))      # (TM, 1)
        sel = working == row_min                                  # (TM, N1)
        wsel = jnp.where(sel, inv_min, wsel)
        if t + 1 < k:                        # last pass needs no masking
            working = jnp.where(sel, big, working)

    # IDW normalisation folded into the epilogue: one (TM,1) exact reciprocal
    # + one (TM,Cf) multiply instead of a (TM,N1) divide before the matmul.
    norm = jnp.sum(wsel, axis=-1, keepdims=True)                  # sum_k 1/dist

    # Weighted gather as a single MXU matmul: (TM, N1) @ (N1, Cf).
    out = jnp.dot(wsel, f1,
                  preferred_element_type=jnp.float32,
                  precision=jax.lax.Precision.HIGHEST)
    o_ref[0] = (out * (1.0 / norm)).astype(o_ref.dtype)


def frame_warping(xyz1, xyz2, f1, *, k, tile_m=128):
    """Pallas FrameWarping.forward.  xyz1:(B,N1,3) xyz2:(B,N2,3) f1:(B,Cf,N1) -> (B,N2,Cf)."""
    B, N1, C = xyz1.shape
    _, N2, _ = xyz2.shape
    Cf = f1.shape[1]
    assert C == 3 and k <= N1

    # Frame-1 points go to lanes; features permuted exactly like the module does.
    xyz1_t = jnp.transpose(xyz1, (0, 2, 1))        # (B, 3, N1)
    f1_t = jnp.transpose(f1, (0, 2, 1))            # (B, N1, Cf)

    # Query tiling: multiple of 8 sublanes; pad ragged tails (padded rows are
    # computed harmlessly and sliced off afterwards).
    tile_m = min(tile_m, max(8, -(-N2 // 8) * 8))
    num_tiles = pl.cdiv(N2, tile_m)
    n2p = num_tiles * tile_m
    xyz2_p = xyz2 if n2p == N2 else jnp.pad(xyz2, ((0, 0), (0, n2p - N2), (0, 0)))

    kernel = functools.partial(_frame_warping_kernel, k=k)

    out = pl.pallas_call(
        kernel,
        out_shape=jax.ShapeDtypeStruct((B, n2p, Cf), jnp.float32),
        grid_spec=pl.GridSpec(
            grid=(B, num_tiles),
            in_specs=[
                # query tile changes every step
                pl.BlockSpec((1, tile_m, 3), lambda b, i: (b, i, 0)),
                # frame-1 points / features: constant per batch -> DMA'd once per batch
                pl.BlockSpec((1, 3, N1), lambda b, i: (b, 0, 0)),
                pl.BlockSpec((1, N1, Cf), lambda b, i: (b, 0, 0)),
            ],
            out_specs=pl.BlockSpec((1, tile_m, Cf), lambda b, i: (b, i, 0)),
        ),
        compiler_params=pltpu.CompilerParams(
            # all grid steps independent -> shard across TensorCores
            dimension_semantics=("parallel", "parallel"),
            # <= ~48 MiB keeps v7x (64 MiB/TC, 2 TCs) happy; v5e/v6e (128 MiB)
            # may raise this for large N1*Cf.
            vmem_limit_bytes=32 * 1024 * 1024,
        ),
    )(xyz2_p, xyz1_t, f1_t)

    return out[:, :N2, :]


# ------------------------- pure-JAX reference ------------------------------ #

def _gather_rows(table, idx):
    # table: (N, D), idx: (M, K) -> (M, K, D)
    return table[idx]


def frame_warping_reference(xyz1, xyz2, f1, *, k):
    """Step-by-step mirror of the PyTorch module (kNN, gather, IDW, weighted sum).
    (kNN distances come from exact pairwise differences; the expansion form in
    the PyTorch code is the same quantity up to float rounding.)"""
    f1_t = jnp.transpose(f1, (0, 2, 1))                        # (B, N1, Cf)
    diff_all = xyz2[:, :, None, :] - xyz1[:, None, :, :]       # (B, N2, N1, 3)
    sqrdists = jnp.sum(diff_all * diff_all, axis=-1)           # (B, N2, N1)
    _, knn_idx = jax.lax.top_k(-sqrdists, k)                   # k smallest
    grouped_xyz = jax.vmap(_gather_rows)(xyz1, knn_idx)        # (B, N2, k, 3)
    d = grouped_xyz - xyz2[:, :, None, :]
    dist = jnp.maximum(jnp.sqrt(jnp.sum(d * d, axis=-1)), 1e-10)
    norm = jnp.sum(1.0 / dist, axis=2, keepdims=True)
    weight = 1.0 / dist / norm                                 # (B, N2, k)
    grouped_f1 = jax.vmap(_gather_rows)(f1_t, knn_idx)         # (B, N2, k, Cf)
    return jnp.sum(weight[..., None] * grouped_f1, axis=2)     # (B, N2, Cf)


if __name__ == "__main__":
    key = jax.random.PRNGKey(0)
    B, N1, N2, Cf, k = 2, 256, 256, 64, 3

    k1, k2, k3 = jax.random.split(key, 3)
    xyz1 = jax.random.normal(k1, (B, N1, 3), jnp.float32)
    xyz2 = jax.random.normal(k2, (B, N2, 3), jnp.float32)
    f1 = jax.random.normal(k3, (B, Cf, N1), jnp.float32)

    out = frame_warping(xyz1, xyz2, f1, k=k)
    out = jax.block_until_ready(out)

    ref = frame_warping_reference(xyz1, xyz2, f1, k=k)
    assert out.shape == (B, N2, Cf)
    max_err = float(jnp.max(jnp.abs(out - ref)))
    assert jnp.allclose(out, ref, atol=1e-4, rtol=1e-4), max_err

    print("KERNEL_OK")
</pallas_src>

<mosaic_0001>
module attributes {stable_mosaic.version = 11 : i64} {
  func.func @_frame_warping_kernel(%arg0: i32, %arg1: i32, %arg2: memref<1x128x3xf32, #tpu.memory_space<vmem>>, %arg3: memref<1x3x256xf32, #tpu.memory_space<vmem>>, %arg4: memref<1x256x64xf32, #tpu.memory_space<vmem>>, %arg5: memref<1x128x64xf32, #tpu.memory_space<vmem>>) attributes {dimension_semantics = [#tpu.dimension_semantics<parallel>, #tpu.dimension_semantics<parallel>], iteration_bounds = array<i64: 2, 2>, scalar_prefetch = 0 : i64, scratch_operands = 0 : i64, tpu.core_type = #tpu.core_type<tc>, window_params = [{transform_indices = @transform_0, window_bounds = array<i64: 1, 128, 3>}, {transform_indices = @transform_1, window_bounds = array<i64: 1, 3, 256>}, {transform_indices = @transform_2, window_bounds = array<i64: 1, 256, 64>}, {transform_indices = @transform_3, window_bounds = array<i64: 1, 128, 64>}]} {
    %c0 = arith.constant 0 : index
    %c0_0 = arith.constant 0 : index
    %c0_1 = arith.constant 0 : index
    %0 = vector.load %arg2[%c0, %c0_0, %c0_1] : memref<1x128x3xf32, #tpu.memory_space<vmem>>, vector<1x128x3xf32>
    %1 = vector.shape_cast %0 : vector<1x128x3xf32> to vector<128x3xf32>
    %c0_2 = arith.constant 0 : index
    %c0_3 = arith.constant 0 : index
    %c0_4 = arith.constant 0 : index
    %2 = vector.load %arg3[%c0_2, %c0_3, %c0_4] : memref<1x3x256xf32, #tpu.memory_space<vmem>>, vector<1x3x256xf32>
    %3 = vector.shape_cast %2 : vector<1x3x256xf32> to vector<3x256xf32>
    %c0_5 = arith.constant 0 : index
    %c0_6 = arith.constant 0 : index
    %c0_7 = arith.constant 0 : index
    %4 = vector.load %arg4[%c0_5, %c0_6, %c0_7] : memref<1x256x64xf32, #tpu.memory_space<vmem>>, vector<1x256x64xf32>
    %5 = vector.shape_cast %4 : vector<1x256x64xf32> to vector<256x64xf32>
    %cst = arith.constant 0.000000e+00 : f32
    %6 = vector.broadcast %cst : f32 to vector<128x256xf32>
    %7 = vector.extract_strided_slice %1 {offsets = [0, 0], sizes = [128, 1], strides = [1, 1]} : vector<128x3xf32> to vector<128x1xf32>
    %8 = vector.extract_strided_slice %3 {offsets = [0, 0], sizes = [1, 256], strides = [1, 1]} : vector<3x256xf32> to vector<1x256xf32>
    %9 = vector.broadcast %7 : vector<128x1xf32> to vector<128x256xf32>
    %10 = vector.broadcast %8 : vector<1x256xf32> to vector<128x256xf32>
    %11 = arith.subf %9, %10 : vector<128x256xf32>
    %12 = arith.mulf %11, %11 : vector<128x256xf32>
    %13 = arith.addf %6, %12 : vector<128x256xf32>
    %14 = vector.extract_strided_slice %1 {offsets = [0, 1], sizes = [128, 1], strides = [1, 1]} : vector<128x3xf32> to vector<128x1xf32>
    %15 = vector.extract_strided_slice %3 {offsets = [1, 0], sizes = [1, 256], strides = [1, 1]} : vector<3x256xf32> to vector<1x256xf32>
    %16 = vector.broadcast %14 : vector<128x1xf32> to vector<128x256xf32>
    %17 = vector.broadcast %15 : vector<1x256xf32> to vector<128x256xf32>
    %18 = arith.subf %16, %17 : vector<128x256xf32>
    %19 = arith.mulf %18, %18 : vector<128x256xf32>
    %20 = arith.addf %13, %19 : vector<128x256xf32>
    %21 = vector.extract_strided_slice %1 {offsets = [0, 2], sizes = [128, 1], strides = [1, 1]} : vector<128x3xf32> to vector<128x1xf32>
    %22 = vector.extract_strided_slice %3 {offsets = [2, 0], sizes = [1, 256], strides = [1, 1]} : vector<3x256xf32> to vector<1x256xf32>
    %23 = vector.broadcast %21 : vector<128x1xf32> to vector<128x256xf32>
    %24 = vector.broadcast %22 : vector<1x256xf32> to vector<128x256xf32>
    %25 = arith.subf %23, %24 : vector<128x256xf32>
    %26 = arith.mulf %25, %25 : vector<128x256xf32>
    %27 = arith.addf %20, %26 : vector<128x256xf32>
    %cst_8 = arith.constant 0.000000e+00 : f32
    %28 = vector.broadcast %cst_8 : f32 to vector<128x256xf32>
    %cst_9 = arith.constant dense<0x7F800000> : vector<128xf32>
    %29 = vector.multi_reduction <minimumf>, %27, %cst_9 [1] : vector<128x256xf32> to vector<128xf32>
    %30 = vector.shape_cast %29 : vector<128xf32> to vector<128x1xf32>
    %cst_10 = arith.constant 9.99999968E-21 : f32
    %31 = vector.broadcast %cst_10 : f32 to vector<128x1xf32>
    %32 = arith.maximumf %30, %31 : vector<128x1xf32>
    %33 = math.rsqrt %32 : vector<128x1xf32>
    %34 = vector.broadcast %30 : vector<128x1xf32> to vector<128x256xf32>
    %35 = arith.cmpf oeq, %27, %34 : vector<128x256xf32>
    %36 = vector.shape_cast %33 : vector<128x1xf32> to vector<128x1xf32>
    %37 = vector.broadcast %36 : vector<128x1xf32> to vector<128x256xf32>
    %38 = arith.select %35, %37, %28 : vector<128x256xi1>, vector<128x256xf32>
    %cst_11 = arith.constant 3.000000e+38 : f32
    %39 = vector.broadcast %cst_11 : f32 to vector<128x256xf32>
    %40 = arith.select %35, %39, %27 : vector<128x256xi1>, vector<128x256xf32>
    %cst_12 = arith.constant dense<0x7F800000> : vector<128xf32>
    %41 = vector.multi_reduction <minimumf>, %40, %cst_12 [1] : vector<128x256xf32> to vector<128xf32>
    %42 = vector.shape_cast %41 : vector<128xf32> to vector<128x1xf32>
    %cst_13 = arith.constant 9.99999968E-21 : f32
    %43 = vector.broadcast %cst_13 : f32 to vector<128x1xf32>
    %44 = arith.maximumf %42, %43 : vector<128x1xf32>
    %45 = math.rsqrt %44 : vector<128x1xf32>
    %46 = vector.broadcast %42 : vector<128x1xf32> to vector<128x256xf32>
    %47 = arith.cmpf oeq, %40, %46 : vector<128x256xf32>
    %48 = vector.shape_cast %45 : vector<128x1xf32> to vector<128x1xf32>
    %49 = vector.broadcast %48 : vector<128x1xf32> to vector<128x256xf32>
    %50 = arith.select %47, %49, %38 : vector<128x256xi1>, vector<128x256xf32>
    %cst_14 = arith.constant 3.000000e+38 : f32
    %51 = vector.broadcast %cst_14 : f32 to vector<128x256xf32>
    %52 = arith.select %47, %51, %40 : vector<128x256xi1>, vector<128x256xf32>
    %cst_15 = arith.constant dense<0x7F800000> : vector<128xf32>
    %53 = vector.multi_reduction <minimumf>, %52, %cst_15 [1] : vector<128x256xf32> to vector<128xf32>
    %54 = vector.shape_cast %53 : vector<128xf32> to vector<128x1xf32>
    %cst_16 = arith.constant 9.99999968E-21 : f32
    %55 = vector.broadcast %cst_16 : f32 to vector<128x1xf32>
    %56 = arith.maximumf %54, %55 : vector<128x1xf32>
    %57 = math.rsqrt %56 : vector<128x1xf32>
    %58 = vector.broadcast %54 : vector<128x1xf32> to vector<128x256xf32>
    %59 = arith.cmpf oeq, %52, %58 : vector<128x256xf32>
    %60 = vector.shape_cast %57 : vector<128x1xf32> to vector<128x1xf32>
    %61 = vector.broadcast %60 : vector<128x1xf32> to vector<128x256xf32>
    %62 = arith.select %59, %61, %50 : vector<128x256xi1>, vector<128x256xf32>
    %cst_17 = arith.constant dense<0.000000e+00> : vector<128xf32>
    %63 = vector.multi_reduction <add>, %62, %cst_17 [1] : vector<128x256xf32> to vector<128xf32>
    %64 = vector.shape_cast %63 : vector<128xf32> to vector<128x1xf32>
    %cst_18 = arith.constant dense<0.000000e+00> : vector<128x64xf32>
    %65 = tpu.matmul %62, %5, %cst_18 {dimension_numbers = #tpu.dot_dimension_numbers<[1], [0], [0], [1], [0, 0, 1, 1], [], []>, precision = #tpu.contract_precision<fp32>} : vector<128x256xf32>, vector<256x64xf32>, vector<128x64xf32> -> vector<128x64xf32>
    %cst_19 = arith.constant 1.000000e+00 : f32
    %66 = vector.broadcast %cst_19 : f32 to vector<128x1xf32>
    %67 = arith.divf %66, %64 : vector<128x1xf32>
    %68 = vector.broadcast %67 : vector<128x1xf32> to vector<128x64xf32>
    %69 = arith.mulf %65, %68 : vector<128x64xf32>
    %c0_20 = arith.constant 0 : index
    %c0_21 = arith.constant 0 : index
    %c0_22 = arith.constant 0 : index
    %70 = vector.load %arg5[%c0_20, %c0_21, %c0_22] : memref<1x128x64xf32, #tpu.memory_space<vmem>>, vector<1x128x64xf32>
    %71 = vector.shape_cast %70 : vector<1x128x64xf32> to vector<128x64xf32>
    %72 = vector.shape_cast %69 : vector<128x64xf32> to vector<1x128x64xf32>
    tpu.vector_store %arg5[%c0_20, %c0_21, %c0_22], %72 {strides = array<i32>} : memref<1x128x64xf32, #tpu.memory_space<vmem>>, vector<1x128x64xf32>,
    return
  }
  func.func @transform_0(%arg0: i32, %arg1: i32) -> (i32, i32, i32) {
    %c0_i32 = arith.constant 0 : i32
    %c0_i32_0 = arith.constant 0 : i32
    return %arg0, %arg1, %c0_i32 : i32, i32, i32
  }
  func.func @transform_1(%arg0: i32, %arg1: i32) -> (i32, i32, i32) {
    %c0_i32 = arith.constant 0 : i32
    %c0_i32_0 = arith.constant 0 : i32
    %c0_i32_1 = arith.constant 0 : i32
    return %arg0, %c0_i32, %c0_i32_0 : i32, i32, i32
  }
  func.func @transform_2(%arg0: i32, %arg1: i32) -> (i32, i32, i32) {
    %c0_i32 = arith.constant 0 : i32
    %c0_i32_0 = arith.constant 0 : i32
    %c0_i32_1 = arith.constant 0 : i32
    return %arg0, %c0_i32, %c0_i32_0 : i32, i32, i32
  }
  func.func @transform_3(%arg0: i32, %arg1: i32) -> (i32, i32, i32) {
    %c0_i32 = arith.constant 0 : i32
    %c0_i32_0 = arith.constant 0 : i32
    return %arg0, %arg1, %c0_i32 : i32, i32, i32
  }
}

</mosaic_0001>

<bundles_post_ra>
// kernel: tpu_custom_call.1
= control target key start
LH: loop header
LB: loop body
LE: loop exit
PB: predicated region body
PF: predicated region fallthrough
CT: control target
= control target key end

     0   :  { %s4234_s12 = smov 0   ;;  %s4236_s13 = smov 0   ;;  %s6726_s0 = inlined_call_operand.vmem [shape: f32[2,256,3], index: 0, kind: input, shape index: {}]   ;;  %s6727_s1 = inlined_call_operand.vmem [shape: f32[2,3,256], index: 1, kind: input, shape index: {}]   ;;  %s6728_s2 = inlined_call_operand.vmem [shape: f32[2,256,64], index: 2, kind: input, shape index: {}]   ;;  %s6729_s3 = inlined_call_operand.vmem [shape: f32[2,256,64], index: 3, kind: output, shape index: {}]  }
   0x1   :  { %s4238_s14 = smov 0   ;;  %s4240_s15 = smov 0  }
   0x2   :  { %s4242_s16 = smov 0  }
   0x3 LB: > { %s22_s17 = sadd.s32 1, %s4201_s14  ;;  %s25_s18 = sadd.s32 1, %s4205_s15  ;;  %s4209_s16 = sphi %s4242_s16, %s13_s16   ;;  %s4205_s15 = sphi %s4240_s15, %s7396_s15   ;;  %s4201_s14 = sphi %s4238_s14, %s7395_s14   ;;  %s4197_s13 = sphi %s4236_s13, %s7394_s13   ;;  %s4193_s12 = sphi %s4234_s12, %s7393_s12  }
   0x4   : > { %p23_p0 = scmp.ge.s32.totalorder %s22_s17, 2  ;;  %p3279_p1 = scmp.ge.s32.totalorder %s4209_s16, 1 }
   0x5   : > { %p178_p2 = scmp.lt.s32.totalorder %s4209_s16, 5 }
   0x6   : > { %s7398_s17 = smov (%p23_p0, %s22_s17), 0  ;;  %s7400_s18 = smov (!%p23_p0, %s25_s18), %s4205_s15 }
   0x7   : > { %p179_p3 = pnand %p3279_p1, %p178_p2  ;;  %p27_p4 = scmp.ge.s32.totalorder %s7400_s18, 2 }
   0x9   : > { %s7402_s18 = smov (%p27_p4, %s7400_s18), 0  ;;  %182 = sbr.rel (%p179_p3) target bundleno = 1109 (0x455), region = 32 }
  0x10   : > { %s3280_s19 = sshll.u32 %s4193_s12, 4  ;;  %p221_p5 = scmp.lt.s32.totalorder %s4197_s13, 1  ;;  %v4211_v0 = vmov 2   ;;  %v4212_v1 = vmov 0   ;;  %v4213_v5 = vmov 1   ;;  %v380_v21 = vlaneseq }
  0x11   : > { %4010 = vset.pattern.permute.xlu1 %v4211_v0  ;;  %4009 = vset.pattern.permute.xlu0 %v4212_v1  ;;  %p223_p6 = scmp.lt.s32.totalorder %s3280_s19, 31 }
  0x12   : > { %s7404_s13 = smov (!%p221_p5, %s4197_s13), 1  ;;  %v381_v24 = vshrl.u32 %v380_v21, 7 }
  0x13   : > { %s7406_s19 = smov (!%p223_p6, %s3280_s19), 31  ;;  %s3281_s20 = sshll.u32 %s7404_s13, 5 }
  0x14   : > { %s4269_s21 = sadd.s32 %s3281_s20, %s7406_s19  ;;  %s3292_s26 = sshll.u32 %s7404_s13, 3  ;;  %v738_v27 = vsub.s32 2, %v381_v24  ;;  %v742_v28 = vsub.s32 6, %v381_v24  ;;  %v382_v31 = vsub.s32 0, %v381_v24  ;;  %v560_v32 = vsub.s32 1, %v381_v24 }
  0x15   : > { %s3282_s22 = sshll.u32 %s4269_s21, 3  ;;  %s234_s29 = scalar_lea.vmem %s6727_s1, %s3292_s26  ;;  %v386_v35 = vsub.s32 4, %v381_v24  ;;  %v564_v37 = vsub.s32 5, %v381_v24 }
  0x16   : > { %s4277_s25 = scalar_lea.vmem %s6726_s0, %s3282_s22  ;;  %v266_v29 = vld [vmem:[%s234_s29] sm:$0x77]  ;;  %s3293_s30 = sshll.u32 %s7404_s13, 8 }
  0x17   : > { %v250_v2 = vld [vmem:[%s4277_s25] sm:$0xff]  ;;  %v251_v3 = vld [vmem:[%s4277_s25 + $0x8] sm:$0xff]  ;;  %v252_v4 = vld [vmem:[%s4277_s25 + $0x10] sm:$0xff]  ;;  %v739_v33 = vrot.slane %v266_v29, %v738_v27  ;;  %v743_v34 = vrot.slane %v266_v29, %v742_v28  ;;  %v383_v39 = vrot.slane %v266_v29, %v382_v31  ;;  %v561_v40 = vrot.slane %v266_v29, %v560_v32  ;;  %s4915_s6 = scalar_lea.vmem %s6728_s2, %s3293_s30  ;;  %s6662_s9 = scalar_lea.vmem %s6729_s3, %s3282_s22 }
  0x18   : > { %673 = vperm.xlu1 %4010, %v250_v2   ;;  %301 = vperm.xlu0 %4009, %v250_v2   ;;  %v256_v6 = vld [vmem:[%s4277_s25 + $0x30] sm:$0xff]  ;;  %v257_v7 = vld [vmem:[%s4277_s25 + $0x38] sm:$0xff]  ;;  %v262_v10 = vld [vmem:[%s4277_s25 + $0x60] sm:$0xff]  ;;  %v387_v43 = vrot.slane %v266_v29, %v386_v35  ;;  %v565_v44 = vrot.slane %v266_v29, %v564_v37 }
  0x19   : > { %v261_v8 = vld [vmem:[%s4277_s25 + $0x58] sm:$0xff]  ;;  %v254_v11 = vld [vmem:[%s4277_s25 + $0x20] sm:$0xff]  ;;  %v255_v13 = vld [vmem:[%s4277_s25 + $0x28] sm:$0xff]  ;;  %v4335_v41 = vrot.slane %v739_v33, %v738_v27  ;;  %v4337_v42 = vrot.slane %v743_v34, %v738_v27  ;;  %v4341_v47 = vrot.slane %v383_v39, %v382_v31  ;;  %v4343_v48 = vrot.slane %v561_v40, %v560_v32 }
  0x1a   : > { %v253_v9 = vld [vmem:[%s4277_s25 + $0x18] sm:$0xff]  ;;  %v258_v12 = vld [vmem:[%s4277_s25 + $0x40] sm:$0xff]  ;;  %v259_v14 = vld [vmem:[%s4277_s25 + $0x48] sm:$0xff]  ;;  %v4347_v51 = vrot.slane %v387_v43, %v382_v31  ;;  %v4349_v52 = vrot.slane %v565_v44, %v560_v32 }
  0x1b   : > { %v263_v15 = vld [vmem:[%s4277_s25 + $0x68] sm:$0xff]  ;;  %v264_v16 = vld [vmem:[%s4277_s25 + $0x70] sm:$0xff]  ;;  %v265_v18 = vld [vmem:[%s4277_s25 + $0x78] sm:$0xff] }
  0x1c   : > { %4011 = vset.pattern.permute.xlu1 %v4212_v1  ;;  %4013 = vset.pattern.permute.xlu0 %v4211_v0  ;;  %v260_v17 = vld [vmem:[%s4277_s25 + $0x50] sm:$0xff] }
  0x1d   : > { %306 = vperm.xlu1 %4011, %v251_v3   ;;  %677 = vperm.xlu0 %4013, %v251_v3  }
  0x21   : > { %4012 = vset.pattern.permute.xlu1 %v4213_v5  ;;  %681 = vperm.xlu0 %4013, %v252_v4  }
  0x22   : > { %499 = vperm.xlu1 %4012, %v251_v3  }
  0x25   : > { %697 = vperm.xlu0 %4013, %v256_v6  }
  0x26   : > { %4014 = vset.pattern.permute.xlu1 %v4212_v1 }
  0x27   : > { %311 = vperm.xlu1 %4014, %v252_v4  }
  0x29   : > { %701 = vperm.xlu0 %4013, %v257_v7  }
  0x2b   : > { %4015 = vset.pattern.permute.xlu1 %v4213_v5 }
  0x2c   : > { %503 = vperm.xlu1 %4015, %v252_v4  }
  0x2d   : > { %717 = vperm.xlu0 %4013, %v261_v8  }
  0x30   : > { %4016 = vset.pattern.permute.xlu1 %v4212_v1 }
  0x31   : > { %316 = vperm.xlu1 %4016, %v253_v9   ;;  %721 = vperm.xlu0 %4013, %v262_v10  }
  0x35   : > { %4017 = vset.pattern.permute.xlu1 %v4211_v0  ;;  %4034 = vset.pattern.permute.xlu0 %v4213_v5 }
  0x36   : > { %685 = vperm.xlu1 %4017, %v253_v9   ;;  %495 = vperm.xlu0 %4034, %v250_v2  }
  0x3a   : > { %4018 = vset.pattern.permute.xlu1 %v4212_v1  ;;  %507 = vperm.xlu0 %4034, %v253_v9  }
  0x3b   : > { %321 = vperm.xlu1 %4018, %v254_v11  }
  0x3e   : > { %511 = vperm.xlu0 %4034, %v254_v11  }
  0x3f   : > { %4019 = vset.pattern.permute.xlu1 %v4211_v0 }
  0x40   : > { %689 = vperm.xlu1 %4019, %v254_v11  }
  0x42   : > { %527 = vperm.xlu0 %4034, %v258_v12  }
  0x44   : > { %4020 = vset.pattern.permute.xlu1 %v4213_v5 }
  0x45   : > { %515 = vperm.xlu1 %4020, %v255_v13  }
  0x46   : > { %531 = vperm.xlu0 %4034, %v259_v14  }
  0x49   : > { %4021 = vset.pattern.permute.xlu1 %v4211_v0 }
  0x4a   : > { %693 = vperm.xlu1 %4021, %v255_v13   ;;  %547 = vperm.xlu0 %4034, %v263_v15  }
  0x4e   : > { %4022 = vset.pattern.permute.xlu1 %v4213_v5  ;;  %551 = vperm.xlu0 %4034, %v264_v16  }
  0x4f   : > { %519 = vperm.xlu1 %4022, %v256_v6  }
  0x52   : > { %4038 = vset.pattern.permute.xlu0 %v4212_v1 }
  0x53   : > { %4023 = vset.pattern.permute.xlu1 %v4212_v1  ;;  %326 = vperm.xlu0 %4038, %v255_v13  }
  0x54   : > { %336 = vperm.xlu1 %4023, %v257_v7  }
  0x57   : > { %331 = vperm.xlu0 %4038, %v256_v6  }
  0x58   : > { %4024 = vset.pattern.permute.xlu1 %v4213_v5 }
  0x59   : > { %523 = vperm.xlu1 %4024, %v257_v7  }
  0x5b   : > { %351 = vperm.xlu0 %4038, %v260_v17  }
  0x5d   : > { %4025 = vset.pattern.permute.xlu1 %v4212_v1 }
  0x5e   : > { %341 = vperm.xlu1 %4025, %v258_v12  }
  0x5f   : > { %356 = vperm.xlu0 %4038, %v261_v8  }
  0x62   : > { %4026 = vset.pattern.permute.xlu1 %v4211_v0 }
  0x63   : > { %705 = vperm.xlu1 %4026, %v258_v12   ;;  %376 = vperm.xlu0 %4038, %v265_v18  }
  0x67   : > { %4027 = vset.pattern.permute.xlu1 %v4212_v1  ;;  %4042 = vset.pattern.permute.xlu0 %v4211_v0 }
  0x68   : > { %346 = vperm.xlu1 %4027, %v259_v14  }
  0x6c   : > { %4028 = vset.pattern.permute.xlu1 %v4211_v0 }
  0x6d   : > { %709 = vperm.xlu1 %4028, %v259_v14  }
  0x71   : > { %4029 = vset.pattern.permute.xlu1 %v4213_v5 }
  0x72   : > { %535 = vperm.xlu1 %4029, %v260_v17  }
  0x76   : > { %4030 = vset.pattern.permute.xlu1 %v4211_v0 }
  0x77   : > { %713 = vperm.xlu1 %4030, %v260_v17  }
  0x7b   : > { %4031 = vset.pattern.permute.xlu1 %v4213_v5 }
  0x7c   : > { %539 = vperm.xlu1 %4031, %v261_v8  }
  0x80   : > { %4032 = vset.pattern.permute.xlu1 %v4212_v1 }
  0x81   : > { %361 = vperm.xlu1 %4032, %v262_v10  }
  0x85   : > { %4033 = vset.pattern.permute.xlu1 %v4213_v5 }
  0x86   : > { %543 = vperm.xlu1 %4033, %v262_v10  }
  0x8a   : > { %4035 = vset.pattern.permute.xlu1 %v4212_v1 }
  0x8b   : > { %366 = vperm.xlu1 %4035, %v263_v15  }
  0x8f   : > { %4036 = vset.pattern.permute.xlu1 %v4211_v0 }
  0x90   : > { %725 = vperm.xlu1 %4036, %v263_v15  }
  0x94   : > { %4037 = vset.pattern.permute.xlu1 %v4212_v1 }
  0x95   : > { %371 = vperm.xlu1 %4037, %v264_v16  }
  0x97   : > { %v674_v19 = vpop.permute.xlu1 %673  ;;  %v302_v20 = vpop.permute.xlu0 %301 }
  0x98   : > { %v754_v49 = vsub.f32 %v674_v19, %v4335_v41  ;;  %v755_v50 = vsub.f32 %v674_v19, %v4337_v42  ;;  %v398_v54 = vsub.f32 %v302_v20, %v4341_v47  ;;  %v399_v55 = vsub.f32 %v302_v20, %v4347_v51 }
  0x99   : > { %4039 = vset.pattern.permute.xlu1 %v4211_v0 }
  0x9a   : > { %729 = vperm.xlu1 %4039, %v264_v16   ;;  %v786_v62 = vmul.f32 %v754_v49, %v754_v49  ;;  %v787_v63 = vmul.f32 %v755_v50, %v755_v50  ;;  %v430_v6 = vmul.f32 %v398_v54, %v398_v54  ;;  %v431_v7 = vmul.f32 %v399_v55, %v399_v55 }
  0x9c   : > { %v307_v22 = vpop.permute.xlu1 %306  ;;  %v678_v23 = vpop.permute.xlu0 %677 }
  0x9d   : > { %v400_v58 = vsub.f32 %v307_v22, %v4341_v47  ;;  %v756_v1 = vsub.f32 %v678_v23, %v4335_v41  ;;  %v757_v8 = vsub.f32 %v678_v23, %v4337_v42 }
  0x9e   : > { %4040 = vset.pattern.permute.xlu1 %v4213_v5 }
  0x9f   : > { %555 = vperm.xlu1 %4040, %v265_v18   ;;  %v432_v10 = vmul.f32 %v400_v58, %v400_v58  ;;  %v788_v17 = vmul.f32 %v756_v1, %v756_v1 }
  0xa0   : > { %v682_v25 = vpop.permute.xlu0 %681 }
  0xa1   : > { %v500_v26 = vpop.permute.xlu1 %499  ;;  %v758_v3 = vsub.f32 %v682_v25, %v4335_v41  ;;  %v759_v9 = vsub.f32 %v682_v25, %v4337_v42 }
  0xa2   : > { %v578_v59 = vsub.f32 %v500_v26, %v4343_v48  ;;  %v579_v2 = vsub.f32 %v500_v26, %v4349_v52  ;;  %v789_v26 = vmul.f32 %v757_v8, %v757_v8 }
  0xa3   : > { %4041 = vset.pattern.permute.xlu1 %v4211_v0  ;;  %v401_v0 = vsub.f32 %v307_v22, %v4347_v51  ;;  %v790_v21 = vmul.f32 %v758_v3, %v758_v3  ;;  %v791_v23 = vmul.f32 %v759_v9, %v759_v9 }
  0xa4   : > { %733 = vperm.xlu1 %4041, %v265_v18   ;;  %v4331_v30 = vpop.permute.xlu0 %697  ;;  %v610_v11 = vmul.f32 %v578_v59, %v578_v59  ;;  %v611_v20 = vmul.f32 %v579_v2, %v579_v2 }
  0xa5   : > { %v433_v16 = vmul.f32 %v401_v0, %v401_v0 }
  0xa6   : > { %v312_v36 = vpop.permute.xlu1 %311  ;;  %v642_v28 = vadd.f32 %v610_v11, %v432_v10 }
  0xa7   : > { %v402_v60 = vsub.f32 %v312_v36, %v4341_v47  ;;  %v403_v4 = vsub.f32 %v312_v36, %v4347_v51  ;;  %v643_v40 = vadd.f32 %v611_v20, %v433_v16 }
  0xa8   : > { %v4333_v38 = vpop.permute.xlu0 %701 }
  0xa9   : > { %v434_v12 = vmul.f32 %v402_v60, %v402_v60  ;;  %v435_v22 = vmul.f32 %v403_v4, %v403_v4 }
  0xab   : > { %v504_v45 = vpop.permute.xlu1 %503 }
  0xac   : > { %v4339_v46 = vpop.permute.xlu0 %717  ;;  %v580_v53 = vsub.f32 %v504_v45, %v4343_v48  ;;  %v581_v61 = vsub.f32 %v504_v45, %v4349_v52 }
  0xae   : > { %v612_v5 = vmul.f32 %v580_v53, %v580_v53  ;;  %v613_v13 = vmul.f32 %v581_v61, %v581_v61 }
  0xb0   : > { %v317_v56 = vpop.permute.xlu1 %316  ;;  %v4354_v57 = vpop.permute.xlu0 %721  ;;  %v644_v24 = vadd.f32 %v612_v5, %v434_v12  ;;  %v645_v29 = vadd.f32 %v613_v13, %v435_v22  ;;  %v4393_v13 = vadd.f32 %v788_v17, %v642_v28 }
  0xb1   : > { %v404_v31 = vsub.f32 %v317_v56, %v4341_v47  ;;  %v405_v32 = vsub.f32 %v317_v56, %v4347_v51 }
  0xb2   : > { %v4375_v45 = vadd.f32 %v790_v21, %v644_v24  ;;  %v4385_v2 = vadd.f32 %v791_v23, %v645_v29 }
  0xb3   : > { %v436_v55 = vmul.f32 %v404_v31, %v404_v31  ;;  %v437_v56 = vmul.f32 %v405_v32, %v405_v32 }
  0xb4   : > { %v856_v20 = vmin.f32 %v4375_v45, %v4385_v2 }
  0xb5   : > { %v686_v14 = vpop.permute.xlu1 %685  ;;  %v496_v15 = vpop.permute.xlu0 %495 }
  0xb6   : > { %v576_v18 = vsub.f32 %v496_v15, %v4343_v48  ;;  %v577_v19 = vsub.f32 %v496_v15, %v4349_v52  ;;  %v760_v58 = vsub.f32 %v686_v14, %v4335_v41  ;;  %v761_v59 = vsub.f32 %v686_v14, %v4337_v42 }
  0xb7   : > { %v4395_v14 = vadd.f32 %v789_v26, %v643_v40 }
  0xb8   : > { %v608_v27 = vmul.f32 %v576_v18, %v576_v18  ;;  %v609_v25 = vmul.f32 %v577_v19, %v577_v19  ;;  %v792_v10 = vmul.f32 %v760_v58, %v760_v58  ;;  %v793_v11 = vmul.f32 %v761_v59, %v761_v59 }
  0xb9   : > { %v508_v33 = vpop.permute.xlu0 %507  ;;  %v853_v17 = vmin.f32 %v4393_v13, %v4395_v14 }
  0xba   : > { %v640_v34 = vadd.f32 %v608_v27, %v430_v6  ;;  %v641_v35 = vadd.f32 %v609_v25, %v431_v7  ;;  %v582_v36 = vsub.f32 %v508_v33, %v4343_v48  ;;  %v583_v37 = vsub.f32 %v508_v33, %v4349_v52  ;;  %v322_v39 = vpop.permute.xlu1 %321 }
  0xbb   : > { %v406_v43 = vsub.f32 %v322_v39, %v4341_v47  ;;  %v407_v44 = vsub.f32 %v322_v39, %v4347_v51  ;;  %v768_v39 = vsub.f32 %v4333_v38, %v4335_v41 }
  0xbc   : > { %v614_v49 = vmul.f32 %v582_v36, %v582_v36  ;;  %v615_v50 = vmul.f32 %v583_v37, %v583_v37  ;;  %v4377_v53 = vadd.f32 %v786_v62, %v640_v34  ;;  %v4379_v54 = vadd.f32 %v787_v63, %v641_v35 }
  0xbd   : > { %v512_v60 = vpop.permute.xlu0 %511  ;;  %v438_v61 = vmul.f32 %v406_v43, %v406_v43  ;;  %v439_v62 = vmul.f32 %v407_v44, %v407_v44  ;;  %v766_v34 = vsub.f32 %v4331_v30, %v4335_v41  ;;  %v767_v35 = vsub.f32 %v4331_v30, %v4337_v42 }
  0xbe   : > { %v584_v0 = vsub.f32 %v512_v60, %v4343_v48  ;;  %v585_v1 = vsub.f32 %v512_v60, %v4349_v52  ;;  %v646_v3 = vadd.f32 %v614_v49, %v436_v55  ;;  %v647_v4 = vadd.f32 %v615_v50, %v437_v56 }
  0xbf   : > { %v690_v5 = vpop.permute.xlu1 %689  ;;  %v850_v63 = vmin.f32 %v4377_v53, %v4379_v54  ;;  %v798_v43 = vmul.f32 %v766_v34, %v766_v34  ;;  %v799_v44 = vmul.f32 %v767_v35, %v767_v35 }
  0xc0   : > { %v616_v6 = vmul.f32 %v584_v0, %v584_v0  ;;  %v617_v7 = vmul.f32 %v585_v1, %v585_v1  ;;  %v762_v8 = vsub.f32 %v690_v5, %v4335_v41  ;;  %v763_v9 = vsub.f32 %v690_v5, %v4337_v42 }
  0xc1   : > { %851 = vmin.xlane.f32.xlu0 %v850_v63  ;;  %v4391_v12 = vpop.permute.xlu0 %527  ;;  %v4399_v21 = vadd.f32 %v792_v10, %v646_v3  ;;  %v4401_v22 = vadd.f32 %v793_v11, %v647_v4  ;;  %v769_v3 = vsub.f32 %v4333_v38, %v4337_v42  ;;  %v800_v4 = vmul.f32 %v768_v39, %v768_v39 }
  0xc2   : > { %v648_v15 = vadd.f32 %v616_v6, %v438_v61  ;;  %v649_v16 = vadd.f32 %v617_v7, %v439_v62  ;;  %v794_v18 = vmul.f32 %v762_v8, %v762_v8  ;;  %v795_v19 = vmul.f32 %v763_v9, %v763_v9 }
  0xc3   : > { %v859_v25 = vmin.f32 %v4399_v21, %v4401_v22  ;;  %v592_v39 = vsub.f32 %v4391_v12, %v4343_v48 }
  0xc4   : > { %v516_v24 = vpop.permute.xlu1 %515  ;;  %v4407_v26 = vadd.f32 %v794_v18, %v648_v15  ;;  %v4409_v27 = vadd.f32 %v795_v19, %v649_v16 }
  0xc5   : > { %857 = vmin.xlane.f32.xlu0 %v856_v20  ;;  %v4403_v23 = vpop.permute.xlu0 %531  ;;  %v586_v36 = vsub.f32 %v516_v24, %v4343_v48  ;;  %v587_v37 = vsub.f32 %v516_v24, %v4349_v52 }
  0xc6   : > { %v862_v31 = vmin.f32 %v4407_v26, %v4409_v27 }
  0xc7   : > { %v618_v60 = vmul.f32 %v586_v36, %v586_v36  ;;  %v619_v61 = vmul.f32 %v587_v37, %v587_v37  ;;  %v801_v37 = vmul.f32 %v769_v3, %v769_v3 }
  0xc8   : > { %854 = vmin.xlane.f32.xlu1 %v853_v17 }
  0xc9   : > { %860 = vmin.xlane.f32.xlu0 %v859_v25  ;;  %v694_v28 = vpop.permute.xlu1 %693  ;;  %v4413_v29 = vpop.permute.xlu0 %547 }
  0xca   : > { %v764_v56 = vsub.f32 %v694_v28, %v4335_v41  ;;  %v765_v58 = vsub.f32 %v694_v28, %v4337_v42 }
  0xcc   : > { %863 = vmin.xlane.f32.xlu1 %v862_v31  ;;  %v796_v10 = vmul.f32 %v764_v56, %v764_v56  ;;  %v797_v11 = vmul.f32 %v765_v58, %v765_v58 }
  0xcd   : > { %v4417_v32 = vpop.permute.xlu0 %551 }
  0xce   : > { %v520_v33 = vpop.permute.xlu1 %519 }
  0xcf   : > { %v588_v30 = vsub.f32 %v520_v33, %v4343_v48  ;;  %v589_v59 = vsub.f32 %v520_v33, %v4349_v52 }
  0xd1   : > { %v620_v15 = vmul.f32 %v588_v30, %v588_v30  ;;  %v621_v16 = vmul.f32 %v589_v59, %v589_v59 }
  0xd2   : > { %v327_v40 = vpop.permute.xlu0 %326 }
  0xd3   : > { %v408_v49 = vsub.f32 %v327_v40, %v4341_v47  ;;  %v409_v50 = vsub.f32 %v327_v40, %v4347_v51  ;;  %v337_v55 = vpop.permute.xlu1 %336  ;;  %v593_v40 = vsub.f32 %v4391_v12, %v4349_v52 }
  0xd4   : > { %v412_v62 = vsub.f32 %v337_v55, %v4341_v47  ;;  %v413_v5 = vsub.f32 %v337_v55, %v4347_v51 }
  0xd5   : > { %v440_v0 = vmul.f32 %v408_v49, %v408_v49  ;;  %v441_v1 = vmul.f32 %v409_v50, %v409_v50  ;;  %v625_v3 = vmul.f32 %v593_v40, %v593_v40 }
  0xd6   : > { %v332_v63 = vpop.permute.xlu0 %331  ;;  %v444_v17 = vmul.f32 %v412_v62, %v412_v62  ;;  %v445_v25 = vmul.f32 %v413_v5, %v413_v5 }
  0xd7   : > { %v650_v6 = vadd.f32 %v618_v60, %v440_v0  ;;  %v651_v7 = vadd.f32 %v619_v61, %v441_v1  ;;  %v410_v8 = vsub.f32 %v332_v63, %v4341_v47  ;;  %v411_v9 = vsub.f32 %v332_v63, %v4347_v51 }
  0xd8   : > { %v524_v18 = vpop.permute.xlu1 %523  ;;  %v624_v1 = vmul.f32 %v592_v39, %v592_v39 }
  0xd9   : > { %v442_v19 = vmul.f32 %v410_v8, %v410_v8  ;;  %v443_v20 = vmul.f32 %v411_v9, %v411_v9  ;;  %v590_v38 = vsub.f32 %v524_v18, %v4343_v48  ;;  %v591_v24 = vsub.f32 %v524_v18, %v4349_v52 }
  0xda   : > { %v4441_v28 = vadd.f32 %v796_v10, %v650_v6  ;;  %v4443_v31 = vadd.f32 %v797_v11, %v651_v7 }
  0xdb   : > { %v652_v33 = vadd.f32 %v620_v15, %v442_v19  ;;  %v653_v34 = vadd.f32 %v621_v16, %v443_v20  ;;  %v622_v35 = vmul.f32 %v590_v38, %v590_v38  ;;  %v623_v36 = vmul.f32 %v591_v24, %v591_v24 }
  0xdc   : > { %v865_v49 = vmin.f32 %v4441_v28, %v4443_v31  ;;  %v594_v19 = vsub.f32 %v4403_v23, %v4343_v48  ;;  %v595_v20 = vsub.f32 %v4403_v23, %v4349_v52 }
  0xdd   : > { %v654_v50 = vadd.f32 %v622_v35, %v444_v17  ;;  %v655_v55 = vadd.f32 %v623_v36, %v445_v25  ;;  %v342_v56 = vpop.permute.xlu1 %341  ;;  %v4451_v58 = vadd.f32 %v798_v43, %v652_v33  ;;  %v4453_v30 = vadd.f32 %v799_v44, %v653_v34 }
  0xde   : > { %v414_v59 = vsub.f32 %v342_v56, %v4341_v47  ;;  %v415_v60 = vsub.f32 %v342_v56, %v4347_v51  ;;  %866 = vmin.xlane.f32.xlu0 %v865_v49  ;;  %v626_v33 = vmul.f32 %v594_v19, %v594_v19  ;;  %v627_v34 = vmul.f32 %v595_v20, %v595_v20 }
  0xdf   : > { %v868_v61 = vmin.f32 %v4451_v58, %v4453_v30  ;;  %v4459_v0 = vadd.f32 %v800_v4, %v654_v50  ;;  %v4461_v12 = vadd.f32 %v801_v37, %v655_v55  ;;  %v352_v37 = vpop.permute.xlu0 %351 }
  0xe0   : > { %v446_v62 = vmul.f32 %v414_v59, %v414_v59  ;;  %v447_v5 = vmul.f32 %v415_v60, %v415_v60  ;;  %v418_v59 = vsub.f32 %v352_v37, %v4341_v47  ;;  %v419_v60 = vsub.f32 %v352_v37, %v4347_v51 }
  0xe1   : > { %869 = vmin.xlane.f32.xlu1 %v868_v61  ;;  %v871_v43 = vmin.f32 %v4459_v0, %v4461_v12 }
  0xe2   : > { %v706_v44 = vpop.permute.xlu1 %705  ;;  %v656_v7 = vadd.f32 %v624_v1, %v446_v62  ;;  %v657_v8 = vadd.f32 %v625_v3, %v447_v5 }
  0xe3   : > { %v770_v63 = vsub.f32 %v706_v44, %v4335_v41  ;;  %v771_v6 = vsub.f32 %v706_v44, %v4337_v42  ;;  %872 = vmin.xlane.f32.xlu0 %v871_v43  ;;  %v450_v43 = vmul.f32 %v418_v59, %v418_v59  ;;  %v451_v44 = vmul.f32 %v419_v60, %v419_v60 }
  0xe5   : > { %v802_v4 = vmul.f32 %v770_v63, %v770_v63  ;;  %v803_v9 = vmul.f32 %v771_v6, %v771_v6 }
  0xe7   : > { %v4467_v10 = vadd.f32 %v802_v4, %v656_v7  ;;  %v4469_v11 = vadd.f32 %v803_v9, %v657_v8  ;;  %v347_v15 = vpop.permute.xlu1 %346  ;;  %v357_v9 = vpop.permute.xlu0 %356 }
  0xe8   : > { %v416_v16 = vsub.f32 %v347_v15, %v4341_v47  ;;  %v417_v18 = vsub.f32 %v347_v15, %v4347_v51  ;;  %v421_v19 = vsub.f32 %v357_v9, %v4347_v51 }
  0xe9   : > { %v874_v38 = vmin.f32 %v4467_v10, %v4469_v11 }
  0xea   : > { %v448_v24 = vmul.f32 %v416_v16, %v416_v16  ;;  %v449_v17 = vmul.f32 %v417_v18, %v417_v18  ;;  %v420_v18 = vsub.f32 %v357_v9, %v4341_v47  ;;  %v453_v37 = vmul.f32 %v421_v19, %v421_v19 }
  0xeb   : > { %875 = vmin.xlane.f32.xlu1 %v874_v38 }
  0xec   : > { %v710_v25 = vpop.permute.xlu1 %709  ;;  %v658_v39 = vadd.f32 %v626_v33, %v448_v24  ;;  %v659_v40 = vadd.f32 %v627_v34, %v449_v17  ;;  %v776_v17 = vsub.f32 %v4339_v46, %v4335_v41 }
  0xed   : > { %v772_v35 = vsub.f32 %v710_v25, %v4335_v41  ;;  %v773_v36 = vsub.f32 %v710_v25, %v4337_v42  ;;  %v777_v25 = vsub.f32 %v4339_v46, %v4337_v42 }
  0xef   : > { %v804_v49 = vmul.f32 %v772_v35, %v772_v35  ;;  %v805_v50 = vmul.f32 %v773_v36, %v773_v36  ;;  %v452_v36 = vmul.f32 %v420_v18, %v420_v18 }
  0xf1   : > { %v4481_v55 = vadd.f32 %v804_v49, %v658_v39  ;;  %v4483_v23 = vadd.f32 %v805_v50, %v659_v40  ;;  %v536_v56 = vpop.permute.xlu1 %535  ;;  %v808_v49 = vmul.f32 %v776_v17, %v776_v17  ;;  %v809_v50 = vmul.f32 %v777_v25, %v777_v25 }
  0xf2   : > { %v596_v61 = vsub.f32 %v536_v56, %v4343_v48  ;;  %v597_v1 = vsub.f32 %v536_v56, %v4349_v52 }
  0xf3   : > { %v877_v3 = vmin.f32 %v4481_v55, %v4483_v23 }
  0xf4   : > { %v628_v62 = vmul.f32 %v596_v61, %v596_v61  ;;  %v629_v5 = vmul.f32 %v597_v1, %v597_v1 }
  0xf5   : > { %878 = vmin.xlane.f32.xlu0 %v877_v3 }
  0xf6   : > { %v714_v63 = vpop.permute.xlu1 %713  ;;  %v660_v8 = vadd.f32 %v628_v62, %v450_v43  ;;  %v661_v4 = vadd.f32 %v629_v5, %v451_v44  ;;  %v778_v43 = vsub.f32 %v4354_v57, %v4335_v41  ;;  %v779_v44 = vsub.f32 %v4354_v57, %v4337_v42 }
  0xf7   : > { %v774_v6 = vsub.f32 %v714_v63, %v4335_v41  ;;  %v775_v7 = vsub.f32 %v714_v63, %v4337_v42  ;;  %v602_v57 = vsub.f32 %v4413_v29, %v4343_v48 }
  0xf9   : > { %v806_v15 = vmul.f32 %v774_v6, %v774_v6  ;;  %v807_v16 = vmul.f32 %v775_v7, %v775_v7 }
  0xfb   : > { %v4495_v20 = vadd.f32 %v806_v15, %v660_v8  ;;  %v4497_v38 = vadd.f32 %v807_v16, %v661_v4  ;;  %v540_v24 = vpop.permute.xlu1 %539  ;;  %v810_v15 = vmul.f32 %v778_v43, %v778_v43  ;;  %v811_v16 = vmul.f32 %v779_v44, %v779_v44 }
  0xfc   : > { %v598_v33 = vsub.f32 %v540_v24, %v4343_v48  ;;  %v599_v34 = vsub.f32 %v540_v24, %v4349_v52 }
  0xfd   : > { %v880_v35 = vmin.f32 %v4495_v20, %v4497_v38 }
  0xfe   : > { %v630_v39 = vmul.f32 %v598_v33, %v598_v33  ;;  %v631_v40 = vmul.f32 %v599_v34, %v599_v34  ;;  %v603_v33 = vsub.f32 %v4413_v29, %v4349_v52 }
  0xff   : > { %881 = vmin.xlane.f32.xlu1 %v880_v35 }
 0x100   : > { %v662_v56 = vadd.f32 %v630_v39, %v452_v36  ;;  %v663_v59 = vadd.f32 %v631_v40, %v453_v37  ;;  %v362_v60 = vpop.permute.xlu1 %361 }
 0x101   : > { %v422_v1 = vsub.f32 %v362_v60, %v4341_v47  ;;  %v423_v3 = vsub.f32 %v362_v60, %v4347_v51 }
 0x102   : > { %v4507_v61 = vadd.f32 %v808_v49, %v662_v56  ;;  %v4509_v46 = vadd.f32 %v809_v50, %v663_v59  ;;  %v634_v49 = vmul.f32 %v602_v57, %v602_v57  ;;  %v635_v50 = vmul.f32 %v603_v33, %v603_v33 }
 0x103   : > { %v454_v7 = vmul.f32 %v422_v1, %v422_v1  ;;  %v455_v8 = vmul.f32 %v423_v3, %v423_v3 }
 0x104   : > { %v883_v62 = vmin.f32 %v4507_v61, %v4509_v46 }
 0x105   : > { %v544_v5 = vpop.permute.xlu1 %543 }
 0x106   : > { %v600_v63 = vsub.f32 %v544_v5, %v4343_v48  ;;  %v601_v6 = vsub.f32 %v544_v5, %v4349_v52  ;;  %884 = vmin.xlane.f32.xlu0 %v883_v62 }
 0x108   : > { %v632_v4 = vmul.f32 %v600_v63, %v600_v63  ;;  %v633_v9 = vmul.f32 %v601_v6, %v601_v6  ;;  %v604_v6 = vsub.f32 %v4417_v32, %v4343_v48 }
 0x10a   : > { %v664_v18 = vadd.f32 %v632_v4, %v454_v7  ;;  %v665_v19 = vadd.f32 %v633_v9, %v455_v8  ;;  %v367_v24 = vpop.permute.xlu1 %366  ;;  %v605_v7 = vsub.f32 %v4417_v32, %v4349_v52 }
 0x10b   : > { %v424_v17 = vsub.f32 %v367_v24, %v4341_v47  ;;  %v425_v25 = vsub.f32 %v367_v24, %v4347_v51 }
 0x10c   : > { %v4527_v34 = vadd.f32 %v810_v15, %v664_v18  ;;  %v4529_v35 = vadd.f32 %v811_v16, %v665_v19  ;;  %v636_v16 = vmul.f32 %v604_v6, %v604_v6  ;;  %v637_v18 = vmul.f32 %v605_v7, %v605_v7 }
 0x10d   : > { %v456_v36 = vmul.f32 %v424_v17, %v424_v17  ;;  %v457_v37 = vmul.f32 %v425_v25, %v425_v25 }
 0x10e   : > { %v886_v39 = vmin.f32 %v4527_v34, %v4529_v35 }
 0x10f   : > { %v726_v40 = vpop.permute.xlu1 %725  ;;  %v666_v60 = vadd.f32 %v634_v49, %v456_v36  ;;  %v667_v1 = vadd.f32 %v635_v50, %v457_v37  ;;  %v377_v36 = vpop.permute.xlu0 %376 }
 0x110   : > { %v780_v56 = vsub.f32 %v726_v40, %v4335_v41  ;;  %v781_v59 = vsub.f32 %v726_v40, %v4337_v42  ;;  %887 = vmin.xlane.f32.xlu1 %v886_v39  ;;  %v428_v50 = vsub.f32 %v377_v36, %v4341_v47 }
 0x112   : > { %v812_v29 = vmul.f32 %v780_v56, %v780_v56  ;;  %v813_v3 = vmul.f32 %v781_v59, %v781_v59  ;;  %v429_v56 = vsub.f32 %v377_v36, %v4347_v51 }
 0x114   : > { %v4535_v62 = vadd.f32 %v812_v29, %v666_v60  ;;  %v4537_v5 = vadd.f32 %v813_v3, %v667_v1  ;;  %v372_v43 = vpop.permute.xlu1 %371  ;;  %v460_v3 = vmul.f32 %v428_v50, %v428_v50 }
 0x115   : > { %v426_v44 = vsub.f32 %v372_v43, %v4341_v47  ;;  %v427_v63 = vsub.f32 %v372_v43, %v4347_v51  ;;  %v461_v43 = vmul.f32 %v429_v56, %v429_v56 }
 0x116   : > { %v889_v8 = vmin.f32 %v4535_v62, %v4537_v5 }
 0x117   : > { %v458_v4 = vmul.f32 %v426_v44, %v426_v44  ;;  %v459_v9 = vmul.f32 %v427_v63, %v427_v63 }
 0x118   : > { %890 = vmin.xlane.f32.xlu0 %v889_v8 }
 0x119   : > { %v730_v15 = vpop.permute.xlu1 %729  ;;  %v668_v17 = vadd.f32 %v636_v16, %v458_v4  ;;  %v669_v25 = vadd.f32 %v637_v18, %v459_v9 }
 0x11a   : > { %v782_v19 = vsub.f32 %v730_v15, %v4335_v41  ;;  %v783_v24 = vsub.f32 %v730_v15, %v4337_v42 }
 0x11c   : > { %v814_v57 = vmul.f32 %v782_v19, %v782_v19  ;;  %v815_v33 = vmul.f32 %v783_v24, %v783_v24 }
 0x11e   : > { %v4549_v37 = vadd.f32 %v814_v57, %v668_v17  ;;  %v4551_v32 = vadd.f32 %v815_v33, %v669_v25  ;;  %v556_v39 = vpop.permute.xlu1 %555 }
 0x11f   : > { %v606_v40 = vsub.f32 %v556_v39, %v4343_v48  ;;  %v607_v49 = vsub.f32 %v556_v39, %v4349_v52 }
 0x120   : > { %v892_v59 = vmin.f32 %v4549_v37, %v4551_v32 }
 0x121   : > { %v638_v60 = vmul.f32 %v606_v40, %v606_v40  ;;  %v639_v1 = vmul.f32 %v607_v49, %v607_v49 }
 0x122   : > { %893 = vmin.xlane.f32.xlu1 %v892_v59 }
 0x123   : > { %v734_v29 = vpop.permute.xlu1 %733  ;;  %v670_v48 = vadd.f32 %v638_v60, %v460_v3  ;;  %v671_v6 = vadd.f32 %v639_v1, %v461_v43 }
 0x124   : > { %v784_v44 = vsub.f32 %v734_v29, %v4335_v41  ;;  %v785_v63 = vsub.f32 %v734_v29, %v4337_v42 }
 0x126   : > { %v816_v52 = vmul.f32 %v784_v44, %v784_v44  ;;  %v817_v7 = vmul.f32 %v785_v63, %v785_v63 }
 0x128   : > { %v4561_v47 = vadd.f32 %v816_v52, %v670_v48  ;;  %v4563_v51 = vadd.f32 %v817_v7, %v671_v6 }
 0x12a   : > { %v895_v8 = vmin.f32 %v4561_v47, %v4563_v51 }
 0x12c   : > { %896 = vmin.xlane.f32.xlu0 %v895_v8 }
 0x14e   : > { %v852_v4 = vpop.xlane.xlu0 %851 }
 0x14f   : > { %v898_v9 = vmax.f32 %v852_v4, 1e-20  ;;  %vm930_vm0 = vcmp.eq.f32.partialorder %v4377_v53, %v852_v4  ;;  %vm931_vm1 = vcmp.eq.f32.partialorder %v4379_v54, %v852_v4 }
 0x150   : > { %v4572_v41 = vsel %vm930_vm0, 3e+38, %v4377_v53  ;;  %v4577_v42 = vsel %vm931_vm1, 3e+38, %v4379_v54 }
 0x151   : > { %4043 = vrsqrt.f32 %v898_v9  ;;  %v1026_v15 = vmin.f32 %v4572_v41, %v4577_v42 }
 0x152   : > { %v858_v16 = vpop.xlane.xlu0 %857 }
 0x153   : > { %v900_v18 = vmax.f32 %v858_v16, 1e-20  ;;  %vm934_vm2 = vcmp.eq.f32.partialorder %v4375_v45, %v858_v16  ;;  %vm935_vm3 = vcmp.eq.f32.partialorder %v4385_v2, %v858_v16  ;;  %1027 = vmin.xlane.f32.xlu1 %v1026_v15 }
 0x154   : > { %v4586_v19 = vsel %vm934_vm2, 3e+38, %v4375_v45  ;;  %v4591_v24 = vsel %vm935_vm3, 3e+38, %v4385_v2 }
 0x155   : > { %4045 = vrsqrt.f32 %v900_v18  ;;  %v855_v17 = vpop.xlane.xlu1 %854  ;;  %v1032_v25 = vmin.f32 %v4586_v19, %v4591_v24 }
 0x156   : > { %v899_v57 = vmax.f32 %v855_v17, 1e-20  ;;  %vm932_vm4 = vcmp.eq.f32.partialorder %v4393_v13, %v855_v17  ;;  %vm933_vm5 = vcmp.eq.f32.partialorder %v4395_v14, %v855_v17  ;;  %v861_v33 = vpop.xlane.xlu0 %860 }
 0x157   : > { %v901_v36 = vmax.f32 %v861_v33, 1e-20  ;;  %vm936_vm6 = vcmp.eq.f32.partialorder %v4399_v21, %v861_v33  ;;  %vm937_vm7 = vcmp.eq.f32.partialorder %v4401_v22, %v861_v33  ;;  %1033 = vmin.xlane.f32.xlu1 %v1032_v25  ;;  %v4602_v39 = vsel %vm932_vm4, 3e+38, %v4393_v13 }
 0x158   : > { %4047 = vrsqrt.f32 %v899_v57  ;;  %v4607_v40 = vsel %vm933_vm5, 3e+38, %v4395_v14  ;;  %v4614_v56 = vsel %vm936_vm6, 3e+38, %v4399_v21  ;;  %v4621_v60 = vsel %vm937_vm7, 3e+38, %v4401_v22 }
 0x159   : > { %4049 = vrsqrt.f32 %v901_v36  ;;  %v864_v49 = vpop.xlane.xlu1 %863  ;;  %v1029_v50 = vmin.f32 %v4602_v39, %v4607_v40  ;;  %v1035_v48 = vmin.f32 %v4614_v56, %v4621_v60 }
 0x15a   : > { %v902_v59 = vmax.f32 %v864_v49, 1e-20  ;;  %vm938_vm8 = vcmp.eq.f32.partialorder %v4407_v26, %v864_v49  ;;  %vm939_vm9 = vcmp.eq.f32.partialorder %v4409_v27, %v864_v49 }
 0x15b   : > { %v4044_v1 = vpop.eup %4043  ;;  %1030 = vmin.xlane.f32.xlu0 %v1029_v50  ;;  %v4626_v29 = vsel %vm938_vm8, 3e+38, %v4407_v26  ;;  %v4631_v3 = vsel %vm939_vm9, 3e+38, %v4409_v27 }
 0x15c   : > { %v4635_v43 = vsel %vm930_vm0, %v4044_v1, 0.0  ;;  %v4639_v44 = vsel %vm931_vm1, %v4044_v1, 0.0  ;;  %4051 = vrsqrt.f32 %v902_v59  ;;  %v1038_v63 = vmin.f32 %v4626_v29, %v4631_v3 }
 0x15e   : > { %1039 = vmin.xlane.f32.xlu1 %v1038_v63 }
 0x15f   : > { %v4046_v6 = vpop.eup %4045  ;;  %1036 = vmin.xlane.f32.xlu0 %v1035_v48 }
 0x160   : > { %v4647_v52 = vsel %vm934_vm2, %v4046_v6, 0.0  ;;  %v4651_v53 = vsel %vm935_vm3, %v4046_v6, 0.0 }
 0x162   : > { %v4048_v54 = vpop.eup %4047 }
 0x163   : > { %v4050_v7 = vpop.eup %4049  ;;  %v4655_v8 = vsel %vm932_vm4, %v4048_v54, 0.0  ;;  %v4659_v4 = vsel %vm933_vm5, %v4048_v54, 0.0 }
 0x164   : > { %v4663_v9 = vsel %vm936_vm6, %v4050_v7, 0.0  ;;  %v4667_v45 = vsel %vm937_vm7, %v4050_v7, 0.0 }
 0x166   : > { %v4052_v2 = vpop.eup %4051 }
 0x167   : > { %v4671_v15 = vsel %vm938_vm8, %v4052_v2, 0.0  ;;  %v4675_v13 = vsel %vm939_vm9, %v4052_v2, 0.0 }
 0x16b   : > { %v867_v14 = vpop.xlane.xlu0 %866 }
 0x16c   : > { %v903_v16 = vmax.f32 %v867_v14, 1e-20  ;;  %vm940_vm10 = vcmp.eq.f32.partialorder %v4441_v28, %v867_v14  ;;  %vm941_vm11 = vcmp.eq.f32.partialorder %v4443_v31, %v867_v14 }
 0x16d   : > { %v4682_v21 = vsel %vm940_vm10, 3e+38, %v4441_v28  ;;  %v4687_v22 = vsel %vm941_vm11, 3e+38, %v4443_v31 }
 0x16e   : > { %4053 = vrsqrt.f32 %v903_v16  ;;  %v870_v26 = vpop.xlane.xlu1 %869  ;;  %v1041_v27 = vmin.f32 %v4682_v21, %v4687_v22 }
 0x16f   : > { %v904_v18 = vmax.f32 %v870_v26, 1e-20  ;;  %vm942_vm12 = vcmp.eq.f32.partialorder %v4451_v58, %v870_v26  ;;  %vm943_vm13 = vcmp.eq.f32.partialorder %v4453_v30, %v870_v26 }
 0x170   : > { %1042 = vmin.xlane.f32.xlu0 %v1041_v27  ;;  %v873_v17 = vpop.xlane.xlu0 %872  ;;  %v4696_v25 = vsel %vm942_vm12, 3e+38, %v4451_v58  ;;  %v4701_v57 = vsel %vm943_vm13, 3e+38, %v4453_v30 }
 0x171   : > { %4055 = vrsqrt.f32 %v904_v18  ;;  %v905_v33 = vmax.f32 %v873_v17, 1e-20  ;;  %vm944_vm14 = vcmp.eq.f32.partialorder %v4459_v0, %v873_v17  ;;  %vm945_vm15 = vcmp.eq.f32.partialorder %v4461_v12, %v873_v17 }
 0x172   : > { %v1044_v36 = vmin.f32 %v4696_v25, %v4701_v57  ;;  %v4710_v49 = vsel %vm944_vm14, 3e+38, %v4459_v0  ;;  %v4715_v50 = vsel %vm945_vm15, 3e+38, %v4461_v12 }
 0x173   : > { %4057 = vrsqrt.f32 %v905_v33  ;;  %v1047_v59 = vmin.f32 %v4710_v49, %v4715_v50 }
 0x174   : > { %1045 = vmin.xlane.f32.xlu1 %v1044_v36 }
 0x175   : > { %1048 = vmin.xlane.f32.xlu0 %v1047_v59 }
 0x178   : > { %v4054_v1 = vpop.eup %4053  ;;  %v876_v63 = vpop.xlane.xlu1 %875 }
 0x179   : > { %v4721_v48 = vsel %vm940_vm10, %v4054_v1, 0.0  ;;  %v4725_v6 = vsel %vm941_vm11, %v4054_v1, 0.0  ;;  %v906_v54 = vmax.f32 %v876_v63, 1e-20  ;;  %vm946_vm0 = vcmp.eq.f32.partialorder %v4467_v10, %v876_v63 }
 0x17a   : > { %vm947_vm1 = vcmp.eq.f32.partialorder %v4469_v11, %v876_v63  ;;  %v4732_v7 = vsel %vm946_vm0, 3e+38, %v4467_v10 }
 0x17b   : > { %v4056_v2 = vpop.eup %4055  ;;  %4059 = vrsqrt.f32 %v906_v54  ;;  %v4737_v28 = vsel %vm947_vm1, 3e+38, %v4469_v11 }
 0x17c   : > { %v4741_v31 = vsel %vm942_vm12, %v4056_v2, 0.0  ;;  %v4745_v14 = vsel %vm943_vm13, %v4056_v2, 0.0  ;;  %v1050_v16 = vmin.f32 %v4732_v7, %v4737_v28 }
 0x17d   : > { %v4058_v27 = vpop.eup %4057 }
 0x17e   : > { %v4751_v18 = vsel %vm944_vm14, %v4058_v27, 0.0  ;;  %v4755_v33 = vsel %vm945_vm15, %v4058_v27, 0.0  ;;  %1051 = vmin.xlane.f32.xlu1 %v1050_v16 }
 0x17f   : > { %6968 = vst [vmem:[#allocation2_spill] sm:$0xff] %v4755_v33 }
 0x182   : > { %v879_v58 = vpop.xlane.xlu0 %878 }
 0x183   : > { %v907_v36 = vmax.f32 %v879_v58, 1e-20  ;;  %vm948_vm2 = vcmp.eq.f32.partialorder %v4481_v55, %v879_v58  ;;  %vm949_vm3 = vcmp.eq.f32.partialorder %v4483_v23, %v879_v58 }
 0x184   : > { %v4762_v30 = vsel %vm948_vm2, 3e+38, %v4481_v55  ;;  %v4767_v0 = vsel %vm949_vm3, 3e+38, %v4483_v23 }
 0x185   : > { %6969 = vst [vmem:[#allocation3_spill] sm:$0xff] %v4762_v30  ;;  %6970 = vst [vmem:[#allocation4_spill] sm:$0xff] %v4767_v0  ;;  %v4060_v12 = vpop.eup %4059  ;;  %4061 = vrsqrt.f32 %v907_v36  ;;  %v1053_v26 = vmin.f32 %v4762_v30, %v4767_v0 }
 0x186   : > { %v4773_v17 = vsel %vm946_vm0, %v4060_v12, 0.0  ;;  %v4777_v59 = vsel %vm947_vm1, %v4060_v12, 0.0 }
 0x187   : > { %6971 = vst [vmem:[#allocation5_spill] sm:$0xff] %v4773_v17  ;;  %6972 = vst [vmem:[#allocation6_spill] sm:$0xff] %v4777_v59  ;;  %1054 = vmin.xlane.f32.xlu0 %v1053_v26 }
 0x18c   : > { %v882_v1 = vpop.xlane.xlu1 %881 }
 0x18d   : > { %v908_v54 = vmax.f32 %v882_v1, 1e-20  ;;  %vm950_vm4 = vcmp.eq.f32.partialorder %v4495_v20, %v882_v1  ;;  %vm951_vm5 = vcmp.eq.f32.partialorder %v4497_v38, %v882_v1 }
 0x18e   : > { %v4784_v2 = vsel %vm950_vm4, 3e+38, %v4495_v20  ;;  %v4789_v10 = vsel %vm951_vm5, 3e+38, %v4497_v38 }
 0x18f   : > { %6973 = vst [vmem:[#allocation7_spill] sm:$0xff] %v4784_v2  ;;  %6974 = vst [vmem:[#allocation8_spill] sm:$0xff] %v4789_v10  ;;  %v4062_v11 = vpop.eup %4061  ;;  %4063 = vrsqrt.f32 %v908_v54  ;;  %v1056_v63 = vmin.f32 %v4784_v2, %v4789_v10 }
 0x190   : > { %v4795_v16 = vsel %vm948_vm2, %v4062_v11, 0.0  ;;  %v4799_v27 = vsel %vm949_vm3, %v4062_v11, 0.0 }
 0x191   : > { %6975 = vst [vmem:[#allocation9_spill] sm:$0xff] %v4795_v16  ;;  %6976 = vst [vmem:[#allocation10_spill] sm:$0xff] %v4799_v27  ;;  %1057 = vmin.xlane.f32.xlu1 %v1056_v63 }
 0x193   : > { %v885_v36 = vpop.xlane.xlu0 %884 }
 0x194   : > { %v909_v12 = vmax.f32 %v885_v36, 1e-20  ;;  %vm952_vm6 = vcmp.eq.f32.partialorder %v4507_v61, %v885_v36  ;;  %vm953_vm7 = vcmp.eq.f32.partialorder %v4509_v46, %v885_v36 }
 0x195   : > { %v4806_v26 = vsel %vm952_vm6, 3e+38, %v4507_v61  ;;  %v4811_v55 = vsel %vm953_vm7, 3e+38, %v4509_v46 }
 0x196   : > { %6977 = vst [vmem:[#allocation11_spill] sm:$0xff] %v4806_v26  ;;  %6978 = vst [vmem:[#allocation12_spill] sm:$0xff] %v4811_v55  ;;  %4065 = vrsqrt.f32 %v909_v12  ;;  %v1059_v23 = vmin.f32 %v4806_v26, %v4811_v55 }
 0x198   : > { %1060 = vmin.xlane.f32.xlu0 %v1059_v23 }
 0x199   : > { %v4064_v58 = vpop.eup %4063 }
 0x19a   : > { %v4817_v54 = vsel %vm950_vm4, %v4064_v58, 0.0  ;;  %v4821_v11 = vsel %vm951_vm5, %v4064_v58, 0.0 }
 0x19b   : > { %6979 = vst [vmem:[#allocation13_spill] sm:$0xff] %v4817_v54  ;;  %6980 = vst [vmem:[#allocation14_spill] sm:$0xff] %v4821_v11 }
 0x19d   : > { %v888_v63 = vpop.xlane.xlu1 %887 }
 0x19e   : > { %v910_v27 = vmax.f32 %v888_v63, 1e-20  ;;  %vm954_vm8 = vcmp.eq.f32.partialorder %v4527_v34, %v888_v63  ;;  %vm955_vm9 = vcmp.eq.f32.partialorder %v4529_v35, %v888_v63 }
 0x19f   : > { %v4828_v12 = vsel %vm954_vm8, 3e+38, %v4527_v34  ;;  %v4833_v20 = vsel %vm955_vm9, 3e+38, %v4529_v35 }
 0x1a0   : > { %6981 = vst [vmem:[#allocation15_spill] sm:$0xff] %v4828_v12  ;;  %6982 = vst [vmem:[#allocation16_spill] sm:$0xff] %v4833_v20  ;;  %v4066_v23 = vpop.eup %4065  ;;  %4067 = vrsqrt.f32 %v910_v27  ;;  %v1062_v38 = vmin.f32 %v4828_v12, %v4833_v20 }
 0x1a1   : > { %v4839_v1 = vsel %vm952_vm6, %v4066_v23, 0.0  ;;  %v4843_v58 = vsel %vm953_vm7, %v4066_v23, 0.0 }
 0x1a2   : > { %6983 = vst [vmem:[#allocation17_spill] sm:$0xff] %v4839_v1  ;;  %6984 = vst [vmem:[#allocation18_spill] sm:$0xff] %v4843_v58  ;;  %1063 = vmin.xlane.f32.xlu1 %v1062_v38 }
 0x1a5   : > { %v891_v11 = vpop.xlane.xlu0 %890 }
 0x1a6   : > { %v911_v54 = vmax.f32 %v891_v11, 1e-20  ;;  %vm956_vm10 = vcmp.eq.f32.partialorder %v4535_v62, %v891_v11  ;;  %vm957_vm11 = vcmp.eq.f32.partialorder %v4537_v5, %v891_v11 }
 0x1a7   : > { %v4850_v27 = vsel %vm956_vm10, 3e+38, %v4535_v62  ;;  %v4855_v61 = vsel %vm957_vm11, 3e+38, %v4537_v5 }
 0x1a8   : > { %6985 = vst [vmem:[#allocation19_spill] sm:$0xff] %v4850_v27  ;;  %6986 = vst [vmem:[#allocation20_spill] sm:$0xff] %v4855_v61  ;;  %4069 = vrsqrt.f32 %v911_v54  ;;  %v1065_v46 = vmin.f32 %v4850_v27, %v4855_v61 }
 0x1aa   : > { %v4068_v36 = vpop.eup %4067  ;;  %1066 = vmin.xlane.f32.xlu0 %v1065_v46 }
 0x1ab   : > { %v4861_v23 = vsel %vm954_vm8, %v4068_v36, 0.0  ;;  %v4865_v38 = vsel %vm955_vm9, %v4068_v36, 0.0 }
 0x1ac   : > { %6987 = vst [vmem:[#allocation21_spill] sm:$0xff] %v4861_v23  ;;  %6988 = vst [vmem:[#allocation22_spill] sm:$0xff] %v4865_v38 }
 0x1af   : > { %v894_v58 = vpop.xlane.xlu1 %893 }
 0x1b0   : > { %v912_v1 = vmax.f32 %v894_v58, 1e-20  ;;  %vm958_vm12 = vcmp.eq.f32.partialorder %v4549_v37, %v894_v58  ;;  %vm959_vm13 = vcmp.eq.f32.partialorder %v4551_v32, %v894_v58 }
 0x1b1   : > { %v4872_v54 = vsel %vm958_vm12, 3e+38, %v4549_v37  ;;  %v4877_v34 = vsel %vm959_vm13, 3e+38, %v4551_v32  ;;  %v4918_v37 = vld [vmem:[%s4915_s6 + $0x80] sm:$0xff]  ;;  %v4921_v32 = vld [vmem:[%s4915_s6 + $0x88] sm:$0xff] }
 0x1b2   : > { %6989 = vst [vmem:[#allocation23_spill] sm:$0xff] %v4872_v54  ;;  %6990 = vst [vmem:[#allocation24_spill] sm:$0xff] %v4877_v34  ;;  %v4070_v46 = vpop.eup %4069  ;;  %4071 = vrsqrt.f32 %v912_v1  ;;  %v1068_v35 = vmin.f32 %v4872_v54, %v4877_v34  ;;  %v6738_v58 = vand.u32 4294901760, %v4918_v37 }
 0x1b3   : > { %v4883_v63 = vsel %vm956_vm10, %v4070_v46, 0.0  ;;  %v4887_v36 = vsel %vm957_vm11, %v4070_v46, 0.0 }
 0x1b4   : > { %6991 = vst [vmem:[#allocation25_spill] sm:$0xff] %v4883_v63  ;;  %6992 = vst [vmem:[#allocation26_spill] sm:$0xff] %v4887_v36  ;;  %1069 = vmin.xlane.f32.xlu1 %v1068_v35 }
 0x1b9   : > { %v897_v38 = vpop.xlane.xlu0 %896 }
 0x1ba   : > { %v913_v23 = vmax.f32 %v897_v38, 1e-20  ;;  %vm960_vm14 = vcmp.eq.f32.partialorder %v4561_v47, %v897_v38  ;;  %vm961_vm15 = vcmp.eq.f32.partialorder %v4563_v51, %v897_v38 }
 0x1bb   : > { %v4892_v1 = vsel %vm960_vm14, 3e+38, %v4561_v47  ;;  %v4895_v34 = vsel %vm961_vm15, 3e+38, %v4563_v51  ;;  %v4924_v51 = vld [vmem:[%s4915_s6] sm:$0xff] }
 0x1bc   : > { %6993 = vst [vmem:[#allocation27_spill] sm:$0xff] %v4892_v1  ;;  %6994 = vst [vmem:[#allocation28_spill] sm:$0xff] %v4895_v34  ;;  %v4072_v62 = vpop.eup %4071  ;;  %4073 = vrsqrt.f32 %v913_v23  ;;  %v1071_v5 = vmin.f32 %v4892_v1, %v4895_v34  ;;  %v4942_v34 = vld [vmem:[%s4915_s6 + $0x10] sm:$0xff]  ;;  %v4945_v1 = vld [vmem:[%s4915_s6 + $0x18] sm:$0xff]  ;;  %v4950_v23 = vsub.f32 %v4918_v37, %v6738_v58 }
 0x1bd   : > { %v4901_v11 = vsel %vm958_vm12, %v4072_v62, 0.0  ;;  %v4905_v46 = vsel %vm959_vm13, %v4072_v62, 0.0  ;;  %v4929_v62 = vld [vmem:[%s4915_s6 + $0x8] sm:$0xff] }
 0x1be   : > { %6995 = vst [vmem:[#allocation29_spill] sm:$0xff] %v4901_v11  ;;  %6996 = vst [vmem:[#allocation30_spill] sm:$0xff] %v4905_v46  ;;  %1072 = vmin.xlane.f32.xlu0 %v1071_v5  ;;  %v7000_v5 = vand.u32 4294901760, %v4921_v32  ;;  %v7004_v63 = vand.u32 4294901760, %v4929_v62  ;;  %v7013_v12 = vand.u32 4294901760, %v4950_v23 }
 0x1bf   : > { %6999 = vst [vmem:[#allocation33_spill] sm:$0xff] %v4950_v23 }
 0x1c0   : > { %v4955_v36 = vsub.f32 %v4921_v32, %v7000_v5  ;;  %v4966_v54 = vsub.f32 %v4929_v62, %v7004_v63  ;;  %v7010_v63 = vand.u32 4294901760, %v4942_v34  ;;  %v1847_v11 = vsub.f32 %v4950_v23, %v7013_v12 }
 0x1c2   : > { %7001 = vst [vmem:[#allocation34_spill] sm:$0xff] %v4955_v36  ;;  %7005 = vst [vmem:[#allocation36_spill] sm:$0xff] %v4966_v54  ;;  %v4985_v55 = vsub.f32 %v4942_v34, %v7010_v63  ;;  %v7014_v63 = vand.u32 4294901760, %v4955_v36  ;;  %v7016_v12 = vand.u32 4294901760, %v4966_v54 }
 0x1c4   : > { %7011 = vst [vmem:[#allocation39_spill] sm:$0xff] %v4985_v55  ;;  %v1854_v10 = vsub.f32 %v4955_v36, %v7014_v63 }
 0x1c6   : > { %v4074_v38 = vpop.eup %4073 }
 0x1c7   : > { %v4907_v47 = vsel %vm960_vm14, %v4074_v38, 0.0  ;;  %v4909_v35 = vsel %vm961_vm15, %v4074_v38, 0.0  ;;  %v4933_v38 = vld [vmem:[%s4915_s6 + $0x90] sm:$0xff] }
 0x1c8   : > { %6997 = vst [vmem:[#allocation31_spill] sm:$0xff] %v4907_v47  ;;  %6998 = vst [vmem:[#allocation32_spill] sm:$0xff] %v4909_v35  ;;  %v4936_v35 = vld [vmem:[%s4915_s6 + $0x98] sm:$0xff]  ;;  %v7002_v47 = vand.u32 4294901760, %v4924_v51  ;;  %v7006_v58 = vand.u32 4294901760, %v4933_v38 }
 0x1c9   : > { %v7008_v5 = vand.u32 4294901760, %v4936_v35 }
 0x1ca   : > { %v4960_v46 = vsub.f32 %v4924_v51, %v7002_v47  ;;  %v4971_v61 = vsub.f32 %v4933_v38, %v7006_v58  ;;  %v6755_v47 = vand.u32 4294901760, %v4945_v1 }
 0x1cb   : > { %v4976_v27 = vsub.f32 %v4936_v35, %v7008_v5  ;;  %v1848_v5 = vand.u32 4294901760, %v1847_v11 }
 0x1cc   : > { %7003 = vst [vmem:[#allocation35_spill] sm:$0xff] %v4960_v46  ;;  %7007 = vst [vmem:[#allocation37_spill] sm:$0xff] %v4971_v61  ;;  %v4993_v16 = vsub.f32 %v4945_v1, %v6755_v47  ;;  %v7015_v58 = vand.u32 4294901760, %v4960_v46  ;;  %v1742_v47 = vsub.f32 %v4966_v54, %v7016_v12  ;;  %v7019_v17 = vand.u32 4294901760, %v4971_v61 }
 0x1cd   : > { %7009 = vst [vmem:[#allocation38_spill] sm:$0xff] %v4976_v27  ;;  %v7020_v30 = vand.u32 4294901760, %v4976_v27 }
 0x1ce   : > { %7012 = vst [vmem:[#allocation40_spill] sm:$0xff] %v4993_v16  ;;  %v1735_v26 = vsub.f32 %v4960_v46, %v7015_v58  ;;  %v1855_v46 = vand.u32 4294901760, %v1854_v10  ;;  %v1743_v36 = vand.u32 4294901760, %v1742_v47  ;;  %v1861_v0 = vsub.f32 %v4971_v61, %v7019_v17  ;;  %v5049_v17 = vld [vmem:[%s4915_s6 + $0xa8] sm:$0xff] }
 0x1cf   : > { %v1868_v11 = vsub.f32 %v4976_v27, %v7020_v30  ;;  %v7021_v10 = vand.u32 4294901760, %v4985_v55  ;;  %v7022_v61 = vand.u32 4294901760, %v4918_v37 }
 0x1d0   : > { %v1736_v54 = vand.u32 4294901760, %v1735_v26  ;;  %v3806_v59 = vpack.c.bf16 %v1855_v46, %v1848_v5  ;;  %v5046_v46 = vld [vmem:[%s4915_s6 + $0xa0] sm:$0xff]  ;;  %v1862_v5 = vand.u32 4294901760, %v1861_v0 }
 0x1d1   : > { %v6777_v0 = vand.u32 4294901760, %v5046_v46 }
 0x1d2   : > { %v3808_v26 = vpack.c.bf16 %v1743_v36, %v1736_v54  ;;  %3807 = vmatprep.subr.bf16.mxu1 %v3806_v59 }
 0x1d4   : > { %3809 = vmatpush3.bf16.msra.mxu1 %v3808_v26 }
 0x1e0   : > { %v4995_v20 = vpop.xlane.xlu1 %1027 }
 0x1e1   : > { %v1074_v2 = vmax.f32 %v4995_v20, 1e-20  ;;  %vm1106_vm0 = vcmp.eq.f32.partialorder %v4572_v41, %v4995_v20  ;;  %vm1107_vm1 = vcmp.eq.f32.partialorder %v4577_v42, %v4995_v20 }
 0x1e2   : > { %v5019_v63 = vsel %vm1106_vm0, 3e+38, %v4572_v41  ;;  %v5025_v58 = vsel %vm1107_vm1, 3e+38, %v4577_v42 }
 0x1e3   : > { %7017 = vst [vmem:[#allocation41_spill] sm:$0xff] %v5019_v63  ;;  %7018 = vst [vmem:[#allocation42_spill] sm:$0xff] %v5025_v58  ;;  %4075 = vrsqrt.f32 %v1074_v2  ;;  %v1202_v12 = vmin.f32 %v5019_v63, %v5025_v58  ;;  %v1749_v2 = vsub.f32 %v4985_v55, %v7021_v10  ;;  %v6776_v10 = vand.u32 4294901760, %v4993_v16 }
 0x1e4   : > { %v5029_v23 = vpop.xlane.xlu1 %1033  ;;  %v7023_v58 = vand.u32 4294901760, %v4921_v32 }
 0x1e5   : > { %v1076_v33 = vmax.f32 %v5029_v23, 1e-20  ;;  %1203 = vmin.xlane.f32.xlu1 %v1202_v12  ;;  %vm1110_vm2 = vcmp.eq.f32.partialorder %v4586_v19, %v5029_v23  ;;  %vm1111_vm3 = vcmp.eq.f32.partialorder %v4591_v24, %v5029_v23  ;;  %v1869_v12 = vand.u32 4294901760, %v1868_v11 }
 0x1e6   : > { %v5055_v30 = vsel %vm1110_vm2, 3e+38, %v4586_v19  ;;  %v5061_v47 = vsel %vm1111_vm3, 3e+38, %v4591_v24  ;;  %v1750_v36 = vand.u32 4294901760, %v1749_v2  ;;  %v5072_v63 = vpack.c.bf16 %v7023_v58, %v7022_v61 }
 0x1e7   : > { %4077 = vrsqrt.f32 %v1076_v33  ;;  %v1208_v54 = vmin.f32 %v5055_v30, %v5061_v47  ;;  %v3810_v27 = vpack.c.bf16 %v1869_v12, %v1862_v5  ;;  %v6778_v33 = vand.u32 4294901760, %v5049_v17 }
 0x1e8   : > { %v5066_v55 = vpop.xlane.xlu0 %1030  ;;  %v1756_v37 = vsub.f32 %v4993_v16, %v6776_v10  ;;  %3775 = vmatprep.subr.bf16.mxu0 %v5072_v63  ;;  %v5100_v58 = vsub.f32 %v5046_v46, %v6777_v0  ;;  %v7028_v12 = vand.u32 4294901760, %v4929_v62 }
 0x1e9   : > { %v1075_v59 = vmax.f32 %v5066_v55, 1e-20  ;;  %1209 = vmin.xlane.f32.xlu1 %v1208_v54  ;;  %vm1108_vm4 = vcmp.eq.f32.partialorder %v4602_v39, %v5066_v55  ;;  %vm1109_vm5 = vcmp.eq.f32.partialorder %v4607_v40, %v5066_v55  ;;  %3811 = vmatprep.subr.bf16.mxu1 %v3810_v27  ;;  %v5105_v11 = vsub.f32 %v5049_v17, %v6778_v33 }
 0x1ea   : > { %v5088_v61 = vsel %vm1108_vm4, 3e+38, %v4602_v39  ;;  %v5094_v32 = vsel %vm1109_vm5, 3e+38, %v4607_v40  ;;  %v1757_v5 = vand.u32 4294901760, %v1756_v37  ;;  %v7027_v27 = vand.u32 4294901760, %v4924_v51 }
 0x1eb   : > { %7024 = vst [vmem:[#allocation43_spill] sm:$0xff] %v5088_v61  ;;  %7025 = vst [vmem:[#allocation44_spill] sm:$0xff] %v5094_v32  ;;  %4079 = vrsqrt.f32 %v1075_v59  ;;  %v5107_v2 = vpop.xlane.xlu1 %1039  ;;  %v1205_v26 = vmin.f32 %v5088_v61, %v5094_v32  ;;  %v5126_v37 = vld [vmem:[%s4915_s6 + $0x20] sm:$0xff]  ;;  %v5159_v32 = vld [vmem:[%s4915_s6 + $0x28] sm:$0xff] }
 0x1ec   : > { %7026 = vst [vmem:[#allocation45_spill] sm:$0xff] %v5105_v11  ;;  %v5115_v54 = vpack.c.bf16 %v7028_v12, %v7027_v27  ;;  %v1078_v10 = vmax.f32 %v5107_v2, 1e-20  ;;  %v5118_v0 = vpop.xlane.xlu0 %1036  ;;  %vm1114_vm6 = vcmp.eq.f32.partialorder %v4626_v29, %v5107_v2  ;;  %vm1115_vm7 = vcmp.eq.f32.partialorder %v4631_v3, %v5107_v2  ;;  %v5162_v61 = vld [vmem:[%s4915_s6 + $0xb0] sm:$0xff]  ;;  %v5327_v2 = vld [vmem:[%s4915_s6 + $0x48] sm:$0xff] }
 0x1ed   : > { %v4076_v51 = vpop.eup %4075  ;;  %v1077_v62 = vmax.f32 %v5118_v0, 1e-20  ;;  %1206 = vmin.xlane.f32.xlu0 %v1205_v26  ;;  %v5133_v27 = vsel %vm1114_vm6, 3e+38, %v4626_v29  ;;  %v5139_v12 = vsel %vm1115_vm7, 3e+38, %v4631_v3  ;;  %vm1112_vm8 = vcmp.eq.f32.partialorder %v4614_v56, %v5118_v0 }
 0x1ee   : > { %7029 = vst [vmem:[#allocation46_spill] sm:$0xff] %v5115_v54  ;;  %7030 = vst [vmem:[#allocation47_spill] sm:$0xff] %v5133_v27  ;;  %3777 = vmatpush3.bf16.msra.mxu0 %v5115_v54  ;;  %v5148_v26 = vsel %vm1106_vm0, %v4076_v51, %v4635_v43  ;;  %v5154_v33 = vsel %vm1107_vm1, %v4076_v51, %v4639_v44  ;;  %4081 = vrsqrt.f32 %v1078_v10  ;;  %v5170_v41 = vsel %vm1112_vm8, 3e+38, %v4614_v56  ;;  %v5197_v10 = vld [vmem:[%s4915_s6 + $0x30] sm:$0xff]  ;;  %v5200_v51 = vld [vmem:[%s4915_s6 + $0x38] sm:$0xff] }
 0x1ef   : > { %7031 = vst [vmem:[#allocation48_spill] sm:$0xff] %v5139_v12  ;;  %v1214_v59 = vmin.f32 %v5133_v27, %v5139_v12  ;;  %4083 = vrsqrt.f32 %v1077_v62  ;;  %vm1113_vm9 = vcmp.eq.f32.partialorder %v4621_v60, %v5118_v0  ;;  %7032 = vst [vmem:[#allocation49_spill] sm:$0xff] %v5170_v41  ;;  %v3812_v42 = vpack.c.bf16 %v1757_v5, %v1750_v36  ;;  %v5184_v62 = vld [vmem:[%s4915_s6 + $0xb8] sm:$0xff] }
 0x1f0   : > { %v5176_v43 = vsel %vm1113_vm9, 3e+38, %v4621_v60  ;;  %v7034_v44 = vand.u32 4294901760, %v5100_v58  ;;  %v1410_v5 = vand.u32 4294901760, %v5159_v32  ;;  %v7036_v27 = vand.u32 4294901760, %v4936_v35 }
 0x1f1   : > { %1215 = vmin.xlane.f32.xlu1 %v1214_v59  ;;  %7033 = vst [vmem:[#allocation50_spill] sm:$0xff] %v5176_v43  ;;  %v4078_v12 = vpop.eup %4077  ;;  %v1211_v36 = vmin.f32 %v5170_v41, %v5176_v43  ;;  %3813 = vmatpush3.bf16.msra.mxu1 %v3812_v42  ;;  %v7035_v59 = vand.u32 4294901760, %v4933_v38 }
 0x1f2   : > { %v1875_v20 = vsub.f32 %v5100_v58, %v7034_v44  ;;  %v5206_v43 = vsel %vm1110_vm2, %v4078_v12, %v4647_v52  ;;  %v5212_v38 = vsel %vm1111_vm3, %v4078_v12, %v4651_v53  ;;  %v5223_v19 = vsub.f32 %v5159_v32, %v1410_v5 }
 0x1f3   : > { %v5193_v16 = vpack.c.bf16 %v7036_v27, %v7035_v59  ;;  %v7037_v27 = vand.u32 4294901760, %v5105_v11  ;;  %1212 = vmin.xlane.f32.xlu0 %v1211_v36  ;;  %v7038_v59 = vand.u32 4294901760, %v5126_v37  ;;  %v7041_v52 = vand.u32 4294901760, %v5162_v61 }
 0x1f4   : > { %v1876_v35 = vand.u32 4294901760, %v1875_v20  ;;  %7040 = vst [vmem:[#allocation52_spill] sm:$0xff] %v5223_v19  ;;  %v7043_v12 = vand.u32 4294901760, %v4942_v34  ;;  %v7044_v20 = vand.u32 4294901760, %v4945_v1  ;;  %v6793_v32 = vand.u32 4294901760, %v5200_v51  ;;  %v5249_v34 = vld [vmem:[%s4915_s6 + $0xc0] sm:$0xff] }
 0x1f5   : > { %v1882_v42 = vsub.f32 %v5105_v11, %v7037_v27  ;;  %v5220_v44 = vsub.f32 %v5126_v37, %v7038_v59  ;;  %3779 = vmatprep.subr.bf16.mxu0 %v5193_v16  ;;  %v5230_v53 = vsub.f32 %v5162_v61, %v7041_v52  ;;  %v6791_v27 = vand.u32 4294901760, %v5197_v10  ;;  %v4080_v59 = vpop.eup %4079 }
 0x1f6   : > { %v5236_v36 = vpack.c.bf16 %v7044_v20, %v7043_v12  ;;  %v6789_v24 = vand.u32 4294901760, %v5223_v19  ;;  %v7046_v52 = vand.u32 4294901760, %v5184_v62  ;;  %v5255_v1 = vsel %vm1108_vm4, %v4080_v59, %v4655_v8 }
 0x1f7   : > { %7039 = vst [vmem:[#allocation51_spill] sm:$0xff] %v5220_v44  ;;  %7042 = vst [vmem:[#allocation53_spill] sm:$0xff] %v5230_v53  ;;  %v1883_v23 = vand.u32 4294901760, %v1882_v42  ;;  %v6790_v41 = vand.u32 4294901760, %v5220_v44  ;;  %v6792_v11 = vand.u32 4294901760, %v5230_v53  ;;  %v5261_v12 = vsel %vm1109_vm5, %v4080_v59, %v4659_v4 }
 0x1f8   : > { %7045 = vst [vmem:[#allocation54_spill] sm:$0xff] %v5236_v36  ;;  %v5246_v42 = vsub.f32 %v5184_v62, %v7046_v52  ;;  %3781 = vmatpush3.bf16.msra.mxu0 %v5236_v36  ;;  %v5267_v52 = vsub.f32 %v5197_v10, %v6791_v27  ;;  %v1770_v8 = vsub.f32 %v5223_v19, %v6789_v24  ;;  %v4082_v55 = vpop.eup %4081  ;;  %v7050_v59 = vand.u32 4294901760, %v5046_v46  ;;  %v5292_v27 = vld [vmem:[%s4915_s6 + $0xc8] sm:$0xff] }
 0x1f9   : > { %v3814_v20 = vpack.c.bf16 %v1883_v23, %v1876_v35  ;;  %v1763_v39 = vsub.f32 %v5220_v44, %v6790_v41  ;;  %v1889_v40 = vsub.f32 %v5230_v53, %v6792_v11  ;;  %v5283_v23 = vsub.f32 %v5200_v51, %v6793_v32  ;;  %v4084_v4 = vpop.eup %4083 }
 0x1fa   : > { %7047 = vst [vmem:[#allocation55_spill] sm:$0xff] %v5246_v42  ;;  %7048 = vst [vmem:[#allocation56_spill] sm:$0xff] %v5267_v52  ;;  %v6795_v35 = vand.u32 4294901760, %v5267_v52  ;;  %v7051_v24 = vand.u32 4294901760, %v5049_v17  ;;  %v6797_v11 = vand.u32 4294901760, %v5249_v34  ;;  %v5305_v46 = vsel %vm1115_vm7, %v4082_v55, %v4675_v13 }
 0x1fb   : > { %3815 = vmatprep.subr.bf16.mxu1 %v3814_v20  ;;  %7049 = vst [vmem:[#allocation57_spill] sm:$0xff] %v5283_v23  ;;  %v5299_v20 = vsel %vm1114_vm6, %v4082_v55, %v4671_v15  ;;  %v1764_v17 = vand.u32 4294901760, %v1763_v39  ;;  %v5314_v32 = vsel %vm1112_vm8, %v4084_v4, %v4663_v9  ;;  %v5320_v29 = vsel %vm1113_vm9, %v4084_v4, %v4667_v45 }
 0x1fc   : > { %v5289_v41 = vpack.c.bf16 %v7051_v24, %v7050_v59  ;;  %v1771_v24 = vand.u32 4294901760, %v1770_v8  ;;  %v5308_v59 = vld [vmem:[%s4915_s6 + $0x40] sm:$0xff]  ;;  %v1890_v15 = vand.u32 4294901760, %v1889_v40  ;;  %v7052_v3 = vand.u32 4294901760, %v5246_v42 }
 0x1fd   : > { %v1777_v56 = vsub.f32 %v5267_v52, %v6795_v35  ;;  %v6794_v9 = vand.u32 4294901760, %v5283_v23  ;;  %v6796_v60 = vand.u32 4294901760, %v5292_v27  ;;  %v5337_v0 = vsub.f32 %v5249_v34, %v6797_v11  ;;  %v5344_v55 = vpop.xlane.xlu0 %1042  ;;  %v5458_v52 = vld [vmem:[%s4915_s6 + $0xe0] sm:$0xff] }
 0x1fe   : > { %v1896_v13 = vsub.f32 %v5246_v42, %v7052_v3  ;;  %3783 = vmatprep.subr.bf16.mxu0 %v5289_v41  ;;  %v3816_v39 = vpack.c.bf16 %v1771_v24, %v1764_v17  ;;  %v7054_v8 = vand.u32 4294901760, %v5126_v37  ;;  %v6799_v4 = vand.u32 4294901760, %v5308_v59 }
 0x1ff   : > { %7053 = vst [vmem:[#allocation58_spill] sm:$0xff] %v5337_v0  ;;  %v1778_v17 = vand.u32 4294901760, %v1777_v56  ;;  %v1784_v24 = vsub.f32 %v5283_v23, %v6794_v9  ;;  %v5352_v3 = vsub.f32 %v5292_v27, %v6796_v60  ;;  %v1079_v37 = vmax.f32 %v5344_v55, 1e-20 }
 0x200   : > { %v1897_v45 = vand.u32 4294901760, %v1896_v13  ;;  %v5341_v40 = vpack.c.bf16 %v1410_v5, %v7054_v8  ;;  %3817 = vmatpush3.bf16.msra.mxu1 %v3816_v39  ;;  %v6801_v13 = vand.u32 4294901760, %v5327_v2  ;;  %vm1116_vm10 = vcmp.eq.f32.partialorder %v4682_v21, %v5344_v55 }
 0x201   : > { %7055 = vst [vmem:[#allocation59_spill] sm:$0xff] %v5352_v3  ;;  %vm1117_vm11 = vcmp.eq.f32.partialorder %v4687_v22, %v5344_v55  ;;  %v5365_v39 = vsel %vm1116_vm10, 3e+38, %v4682_v21  ;;  %v1785_v8 = vand.u32 4294901760, %v1784_v24  ;;  %v6800_v9 = vand.u32 4294901760, %v5337_v0  ;;  %v5382_v60 = vpop.xlane.xlu1 %1045 }
 0x202   : > { %v3818_v5 = vpack.c.bf16 %v1897_v45, %v1890_v15  ;;  %3785 = vmatpush3.bf16.msra.mxu0 %v5341_v40  ;;  %7056 = vst [vmem:[#allocation60_spill] sm:$0xff] %v5365_v39  ;;  %v5371_v56 = vsel %vm1117_vm11, 3e+38, %v4687_v22  ;;  %4085 = vrsqrt.f32 %v1079_v37  ;;  %v5380_v35 = vsub.f32 %v5308_v59, %v6799_v4 }
 0x203   : > { %7057 = vst [vmem:[#allocation61_spill] sm:$0xff] %v5371_v56  ;;  %v1217_v15 = vmin.f32 %v5365_v39, %v5371_v56  ;;  %v3820_v11 = vpack.c.bf16 %v1785_v8, %v1778_v17  ;;  %v1903_v24 = vsub.f32 %v5337_v0, %v6800_v9  ;;  %v5390_v37 = vsub.f32 %v5327_v2, %v6801_v13  ;;  %v5399_v17 = vpop.xlane.xlu0 %1048  ;;  %v5438_v13 = vld [vmem:[%s4915_s6 + $0xd8] sm:$0xff]  ;;  %v5441_v39 = vld [vmem:[%s4915_s6 + $0x50] sm:$0xff] }
 0x204   : > { %3819 = vmatprep.subr.bf16.mxu1 %v3818_v5  ;;  %7058 = vst [vmem:[#allocation62_spill] sm:$0xff] %v5380_v35  ;;  %v7060_v5 = vand.u32 4294901760, %v5162_v61  ;;  %v7061_v45 = vand.u32 4294901760, %v5184_v62  ;;  %v1080_v4 = vmax.f32 %v5382_v60, 1e-20  ;;  %vm1118_vm12 = vcmp.eq.f32.partialorder %v4696_v25, %v5382_v60  ;;  %v5409_v62 = vld [vmem:[%s4915_s6 + $0xd0] sm:$0xff] }
 0x205   : > { %7059 = vst [vmem:[#allocation63_spill] sm:$0xff] %v5390_v37  ;;  %1218 = vmin.xlane.f32.xlu0 %v1217_v15  ;;  %vm1119_vm13 = vcmp.eq.f32.partialorder %v4701_v57, %v5382_v60  ;;  %v7063_v8 = vand.u32 4294901760, %v5352_v3  ;;  %v5416_v15 = vsel %vm1118_vm12, 3e+38, %v4696_v25  ;;  %vm1120_vm14 = vcmp.eq.f32.partialorder %v4710_v49, %v5399_v17  ;;  %3821 = vmatpush3.bf16.msra.mxu1 %v3820_v11  ;;  %v7085_v25 = vld [vmem:[#allocation2_spill] sm:$0xff] }
 0x206   : > { %v5396_v56 = vpack.c.bf16 %v7061_v45, %v7060_v5  ;;  %v1081_v45 = vmax.f32 %v5399_v17, 1e-20  ;;  %7064 = vst [vmem:[#allocation65_spill] sm:$0xff] %v5416_v15  ;;  %v5422_v5 = vsel %vm1119_vm13, 3e+38, %v4701_v57  ;;  %4087 = vrsqrt.f32 %v1080_v4 }
 0x207   : > { %v1910_v61 = vsub.f32 %v5352_v3, %v7063_v8  ;;  %7065 = vst [vmem:[#allocation66_spill] sm:$0xff] %v5422_v5  ;;  %v1220_v8 = vmin.f32 %v5416_v15, %v5422_v5  ;;  %vm1121_vm15 = vcmp.eq.f32.partialorder %v4715_v50, %v5399_v17  ;;  %v5435_v9 = vsel %vm1120_vm14, 3e+38, %v4710_v49  ;;  %v5450_v15 = vld [vmem:[%s4915_s6 + $0x58] sm:$0xff] }
 0x208   : > { %7062 = vst [vmem:[#allocation64_spill] sm:$0xff] %v5396_v56  ;;  %3787 = vmatprep.subr.bf16.mxu0 %v5396_v56  ;;  %7066 = vst [vmem:[#allocation67_spill] sm:$0xff] %v5435_v9  ;;  %4089 = vrsqrt.f32 %v1081_v45  ;;  %v5447_v11 = vsel %vm1121_vm15, 3e+38, %v4715_v50  ;;  %v1904_v4 = vand.u32 4294901760, %v1903_v24  ;;  %v6822_v0 = vand.u32 4294901760, %v5380_v35 }
 0x209   : > { %7067 = vst [vmem:[#allocation68_spill] sm:$0xff] %v5447_v11  ;;  %v1911_v5 = vand.u32 4294901760, %v1910_v61  ;;  %1221 = vmin.xlane.f32.xlu1 %v1220_v8  ;;  %v1223_v3 = vmin.f32 %v5435_v9, %v5447_v11  ;;  %v1476_v53 = vand.u32 4294901760, %v5438_v13  ;;  %v7068_v24 = vand.u32 4294901760, %v5197_v10 }
 0x20a   : > { %v7069_v61 = vand.u32 4294901760, %v5200_v51  ;;  %v6827_v8 = vand.u32 4294901760, %v5441_v39  ;;  %v1791_v23 = vsub.f32 %v5380_v35, %v6822_v0  ;;  %v7071_v45 = vand.u32 4294901760, %v5390_v37 }
 0x20b   : > { %v3822_v42 = vpack.c.bf16 %v1911_v5, %v1904_v4  ;;  %1224 = vmin.xlane.f32.xlu0 %v1223_v3  ;;  %v7072_v5 = vand.u32 4294901760, %v5409_v62  ;;  %v5481_v51 = vsub.f32 %v5438_v13, %v1476_v53  ;;  %v7078_v9 = vand.u32 4294901760, %v5450_v15 }
 0x20c   : > { %v5465_v19 = vpack.c.bf16 %v7069_v61, %v7068_v24  ;;  %v1798_v11 = vsub.f32 %v5390_v37, %v7071_v45  ;;  %v5487_v3 = vsub.f32 %v5441_v39, %v6827_v8  ;;  %v7075_v45 = vand.u32 4294901760, %v5249_v34  ;;  %v4086_v0 = vpop.eup %4085  ;;  %v5549_v8 = vld [vmem:[%s4915_s6 + $0xe8] sm:$0xff] }
 0x20d   : > { %v5477_v4 = vsub.f32 %v5409_v62, %v7072_v5  ;;  %3823 = vmatprep.subr.bf16.mxu1 %v3822_v42  ;;  %7073 = vst [vmem:[#allocation70_spill] sm:$0xff] %v5481_v51  ;;  %v7076_v24 = vand.u32 4294901760, %v5292_v27  ;;  %v1792_v42 = vand.u32 4294901760, %v1791_v23  ;;  %v5500_v37 = vsub.f32 %v5450_v15, %v7078_v9  ;;  %v5514_v23 = vpop.xlane.xlu1 %1051  ;;  %v5564_v5 = vld [vmem:[%s4915_s6 + $0x60] sm:$0xff] }
 0x20e   : > { %7070 = vst [vmem:[#allocation69_spill] sm:$0xff] %v5465_v19  ;;  %3789 = vmatpush3.bf16.msra.mxu0 %v5465_v19  ;;  %7074 = vst [vmem:[#allocation71_spill] sm:$0xff] %v5487_v3  ;;  %v1799_v10 = vand.u32 4294901760, %v1798_v11  ;;  %v5506_v34 = vsel %vm1116_vm10, %v4086_v0, %v4721_v48  ;;  %v5512_v27 = vsel %vm1117_vm11, %v4086_v0, %v4725_v6  ;;  %v6829_v11 = vand.u32 4294901760, %v5481_v51 }
 0x20f   : > { %v5493_v61 = vpack.c.bf16 %v7076_v24, %v7075_v45  ;;  %v6828_v13 = vand.u32 4294901760, %v5477_v4  ;;  %7079 = vst [vmem:[#allocation73_spill] sm:$0xff] %v5500_v37  ;;  %v6830_v45 = vand.u32 4294901760, %v5487_v3  ;;  %v1082_v9 = vmax.f32 %v5514_v23, 1e-20 }
 0x210   : > { %vm1122_vm0 = vcmp.eq.f32.partialorder %v4732_v7, %v5514_v23  ;;  %vm1123_vm1 = vcmp.eq.f32.partialorder %v4737_v28, %v5514_v23  ;;  %v3824_v21 = vpack.c.bf16 %v1799_v10, %v1792_v42  ;;  %v1924_v0 = vsub.f32 %v5481_v51, %v6829_v11  ;;  %v4088_v55 = vpop.eup %4087  ;;  %v5567_v42 = vld [vmem:[%s4915_s6 + $0x68] sm:$0xff] }
 0x211   : > { %7077 = vst [vmem:[#allocation72_spill] sm:$0xff] %v5493_v61  ;;  %3791 = vmatprep.subr.bf16.mxu0 %v5493_v61  ;;  %v5528_v22 = vsel %vm1122_vm0, 3e+38, %v4732_v7  ;;  %v5534_v48 = vsel %vm1123_vm1, 3e+38, %v4737_v28  ;;  %v1917_v6 = vsub.f32 %v5477_v4, %v6828_v13  ;;  %4091 = vrsqrt.f32 %v1082_v9 }
 0x212   : > { %7080 = vst [vmem:[#allocation74_spill] sm:$0xff] %v5528_v22  ;;  %7081 = vst [vmem:[#allocation75_spill] sm:$0xff] %v5534_v48  ;;  %v1226_v10 = vmin.f32 %v5528_v22, %v5534_v48  ;;  %3825 = vmatpush3.bf16.msra.mxu1 %v3824_v21  ;;  %v1805_v24 = vsub.f32 %v5487_v3, %v6830_v45  ;;  %v4090_v13 = vpop.eup %4089  ;;  %v5555_v9 = vsel %vm1118_vm12, %v4088_v55, %v4741_v31 }
 0x213   : > { %7082 = vst [vmem:[#allocation76_spill] sm:$0xff] %v5555_v9  ;;  %v5561_v21 = vsel %vm1119_vm13, %v4088_v55, %v4745_v14  ;;  %v1918_v11 = vand.u32 4294901760, %v1917_v6  ;;  %v1925_v45 = vand.u32 4294901760, %v1924_v0  ;;  %v5573_v48 = vsel %vm1120_vm14, %v4090_v13, %v4751_v18  ;;  %v5585_v6 = vld [vmem:[%s4915_s6 + $0xf0] sm:$0xff]  ;;  %v5588_v0 = vld [vmem:[%s4915_s6 + $0xf8] sm:$0xff] }
 0x214   : > { %7083 = vst [vmem:[#allocation77_spill] sm:$0xff] %v5561_v21  ;;  %7084 = vst [vmem:[#allocation78_spill] sm:$0xff] %v5573_v48  ;;  %v5579_v31 = vsel %vm1121_vm15, %v4090_v13, %v7085_v25  ;;  %1227 = vmin.xlane.f32.xlu1 %v1226_v10  ;;  %v1806_v57 = vand.u32 4294901760, %v1805_v24  ;;  %v7087_v14 = vand.u32 4294901760, %v5500_v37  ;;  %v1482_v49 = vand.u32 4294901760, %v5549_v8 }
 0x215   : > { %7086 = vst [vmem:[#allocation2_spill] sm:$0xff] %v5579_v31  ;;  %v3826_v55 = vpack.c.bf16 %v1925_v45, %v1918_v11  ;;  %v7088_v18 = vand.u32 4294901760, %v5458_v52  ;;  %v7090_v50 = vand.u32 4294901760, %v5308_v59  ;;  %v7091_v17 = vand.u32 4294901760, %v5327_v2 }
 0x216   : > { %v1812_v60 = vsub.f32 %v5500_v37, %v7087_v14  ;;  %v1431_v24 = vand.u32 4294901760, %v5564_v5  ;;  %v1434_v25 = vand.u32 4294901760, %v5567_v42  ;;  %v7092_v11 = vand.u32 4294901760, %v5409_v62  ;;  %v7100_v14 = vld [vmem:[#allocation3_spill] sm:$0xff] }
 0x217   : > { %v5594_v22 = vsub.f32 %v5458_v52, %v7088_v18  ;;  %v5600_v13 = vpack.c.bf16 %v7091_v17, %v7090_v50  ;;  %3827 = vmatprep.subr.bf16.mxu1 %v3826_v55  ;;  %v5610_v18 = vsub.f32 %v5549_v8, %v1482_v49  ;;  %v1485_v59 = vand.u32 4294901760, %v5585_v6 }
 0x218   : > { %v1813_v10 = vand.u32 4294901760, %v1812_v60  ;;  %v5606_v45 = vpack.c.bf16 %v1476_v53, %v7092_v11  ;;  %v1488_v2 = vand.u32 4294901760, %v5588_v0  ;;  %v5615_v60 = vpop.xlane.xlu0 %1054  ;;  %v5618_v62 = vsub.f32 %v5564_v5, %v1431_v24 }
 0x219   : > { %7089 = vst [vmem:[#allocation79_spill] sm:$0xff] %v5594_v22  ;;  %7094 = vst [vmem:[#allocation81_spill] sm:$0xff] %v5610_v18  ;;  %3793 = vmatpush3.bf16.msra.mxu0 %v5600_v13  ;;  %v5621_v53 = vsub.f32 %v5567_v42, %v1434_v25  ;;  %v7097_v8 = vand.u32 4294901760, %v5441_v39  ;;  %v7098_v55 = vand.u32 4294901760, %v5450_v15  ;;  %v1083_v11 = vmax.f32 %v5615_v60, 1e-20 }
 0x21a   : > { %7093 = vst [vmem:[#allocation80_spill] sm:$0xff] %v5606_v45  ;;  %v3828_v50 = vpack.c.bf16 %v1813_v10, %v1806_v57  ;;  %7095 = vst [vmem:[#allocation82_spill] sm:$0xff] %v5618_v62  ;;  %3795 = vmatprep.subr.bf16.mxu0 %v5606_v45  ;;  %vm1124_vm2 = vcmp.eq.f32.partialorder %v7100_v14, %v5615_v60  ;;  %v7101_v57 = vld [vmem:[#allocation4_spill] sm:$0xff]  ;;  %v7102_v5 = vand.u32 4294901760, %v5594_v22  ;;  %v7109_v28 = vand.u32 4294901760, %v5458_v52 }
 0x21b   : > { %7096 = vst [vmem:[#allocation83_spill] sm:$0xff] %v5621_v53  ;;  %v5628_v17 = vpack.c.bf16 %v7098_v55, %v7097_v8  ;;  %vm1125_vm3 = vcmp.eq.f32.partialorder %v7101_v57, %v5615_v60  ;;  %v281_v10 = vld [vmem:[%s4915_s6 + $0x70] sm:$0xff]  ;;  %v5643_v39 = vsel %vm1124_vm2, 3e+38, %v7100_v14  ;;  %v6837_v8 = vand.u32 4294901760, %v5610_v18  ;;  %v4092_v21 = vpop.eup %4091 }
 0x21c   : > { %v1931_v42 = vsub.f32 %v5594_v22, %v7102_v5  ;;  %7103 = vst [vmem:[#allocation3_spill] sm:$0xff] %v5643_v39  ;;  %v5649_v15 = vsel %vm1125_vm3, 3e+38, %v7101_v57  ;;  %3829 = vmatpush3.bf16.msra.mxu1 %v3828_v50  ;;  %v6838_v55 = vand.u32 4294901760, %v5618_v62  ;;  %4093 = vrsqrt.f32 %v1083_v11 }
 0x21d   : > { %7099 = vst [vmem:[#allocation84_spill] sm:$0xff] %v5628_v17  ;;  %7104 = vst [vmem:[#allocation4_spill] sm:$0xff] %v5649_v15  ;;  %v1229_v5 = vmin.f32 %v5643_v39, %v5649_v15  ;;  %3797 = vmatpush3.bf16.msra.mxu0 %v5628_v17  ;;  %v1938_v9 = vsub.f32 %v5610_v18, %v6837_v8  ;;  %v5664_v22 = vsub.f32 %v5585_v6, %v1485_v59  ;;  %v7105_v15 = vld [vmem:[#allocation5_spill] sm:$0xff]  ;;  %v7107_v39 = vld [vmem:[#allocation6_spill] sm:$0xff] }
 0x21e   : > { %v1932_v48 = vand.u32 4294901760, %v1931_v42  ;;  %v1819_v50 = vsub.f32 %v5618_v62, %v6838_v55  ;;  %v5667_v11 = vsub.f32 %v5588_v0, %v1488_v2  ;;  %v282_v42 = vld [vmem:[%s4915_s6 + $0x78] sm:$0xff]  ;;  %v5674_v31 = vsel %vm1122_vm0, %v4092_v21, %v7105_v15 }
 0x21f   : > { %7106 = vst [vmem:[#allocation5_spill] sm:$0xff] %v5674_v31  ;;  %v5680_v8 = vsel %vm1123_vm1, %v4092_v21, %v7107_v39  ;;  %1230 = vmin.xlane.f32.xlu0 %v1229_v5  ;;  %v7108_v6 = vand.u32 4294901760, %v5621_v53  ;;  %v1437_v0 = vand.u32 4294901760, %v281_v10  ;;  %v1939_v62 = vand.u32 4294901760, %v1938_v9 }
 0x220   : > { %v1820_v18 = vand.u32 4294901760, %v1819_v50  ;;  %v6849_v37 = vand.u32 4294901760, %v5664_v22  ;;  %v6848_v7 = vand.u32 4294901760, %v5667_v11  ;;  %v1440_v31 = vand.u32 4294901760, %v282_v42 }
 0x221   : > { %v1826_v55 = vsub.f32 %v5621_v53, %v7108_v6  ;;  %v5687_v3 = vsub.f32 %v281_v10, %v1437_v0  ;;  %v5691_v23 = vpack.c.bf16 %v1482_v49, %v7109_v28  ;;  %v3830_v21 = vpack.c.bf16 %v1939_v62, %v1932_v48  ;;  %v1058_v48 = vpop.xlane.xlu1 %1057 }
 0x222   : > { %v1945_v39 = vsub.f32 %v5664_v22, %v6849_v37  ;;  %v1952_v9 = vsub.f32 %v5667_v11, %v6848_v7  ;;  %v5699_v5 = vpack.c.bf16 %v1434_v25, %v1431_v24  ;;  %v5702_v10 = vsub.f32 %v282_v42, %v1440_v31  ;;  %v7112_v24 = vld [vmem:[#allocation7_spill] sm:$0xff]  ;;  %v7113_v25 = vld [vmem:[#allocation8_spill] sm:$0xff] }
 0x223   : > { %v1827_v15 = vand.u32 4294901760, %v1826_v55  ;;  %7110 = vst [vmem:[#allocation6_spill] sm:$0xff] %v5691_v23  ;;  %v6847_v55 = vand.u32 4294901760, %v5687_v3  ;;  %3799 = vmatprep.subr.bf16.mxu0 %v5691_v23  ;;  %v5705_v52 = vpack.c.bf16 %v1488_v2, %v1485_v59  ;;  %3831 = vmatprep.subr.bf16.mxu1 %v3830_v21  ;;  %v5708_v6 = vpack.c.bf16 %v1440_v31, %v1437_v0  ;;  %v7115_v21 = vld [vmem:[#allocation9_spill] sm:$0xff]  ;;  %v7118_v7 = vld [vmem:[#allocation12_spill] sm:$0xff] }
 0x224   : > { %7111 = vst [vmem:[#allocation85_spill] sm:$0xff] %v5699_v5  ;;  %v1946_v49 = vand.u32 4294901760, %v1945_v39  ;;  %v1953_v62 = vand.u32 4294901760, %v1952_v9  ;;  %3801 = vmatpush3.bf16.msra.mxu0 %v5699_v5  ;;  %v1084_v28 = vmax.f32 %v1058_v48, 1e-20  ;;  %vm1126_vm4 = vcmp.eq.f32.partialorder %v7112_v24, %v1058_v48  ;;  %v7116_v9 = vld [vmem:[#allocation10_spill] sm:$0xff] }
 0x225   : > { %v3832_v50 = vpack.c.bf16 %v1827_v15, %v1820_v18  ;;  %vm1127_vm5 = vcmp.eq.f32.partialorder %v7113_v25, %v1058_v48  ;;  %v1833_v18 = vsub.f32 %v5687_v3, %v6847_v55  ;;  %3803 = vmatprep.subr.bf16.mxu0 %v5705_v52  ;;  %v5719_v59 = vsel %vm1126_vm4, 3e+38, %v7112_v24  ;;  %v1061_v55 = vpop.xlane.xlu0 %1060 }
 0x226   : > { %v5724_v31 = vsel %vm1127_vm5, 3e+38, %v7113_v25  ;;  %v3834_v2 = vpack.c.bf16 %v1953_v62, %v1946_v49  ;;  %v6850_v42 = vand.u32 4294901760, %v5702_v10  ;;  %v4094_v0 = vpop.eup %4093  ;;  %4095 = vrsqrt.f32 %v1084_v28  ;;  %v7129_v25 = vld [vmem:[#allocation17_spill] sm:$0xff] }
 0x227   : > { %3833 = vmatpush3.bf16.msra.mxu1 %v3832_v50  ;;  %7114 = vst [vmem:[#allocation7_spill] sm:$0xff] %v5724_v31  ;;  %v1232_v15 = vmin.f32 %v5719_v59, %v5724_v31  ;;  %v5733_v39 = vsel %vm1124_vm2, %v4094_v0, %v7115_v21  ;;  %v5739_v50 = vsel %vm1125_vm3, %v4094_v0, %v7116_v9  ;;  %v1834_v49 = vand.u32 4294901760, %v1833_v18  ;;  %v7117_v21 = vld [vmem:[#allocation11_spill] sm:$0xff]  ;;  %v7121_v0 = vld [vmem:[#allocation13_spill] sm:$0xff]  ;;  %v7123_v9 = vld [vmem:[#allocation14_spill] sm:$0xff] }
 0x228   : > { %3835 = vmatprep.subr.bf16.mxu1 %v3834_v2  ;;  %v1840_v62 = vsub.f32 %v5702_v10, %v6850_v42  ;;  %3805 = vmatpush3.bf16.msra.mxu0 %v5708_v6  ;;  %v1085_v14 = vmax.f32 %v1061_v55, 1e-20  ;;  %vm1128_vm6 = vcmp.eq.f32.partialorder %v7117_v21, %v1061_v55  ;;  %vm1129_vm7 = vcmp.eq.f32.partialorder %v7118_v7, %v1061_v55  ;;  %v7126_v42 = vld [vmem:[#allocation16_spill] sm:$0xff]  ;;  %v7151_v31 = vld [vmem:[#allocation27_spill] sm:$0xff] }
 0x229   : > { %1233 = vmin.xlane.f32.xlu1 %v1232_v15  ;;  %v5750_v60 = vsel %vm1128_vm6, 3e+38, %v7117_v21  ;;  %v5755_v57 = vsel %vm1129_vm7, 3e+38, %v7118_v7 }
 0x22a   : > { %v1841_v28 = vand.u32 4294901760, %v1840_v62  ;;  %7119 = vst [vmem:[#allocation8_spill] sm:$0xff] %v5750_v60  ;;  %7120 = vst [vmem:[#allocation9_spill] sm:$0xff] %v5755_v57  ;;  %4097 = vrsqrt.f32 %v1085_v14  ;;  %v1235_v18 = vmin.f32 %v5750_v60, %v5755_v57  ;;  %v7125_v14 = vld [vmem:[#allocation15_spill] sm:$0xff] }
 0x22c   : > { %v3836_v37 = vpack.c.bf16 %v1841_v28, %v1834_v49  ;;  %1236 = vmin.xlane.f32.xlu0 %v1235_v18 }
 0x22e   : > { %3837 = vmatpush3.bf16.msra.mxu1 %v3836_v37 }
 0x22f   : > { %3871 = vmatprep.subr.bf16.mxu1 %v5072_v63  ;;  %v1064_v62 = vpop.xlane.xlu1 %1063 }
 0x230   : > { %v4096_v2 = vpop.eup %4095  ;;  %v1086_v28 = vmax.f32 %v1064_v62, 1e-20  ;;  %vm1130_vm8 = vcmp.eq.f32.partialorder %v7125_v14, %v1064_v62  ;;  %vm1131_vm9 = vcmp.eq.f32.partialorder %v7126_v42, %v1064_v62  ;;  %v7145_v62 = vld [vmem:[#allocation25_spill] sm:$0xff] }
 0x231   : > { %v5763_v15 = vsel %vm1126_vm4, %v4096_v2, %v7121_v0  ;;  %v5768_v49 = vsel %vm1127_vm5, %v4096_v2, %v7123_v9  ;;  %v5775_v37 = vsel %vm1130_vm8, 3e+38, %v7125_v14  ;;  %v5780_v24 = vsel %vm1131_vm9, 3e+38, %v7126_v42  ;;  %v7131_v0 = vld [vmem:[#allocation18_spill] sm:$0xff] }
 0x232   : > { %7122 = vst [vmem:[#allocation10_spill] sm:$0xff] %v5763_v15  ;;  %7124 = vst [vmem:[#allocation11_spill] sm:$0xff] %v5768_v49  ;;  %4099 = vrsqrt.f32 %v1086_v28  ;;  %v1238_v48 = vmin.f32 %v5775_v37, %v5780_v24  ;;  %v7133_v49 = vld [vmem:[#allocation19_spill] sm:$0xff]  ;;  %v7134_v15 = vld [vmem:[#allocation20_spill] sm:$0xff] }
 0x233   : > { %7127 = vst [vmem:[#allocation12_spill] sm:$0xff] %v5775_v37  ;;  %7128 = vst [vmem:[#allocation13_spill] sm:$0xff] %v5780_v24 }
 0x234   : > { %v4098_v18 = vpop.eup %4097  ;;  %1239 = vmin.xlane.f32.xlu1 %v1238_v48 }
 0x235   : > { %v5787_v2 = vsel %vm1128_vm6, %v4098_v18, %v7129_v25  ;;  %v5792_v9 = vsel %vm1129_vm7, %v4098_v18, %v7131_v0  ;;  %v7137_v18 = vld [vmem:[#allocation21_spill] sm:$0xff]  ;;  %v7139_v25 = vld [vmem:[#allocation22_spill] sm:$0xff] }
 0x236   : > { %7130 = vst [vmem:[#allocation14_spill] sm:$0xff] %v5787_v2  ;;  %7132 = vst [vmem:[#allocation15_spill] sm:$0xff] %v5792_v9  ;;  %v7141_v9 = vld [vmem:[#allocation23_spill] sm:$0xff] }
 0x237   : > { %v1067_v57 = vpop.xlane.xlu0 %1066 }
 0x238   : > { %v1087_v60 = vmax.f32 %v1067_v57, 1e-20  ;;  %vm1132_vm10 = vcmp.eq.f32.partialorder %v7133_v49, %v1067_v57  ;;  %vm1133_vm11 = vcmp.eq.f32.partialorder %v7134_v15, %v1067_v57 }
 0x239   : > { %v5799_v28 = vsel %vm1132_vm10, 3e+38, %v7133_v49  ;;  %v5804_v21 = vsel %vm1133_vm11, 3e+38, %v7134_v15 }
 0x23a   : > { %7135 = vst [vmem:[#allocation16_spill] sm:$0xff] %v5799_v28  ;;  %7136 = vst [vmem:[#allocation17_spill] sm:$0xff] %v5804_v21  ;;  %4101 = vrsqrt.f32 %v1087_v60  ;;  %v1241_v7 = vmin.f32 %v5799_v28, %v5804_v21  ;;  %v7142_v60 = vld [vmem:[#allocation24_spill] sm:$0xff]  ;;  %v7149_v28 = vld [vmem:[#allocation33_spill] sm:$0xff] }
 0x23c   : > { %v4100_v55 = vpop.eup %4099  ;;  %1242 = vmin.xlane.f32.xlu0 %v1241_v7 }
 0x23d   : > { %v5811_v48 = vsel %vm1130_vm8, %v4100_v55, %v7137_v18  ;;  %v5816_v0 = vsel %vm1131_vm9, %v4100_v55, %v7139_v25  ;;  %v7147_v25 = vld [vmem:[#allocation26_spill] sm:$0xff] }
 0x23e   : > { %7138 = vst [vmem:[#allocation18_spill] sm:$0xff] %v5811_v48  ;;  %7140 = vst [vmem:[#allocation19_spill] sm:$0xff] %v5816_v0  ;;  %v7150_v0 = vld [vmem:[#allocation34_spill] sm:$0xff] }
 0x23f   : > { %v3838_v48 = vpack.c.bf16 %v7150_v0, %v7149_v28 }
 0x241   : > { %v1070_v24 = vpop.xlane.xlu1 %1069  ;;  %3839 = vmatprep.subr.bf16.mxu0 %v3838_v48 }
 0x242   : > { %v1088_v37 = vmax.f32 %v1070_v24, 1e-20  ;;  %vm1134_vm12 = vcmp.eq.f32.partialorder %v7141_v9, %v1070_v24  ;;  %vm1135_vm13 = vcmp.eq.f32.partialorder %v7142_v60, %v1070_v24 }
 0x243   : > { %v5823_v7 = vsel %vm1134_vm12, 3e+38, %v7141_v9  ;;  %v5828_v14 = vsel %vm1135_vm13, 3e+38, %v7142_v60 }
 0x244   : > { %7143 = vst [vmem:[#allocation20_spill] sm:$0xff] %v5823_v7  ;;  %7144 = vst [vmem:[#allocation21_spill] sm:$0xff] %v5828_v14  ;;  %v4102_v18 = vpop.eup %4101  ;;  %4103 = vrsqrt.f32 %v1088_v37  ;;  %v1244_v42 = vmin.f32 %v5823_v7, %v5828_v14  ;;  %v7152_v14 = vld [vmem:[#allocation28_spill] sm:$0xff] }
 0x245   : > { %v5835_v55 = vsel %vm1132_vm10, %v4102_v18, %v7145_v62  ;;  %v5840_v21 = vsel %vm1133_vm11, %v4102_v18, %v7147_v25  ;;  %v7155_v18 = vld [vmem:[#allocation29_spill] sm:$0xff]  ;;  %v7159_v25 = vld [vmem:[#allocation31_spill] sm:$0xff]  ;;  %v7161_v7 = vld [vmem:[#allocation32_spill] sm:$0xff] }
 0x246   : > { %7146 = vst [vmem:[#allocation22_spill] sm:$0xff] %v5835_v55  ;;  %7148 = vst [vmem:[#allocation23_spill] sm:$0xff] %v5840_v21  ;;  %1245 = vmin.xlane.f32.xlu1 %v1244_v42  ;;  %v7157_v42 = vld [vmem:[#allocation30_spill] sm:$0xff] }
 0x24b   : > { %v1073_v2 = vpop.xlane.xlu0 %1072 }
 0x24c   : > { %v1089_v37 = vmax.f32 %v1073_v2, 1e-20  ;;  %vm1136_vm14 = vcmp.eq.f32.partialorder %v7151_v31, %v1073_v2  ;;  %vm1137_vm15 = vcmp.eq.f32.partialorder %v7152_v14, %v1073_v2 }
 0x24d   : > { %v5847_v49 = vsel %vm1136_vm14, 3e+38, %v7151_v31  ;;  %v5850_v62 = vsel %vm1137_vm15, 3e+38, %v7152_v14 }
 0x24e   : > { %7153 = vst [vmem:[#allocation24_spill] sm:$0xff] %v5847_v49  ;;  %7154 = vst [vmem:[#allocation25_spill] sm:$0xff] %v5850_v62  ;;  %v4104_v57 = vpop.eup %4103  ;;  %4105 = vrsqrt.f32 %v1089_v37  ;;  %v1247_v15 = vmin.f32 %v5847_v49, %v5850_v62 }
 0x24f   : > { %v5857_v48 = vsel %vm1134_vm12, %v4104_v57, %v7155_v18  ;;  %v5862_v2 = vsel %vm1135_vm13, %v4104_v57, %v7157_v42  ;;  %v7164_v42 = vld [vmem:[#allocation42_spill] sm:$0xff] }
 0x250   : > { %7156 = vst [vmem:[#allocation26_spill] sm:$0xff] %v5857_v48  ;;  %7158 = vst [vmem:[#allocation33_spill] sm:$0xff] %v5862_v2  ;;  %1248 = vmin.xlane.f32.xlu0 %v1247_v15  ;;  %v7163_v15 = vld [vmem:[#allocation41_spill] sm:$0xff]  ;;  %v7176_v2 = vld [vmem:[#allocation44_spill] sm:$0xff] }
 0x258   : > { %v4106_v31 = vpop.eup %4105 }
 0x259   : > { %v5865_v14 = vsel %vm1136_vm14, %v4106_v31, %v7159_v25  ;;  %v5868_v37 = vsel %vm1137_vm15, %v4106_v31, %v7161_v7 }
 0x25a   : > { %7160 = vst [vmem:[#allocation34_spill] sm:$0xff] %v5865_v14  ;;  %7162 = vst [vmem:[#allocation27_spill] sm:$0xff] %v5868_v37 }
 0x272   : > { %v1204_v21 = vpop.xlane.xlu1 %1203 }
 0x273   : > { %v1250_v62 = vmax.f32 %v1204_v21, 1e-20  ;;  %vm1282_vm0 = vcmp.eq.f32.partialorder %v7163_v15, %v1204_v21  ;;  %vm1283_vm1 = vcmp.eq.f32.partialorder %v7164_v42, %v1204_v21  ;;  %v7170_v42 = vld [vmem:[#allocation36_spill] sm:$0xff] }
 0x275   : > { %4107 = vrsqrt.f32 %v1250_v62 }
 0x276   : > { %v1210_v49 = vpop.xlane.xlu1 %1209 }
 0x277   : > { %v1252_v9 = vmax.f32 %v1210_v49, 1e-20  ;;  %vm1286_vm2 = vcmp.eq.f32.partialorder %v5055_v30, %v1210_v49  ;;  %vm1287_vm3 = vcmp.eq.f32.partialorder %v5061_v47, %v1210_v49 }
 0x279   : > { %4109 = vrsqrt.f32 %v1252_v9 }
 0x27a   : > { %v1207_v18 = vpop.xlane.xlu0 %1206 }
 0x27b   : > { %v1251_v48 = vmax.f32 %v1207_v18, 1e-20  ;;  %vm1285_vm5 = vcmp.eq.f32.partialorder %v7176_v2, %v1207_v18 }
 0x27d   : > { %4111 = vrsqrt.f32 %v1251_v48 }
 0x27e   : > { %v1216_v24 = vpop.xlane.xlu1 %1215 }
 0x27f   : > { %v1254_v60 = vmax.f32 %v1216_v24, 1e-20  ;;  %v4108_v57 = vpop.eup %4107 }
 0x280   : > { %v1314_v25 = vsel %vm1282_vm0, %v4108_v57, %v5148_v26  ;;  %v1315_v7 = vsel %vm1283_vm1, %v4108_v57, %v5154_v33  ;;  %v5874_v31 = vpop.xlane.xlu0 %1212 }
 0x281   : > { %4113 = vrsqrt.f32 %v1254_v60  ;;  %v1253_v62 = vmax.f32 %v5874_v31, 1e-20  ;;  %v5877_v9 = vand.u32 4294901760, %v1315_v7  ;;  %v1346_v37 = vadd.f32 %v1315_v7, %v1314_v25 }
 0x282   : > { %v5879_v48 = vand.u32 4294901760, %v1314_v25 }
 0x283   : > { %7165 = vst [vmem:[#allocation28_spill] sm:$0xff] %v5877_v9  ;;  %v4110_v14 = vpop.eup %4109  ;;  %4115 = vrsqrt.f32 %v1253_v62  ;;  %1956 = vmatprep.mubr.f32.mxu1 %v5877_v9  ;;  %v5885_v33 = vsub.f32 %v1315_v7, %v5877_v9  ;;  %1347 = vadd.xlane.f32.xlu1 %v1346_v37  ;;  %v7172_v37 = vld [vmem:[#allocation38_spill] sm:$0xff]  ;;  %v7173_v62 = vld [vmem:[#allocation39_spill] sm:$0xff] }
 0x284   : > { %7166 = vst [vmem:[#allocation29_spill] sm:$0xff] %v5879_v48  ;;  %v1318_v26 = vsel %vm1286_vm2, %v4110_v14, %v5206_v43  ;;  %v1319_v21 = vsel %vm1287_vm3, %v4110_v14, %v5212_v38  ;;  %1958 = vmatmul.mubr.f32.vlgmr.msra.gmra.mrb[0].mxu1 %v5879_v48  ;;  %v5891_v60 = vsub.f32 %v1314_v25, %v5879_v48  ;;  %v7169_v43 = vld [vmem:[#allocation35_spill] sm:$0xff]  ;;  %v7171_v14 = vld [vmem:[#allocation37_spill] sm:$0xff]  ;;  %v7174_v25 = vld [vmem:[#allocation40_spill] sm:$0xff] }
 0x285   : > { %v1352_v57 = vadd.f32 %v1319_v21, %v1318_v26  ;;  %v5894_v47 = vand.u32 4294901760, %v1319_v21  ;;  %v5896_v49 = vand.u32 4294901760, %v1318_v26  ;;  %3873 = vmatpush3.bf16.msra.mxu1 %v5115_v54  ;;  %v3840_v38 = vpack.c.bf16 %v7170_v42, %v7169_v43  ;;  %v7175_v9 = vld [vmem:[#allocation43_spill] sm:$0xff] }
 0x286   : > { %v3842_v7 = vpack.c.bf16 %v7172_v37, %v7171_v14  ;;  %3875 = vmatprep.subr.bf16.mxu1 %v5193_v16  ;;  %vm1284_vm4 = vcmp.eq.f32.partialorder %v7175_v9, %v1207_v18  ;;  %v7177_v54 = vand.u32 4294901760, %v5885_v33  ;;  %v7178_v48 = vand.u32 4294901760, %v5891_v60 }
 0x287   : > { %7167 = vst [vmem:[#allocation30_spill] sm:$0xff] %v5894_v47  ;;  %7168 = vst [vmem:[#allocation31_spill] sm:$0xff] %v5896_v49  ;;  %v4112_v30 = vpop.eup %4111  ;;  %v5913_v55 = vsub.f32 %v1319_v21, %v5894_v47  ;;  %1353 = vadd.xlane.f32.xlu1 %v1352_v57  ;;  %v5921_v9 = vsub.f32 %v1318_v26, %v5896_v49  ;;  %v7182_v57 = vld [vmem:[#allocation48_spill] sm:$0xff] }
 0x288   : > { %v1493_v15 = vsub.f32 %v5885_v33, %v7177_v54  ;;  %v1317_v42 = vsel %vm1285_vm5, %v4112_v30, %v5261_v12  ;;  %v1316_v37 = vsel %vm1284_vm4, %v4112_v30, %v5255_v1  ;;  %v1499_v14 = vsub.f32 %v5891_v60, %v7178_v48  ;;  %v7181_v12 = vld [vmem:[#allocation47_spill] sm:$0xff]  ;;  %v7183_v30 = vld [vmem:[#allocation45_spill] sm:$0xff] }
 0x289   : > { %v5923_v18 = vand.u32 4294901760, %v1317_v42  ;;  %v1349_v43 = vadd.f32 %v1317_v42, %v1316_v37  ;;  %v5925_v54 = vand.u32 4294901760, %v1316_v37  ;;  %3877 = vmatpush3.bf16.msra.mxu1 %v5236_v36  ;;  %vm1290_vm6 = vcmp.eq.f32.partialorder %v7181_v12, %v1216_v24  ;;  %v7184_v12 = vld [vmem:[#allocation49_spill] sm:$0xff] }
 0x28a   : > { %v1494_v2 = vand.u32 4294901760, %v1493_v15  ;;  %vm1291_vm7 = vcmp.eq.f32.partialorder %v7182_v57, %v1216_v24  ;;  %v1500_v1 = vand.u32 4294901760, %v1499_v14  ;;  %v3846_v48 = vpack.c.bf16 %v7183_v30, %v5100_v58  ;;  %3879 = vmatprep.subr.bf16.mxu1 %v5289_v41 }
 0x28b   : > { %7179 = vst [vmem:[#allocation32_spill] sm:$0xff] %v5923_v18  ;;  %7180 = vst [vmem:[#allocation41_spill] sm:$0xff] %v5925_v54  ;;  %v4114_v21 = vpop.eup %4113  ;;  %1963 = vmatprep.mubr.f32.mxu1 %v5923_v18  ;;  %v5937_v36 = vsub.f32 %v1316_v37, %v5925_v54  ;;  %vm1288_vm8 = vcmp.eq.f32.partialorder %v7184_v12, %v5874_v31  ;;  %1350 = vadd.xlane.f32.xlu0 %v1349_v43 }
 0x28c   : > { %v1322_v26 = vsel %vm1290_vm6, %v4114_v21, %v5299_v20  ;;  %v1323_v15 = vsel %vm1291_vm7, %v4114_v21, %v5305_v46  ;;  %1495 = vmatprep.mubr.f32.mxu0 %v1494_v2  ;;  %v5942_v14 = vsub.f32 %v1317_v42, %v5923_v18  ;;  %v7185_v46 = vld [vmem:[#allocation50_spill] sm:$0xff]  ;;  %1965 = vmatmul.mubr.f32.gmra.mrb[2].mxu1 %v5925_v54 }
 0x28d   : > { %1501 = vmatmul.mubr.f32.vlgmr.msra.gmra.mrb[0].mxu0 %v1500_v1  ;;  %v1358_v24 = vadd.f32 %v1323_v15, %v1322_v26  ;;  %v4116_v20 = vpop.eup %4115  ;;  %vm1289_vm9 = vcmp.eq.f32.partialorder %v7185_v46, %v5874_v31  ;;  %v5949_v2 = vand.u32 4294901760, %v1323_v15  ;;  %1970 = vmatprep.mubr.f32.mxu1 %v5894_v47  ;;  %v5956_v12 = vand.u32 4294901760, %v1322_v26 }
 0x28e   : > { %3841 = vmatpush3.bf16.msra.mxu0 %v3840_v38  ;;  %v1320_v43 = vsel %vm1288_vm8, %v4116_v20, %v5314_v32  ;;  %v1321_v42 = vsel %vm1289_vm9, %v4116_v20, %v5320_v29  ;;  %v6870_v1 = vand.u32 4294901760, %v5942_v14  ;;  %v7190_v38 = vand.u32 4294901760, %v5937_v36  ;;  %3881 = vmatpush3.bf16.msra.mxu1 %v5341_v40 }
 0x28f   : > { %7186 = vst [vmem:[#allocation42_spill] sm:$0xff] %v5949_v2  ;;  %1359 = vadd.xlane.f32.xlu1 %v1358_v24  ;;  %7187 = vst [vmem:[#allocation39_spill] sm:$0xff] %v5956_v12  ;;  %v1355_v31 = vadd.f32 %v1321_v42, %v1320_v43  ;;  %v5958_v46 = vand.u32 4294901760, %v1321_v42  ;;  %v5960_v57 = vand.u32 4294901760, %v1320_v43  ;;  %3843 = vmatprep.subr.bf16.mxu0 %v3842_v7  ;;  %v7191_v24 = vand.u32 4294901760, %v5913_v55 }
 0x290   : > { %v1514_v21 = vsub.f32 %v5937_v36, %v7190_v38  ;;  %v1508_v29 = vsub.f32 %v5942_v14, %v6870_v1  ;;  %3883 = vmatprep.subr.bf16.mxu1 %v5396_v56  ;;  %1972 = vmatmul.mubr.f32.gmra.mrb[4].mxu1 %v5896_v49  ;;  %v5985_v54 = vsub.f32 %v1323_v15, %v5949_v2  ;;  %v7195_v56 = vld [vmem:[#allocation53_spill] sm:$0xff]  ;;  %v7197_v49 = vld [vmem:[#allocation56_spill] sm:$0xff] }
 0x291   : > { %7188 = vst [vmem:[#allocation40_spill] sm:$0xff] %v5958_v46  ;;  %7189 = vst [vmem:[#allocation43_spill] sm:$0xff] %v5960_v57  ;;  %v1523_v20 = vsub.f32 %v5913_v55, %v7191_v24  ;;  %v5977_v47 = vsub.f32 %v1321_v42, %v5958_v46  ;;  %v5980_v38 = vsub.f32 %v1320_v43, %v5960_v57  ;;  %1356 = vadd.xlane.f32.xlu0 %v1355_v31  ;;  %v7193_v42 = vld [vmem:[#allocation52_spill] sm:$0xff] }
 0x292   : > { %v5962_v37 = vpop.xlane.xlu0 %1218  ;;  %v1515_v7 = vand.u32 4294901760, %v1514_v21  ;;  %1977 = vmatprep.mubr.f32.mxu1 %v5958_v46  ;;  %v1509_v1 = vand.u32 4294901760, %v1508_v29  ;;  %v7192_v24 = vpack.c.bf16 %v7174_v25, %v7173_v62  ;;  %v3848_v18 = vpack.c.bf16 %v7193_v42, %v5220_v44  ;;  %3885 = vmatpush3.bf16.msra.mxu1 %v5465_v19  ;;  %v7196_v42 = vld [vmem:[#allocation55_spill] sm:$0xff] }
 0x293   : > { %v1255_v32 = vmax.f32 %v5962_v37, 1e-20  ;;  %v7194_v31 = vand.u32 4294901760, %v5921_v9  ;;  %v6888_v29 = vand.u32 4294901760, %v5980_v38  ;;  %v6000_v15 = vsub.f32 %v1322_v26, %v5956_v12  ;;  %3887 = vmatprep.subr.bf16.mxu1 %v5493_v61 }
 0x294   : > { %3845 = vmatpush3.bf16.msra.mxu0 %v7192_v24  ;;  %1510 = vmatprep.mubr.f32.mxu0 %v1509_v1  ;;  %v1524_v46 = vand.u32 4294901760, %v1523_v20  ;;  %v3850_v44 = vpack.c.bf16 %v7196_v42, %v7195_v56 }
 0x295   : > { %4117 = vrsqrt.f32 %v1255_v32  ;;  %v1529_v21 = vsub.f32 %v5921_v9, %v7194_v31  ;;  %v6884_v32 = vand.u32 4294901760, %v5977_v47  ;;  %3847 = vmatprep.subr.bf16.mxu0 %v3846_v48  ;;  %1516 = vmatmul.mubr.f32.gmra.mrb[2].mxu0 %v1515_v7  ;;  %v1544_v20 = vsub.f32 %v5980_v38, %v6888_v29 }
 0x296   : > { %v5992_v43 = vpop.xlane.xlu1 %1221  ;;  %1979 = vmatmul.mubr.f32.gmra.mrb[6].mxu1 %v5960_v57  ;;  %1525 = vmatprep.mubr.f32.mxu0 %v1524_v46  ;;  %v6891_v7 = vand.u32 4294901760, %v6000_v15  ;;  %v7198_v57 = vld [vmem:[#allocation57_spill] sm:$0xff]  ;;  %v7199_v46 = vand.u32 4294901760, %v5985_v54 }
 0x297   : > { %v1256_v24 = vmax.f32 %v5992_v43, 1e-20  ;;  %v1538_v48 = vsub.f32 %v5977_v47, %v6884_v32  ;;  %1984 = vmatprep.mubr.f32.mxu1 %v5949_v2  ;;  %v1530_v1 = vand.u32 4294901760, %v1529_v21  ;;  %v3852_v61 = vpack.c.bf16 %v7198_v57, %v7197_v49  ;;  %3889 = vmatpush3.bf16.msra.mxu1 %v5600_v13  ;;  %v7200_v21 = vld [vmem:[#allocation58_spill] sm:$0xff]  ;;  %v7201_v2 = vld [vmem:[#allocation59_spill] sm:$0xff] }
 0x298   : > { %v6009_v31 = vpop.xlane.xlu0 %1224  ;;  %3849 = vmatpush3.bf16.msra.mxu0 %v3848_v18  ;;  %v1553_v32 = vsub.f32 %v5985_v54, %v7199_v46  ;;  %v3854_v19 = vpack.c.bf16 %v7201_v2, %v7200_v21  ;;  %3891 = vmatprep.subr.bf16.mxu1 %v5606_v45  ;;  %v1545_v18 = vand.u32 4294901760, %v1544_v20  ;;  %v7203_v46 = vld [vmem:[#allocation60_spill] sm:$0xff]  ;;  %v3858_v20 = vpack.c.bf16 %v5481_v51, %v5477_v4  ;;  %v7206_v45 = vld [vmem:[#allocation73_spill] sm:$0xff] }
 0x299   : > { %4119 = vrsqrt.f32 %v1256_v24  ;;  %v1257_v26 = vmax.f32 %v6009_v31, 1e-20  ;;  %v1539_v24 = vand.u32 4294901760, %v1538_v48  ;;  %3851 = vmatprep.subr.bf16.mxu0 %v3850_v44  ;;  %1531 = vmatmul.mubr.f32.gmra.mrb[4].mxu0 %v1530_v1  ;;  %v7202_v48 = vld [vmem:[#allocation63_spill] sm:$0xff]  ;;  %vm1292_vm10 = vcmp.eq.f32.partialorder %v7203_v46, %v5962_v37  ;;  %v7204_v1 = vld [vmem:[#allocation61_spill] sm:$0xff] }
 0x29a   : > { %1986 = vmatmul.mubr.f32.gmra.mrb[8].mxu1 %v5956_v12  ;;  %v3856_v29 = vpack.c.bf16 %v7202_v48, %v5380_v35  ;;  %vm1293_vm11 = vcmp.eq.f32.partialorder %v7204_v1, %v5962_v37  ;;  %v1554_v12 = vand.u32 4294901760, %v1553_v32  ;;  %v7207_v48 = vld [vmem:[#allocation79_spill] sm:$0xff]  ;;  %v7208_v35 = vld [vmem:[#allocation81_spill] sm:$0xff] }
 0x29b   : > { %4121 = vrsqrt.f32 %v1257_v26  ;;  %1540 = vmatprep.mubr.f32.mxu0 %v1539_v24  ;;  %v1559_v26 = vsub.f32 %v6000_v15, %v6891_v7  ;;  %3893 = vmatpush3.bf16.msra.mxu1 %v5628_v17  ;;  %v7205_v17 = vld [vmem:[#allocation71_spill] sm:$0xff]  ;;  %v3862_v37 = vpack.c.bf16 %v7208_v35, %v7207_v48 }
 0x29c   : > { %3853 = vmatpush3.bf16.msra.mxu0 %v3852_v61  ;;  %3895 = vmatprep.subr.bf16.mxu1 %v5691_v23  ;;  %v3860_v46 = vpack.c.bf16 %v7206_v45, %v7205_v17  ;;  %v7212_v23 = vld [vmem:[#allocation66_spill] sm:$0xff]  ;;  %v7214_v48 = vld [vmem:[#allocation67_spill] sm:$0xff] }
 0x29d   : > { %3855 = vmatprep.subr.bf16.mxu0 %v3854_v19  ;;  %1546 = vmatmul.mubr.f32.gmra.mrb[6].mxu0 %v1545_v18  ;;  %v7209_v19 = vld [vmem:[#allocation65_spill] sm:$0xff]  ;;  %vm1295_vm13 = vcmp.eq.f32.partialorder %v7212_v23, %v5992_v43  ;;  %vm1296_vm14 = vcmp.eq.f32.partialorder %v7214_v48, %v6009_v31  ;;  %v7216_v23 = vld [vmem:[#allocation76_spill] sm:$0xff] }
 0x29e   : > { %vm1294_vm12 = vcmp.eq.f32.partialorder %v7209_v19, %v5992_v43  ;;  %1555 = vmatprep.mubr.f32.mxu0 %v1554_v12  ;;  %v7215_v12 = vld [vmem:[#allocation68_spill] sm:$0xff]  ;;  %v7220_v43 = vld [vmem:[#allocation2_spill] sm:$0xff] }
 0x29f   : > { %v4118_v44 = vpop.eup %4117  ;;  %3897 = vmatpush3.bf16.msra.mxu1 %v5699_v5  ;;  %vm1297_vm15 = vcmp.eq.f32.partialorder %v7215_v12, %v6009_v31 }
 0x2a0   : > { %v1325_v61 = vsel %vm1293_vm11, %v4118_v44, %v5512_v27  ;;  %v1324_v7 = vsel %vm1292_vm10, %v4118_v44, %v5506_v34  ;;  %v7211_v27 = vld [vmem:[#allocation82_spill] sm:$0xff]  ;;  %v1560_v34 = vand.u32 4294901760, %v1559_v26  ;;  %3857 = vmatpush3.bf16.msra.mxu0 %v3856_v29  ;;  %v7217_v26 = vld [vmem:[#allocation77_spill] sm:$0xff]  ;;  %3899 = vmatprep.subr.bf16.mxu1 %v5705_v52 }
 0x2a1   : > { %v6044_v24 = vpop.xlane.xlu1 %1227  ;;  %v6054_v1 = vand.u32 4294901760, %v1325_v61  ;;  %v3864_v18 = vpack.c.bf16 %v5621_v53, %v7211_v27  ;;  %v1361_v44 = vadd.f32 %v1325_v61, %v1324_v7  ;;  %v6060_v45 = vand.u32 4294901760, %v1324_v7  ;;  %3859 = vmatprep.subr.bf16.mxu0 %v3858_v20 }
 0x2a2   : > { %v1258_v32 = vmax.f32 %v6044_v24, 1e-20  ;;  %1561 = vmatmul.mubr.f32.gmra.mrb[8].mxu0 %v1560_v34 }
 0x2a3   : > { %7210 = vst [vmem:[#allocation44_spill] sm:$0xff] %v6054_v1  ;;  %7213 = vst [vmem:[#allocation47_spill] sm:$0xff] %v6060_v45  ;;  %v4120_v35 = vpop.eup %4119  ;;  %1991 = vmatprep.mubr.f32.mxu1 %v6054_v1  ;;  %v6069_v53 = vsub.f32 %v1325_v61, %v6054_v1  ;;  %v6077_v5 = vsub.f32 %v1324_v7, %v6060_v45  ;;  %1362 = vadd.xlane.f32.xlu0 %v1361_v44  ;;  %v7221_v7 = vld [vmem:[#allocation78_spill] sm:$0xff] }
 0x2a4   : > { %4123 = vrsqrt.f32 %v1258_v32  ;;  %v1326_v29 = vsel %vm1294_vm12, %v4120_v35, %v7216_v23  ;;  %v1327_v27 = vsel %vm1295_vm13, %v4120_v35, %v7217_v26  ;;  %1993 = vmatmul.mubr.f32.gmra.mrb[10].mxu1 %v6060_v45  ;;  %3861 = vmatpush3.bf16.msra.mxu0 %v3860_v46  ;;  %v3866_v44 = vpack.c.bf16 %v5667_v11, %v5664_v22 }
 0x2a5   : > { %v4122_v17 = vpop.eup %4121  ;;  %v1364_v32 = vadd.f32 %v1327_v27, %v1326_v29  ;;  %v6080_v51 = vand.u32 4294901760, %v1327_v27  ;;  %v6082_v61 = vand.u32 4294901760, %v1326_v29  ;;  %v6899_v20 = vand.u32 4294901760, %v6069_v53  ;;  %3901 = vmatpush3.bf16.msra.mxu1 %v5708_v6  ;;  %3863 = vmatprep.subr.bf16.mxu0 %v3862_v37 }
 0x2a6   : > { %v1329_v35 = vsel %vm1297_vm15, %v4122_v17, %v7220_v43  ;;  %v1328_v19 = vsel %vm1296_vm14, %v4122_v17, %v7221_v7  ;;  %v6900_v34 = vand.u32 4294901760, %v6077_v5  ;;  %3935 = vmatprep.subr.bf16.mxu1 %v5072_v63  ;;  %v3868_v37 = vpack.c.bf16 %v5702_v10, %v5687_v3 }
 0x2a7   : > { %7218 = vst [vmem:[#allocation48_spill] sm:$0xff] %v6080_v51  ;;  %7219 = vst [vmem:[#allocation45_spill] sm:$0xff] %v6082_v61  ;;  %1365 = vadd.xlane.f32.xlu1 %v1364_v32  ;;  %1998 = vmatprep.mubr.f32.mxu1 %v6080_v51  ;;  %v6099_v23 = vand.u32 4294901760, %v1329_v35  ;;  %v1367_v12 = vadd.f32 %v1329_v35, %v1328_v19  ;;  %v6101_v26 = vand.u32 4294901760, %v1328_v19 }
 0x2a8   : > { %v1568_v17 = vsub.f32 %v6069_v53, %v6899_v20  ;;  %v1574_v31 = vsub.f32 %v6077_v5, %v6900_v34  ;;  %v6110_v48 = vsub.f32 %v1327_v27, %v6080_v51  ;;  %v6113_v46 = vsub.f32 %v1326_v29, %v6082_v61  ;;  %2000 = vmatmul.mubr.f32.gmra.mrb[12].mxu1 %v6082_v61 }
 0x2a9   : > { %7222 = vst [vmem:[#allocation49_spill] sm:$0xff] %v6099_v23  ;;  %7223 = vst [vmem:[#allocation50_spill] sm:$0xff] %v6101_v26  ;;  %v6118_v32 = vsub.f32 %v1328_v19, %v6101_v26  ;;  %1368 = vadd.xlane.f32.xlu0 %v1367_v12  ;;  %v6121_v20 = vsub.f32 %v1329_v35, %v6099_v23  ;;  %2005 = vmatprep.mubr.f32.mxu1 %v6099_v23  ;;  %v7224_v12 = vand.u32 4294901760, %v7149_v28  ;;  %v7226_v23 = vld [vmem:[#allocation74_spill] sm:$0xff] }
 0x2aa   : > { %v1569_v7 = vand.u32 4294901760, %v1568_v17  ;;  %v1575_v34 = vand.u32 4294901760, %v1574_v31  ;;  %3865 = vmatpush3.bf16.msra.mxu0 %v3864_v18  ;;  %v6903_v63 = vand.u32 4294901760, %v6110_v48  ;;  %v6904_v29 = vand.u32 4294901760, %v6113_v46 }
 0x2ab   : > { %v6907_v19 = vand.u32 4294901760, %v6121_v20  ;;  %3867 = vmatprep.subr.bf16.mxu0 %v3866_v44  ;;  %v7225_v35 = vand.u32 4294901760, %v7150_v0  ;;  %vm1298_vm0 = vcmp.eq.f32.partialorder %v7226_v23, %v6044_v24  ;;  %v7228_v44 = vld [vmem:[#allocation5_spill] sm:$0xff] }
 0x2ac   : > { %v1231_v43 = vpop.xlane.xlu0 %1230  ;;  %1570 = vmatprep.mubr.f32.mxu0 %v1569_v7  ;;  %v7227_v7 = vld [vmem:[#allocation75_spill] sm:$0xff]  ;;  %2007 = vmatmul.mubr.f32.gmra.mrb[14].mxu1 %v6101_v26  ;;  %v1583_v28 = vsub.f32 %v6110_v48, %v6903_v63  ;;  %v1589_v0 = vsub.f32 %v6113_v46, %v6904_v29  ;;  %v7231_v29 = vand.u32 4294901760, %v6118_v32 }
 0x2ad   : > { %v1259_v27 = vmax.f32 %v1231_v43, 1e-20  ;;  %v3902_v17 = vpack.c.bf16 %v7225_v35, %v7224_v12  ;;  %1576 = vmatmul.mubr.f32.gmra.mrb[10].mxu0 %v1575_v34  ;;  %vm1299_vm1 = vcmp.eq.f32.partialorder %v7227_v7, %v6044_v24  ;;  %v1598_v34 = vsub.f32 %v6121_v20, %v6907_v19 }
 0x2ae   : > { %v4124_v31 = vpop.eup %4123  ;;  %3869 = vmatpush3.bf16.msra.mxu0 %v3868_v37  ;;  %v1584_v24 = vand.u32 4294901760, %v1583_v28  ;;  %v1590_v12 = vand.u32 4294901760, %v1589_v0  ;;  %v1604_v26 = vsub.f32 %v6118_v32, %v7231_v29 }
 0x2af   : > { %4125 = vrsqrt.f32 %v1259_v27  ;;  %v1330_v23 = vsel %vm1298_vm0, %v4124_v31, %v7228_v44  ;;  %v1331_v27 = vsel %vm1299_vm1, %v4124_v31, %v5680_v8  ;;  %v1599_v7 = vand.u32 4294901760, %v1598_v34  ;;  %3903 = vmatprep.subr.bf16.mxu0 %v3902_v17  ;;  %v7232_v44 = vld [vmem:[#allocation3_spill] sm:$0xff] }
 0x2b0   : > { %v1370_v35 = vadd.f32 %v1331_v27, %v1330_v23  ;;  %v6150_v18 = vand.u32 4294901760, %v1331_v27  ;;  %v6152_v63 = vand.u32 4294901760, %v1330_v23  ;;  %1585 = vmatprep.mubr.f32.mxu0 %v1584_v24  ;;  %v1605_v28 = vand.u32 4294901760, %v1604_v26  ;;  %v7233_v24 = vld [vmem:[#allocation4_spill] sm:$0xff] }
 0x2b1   : > { %1591 = vmatmul.mubr.f32.gmra.mrb[12].mxu0 %v1590_v12  ;;  %vm1300_vm2 = vcmp.eq.f32.partialorder %v7232_v44, %v1231_v43  ;;  %vm1301_vm3 = vcmp.eq.f32.partialorder %v7233_v24, %v1231_v43  ;;  %vm3144_vm0 = vcmask 523264  }
 0x2b2   : > { %7229 = vst [vmem:[#allocation53_spill] sm:$0xff] %v6150_v18  ;;  %7230 = vst [vmem:[#allocation55_spill] sm:$0xff] %v6152_v63  ;;  %1371 = vadd.xlane.f32.xlu1 %v1370_v35  ;;  %2012 = vmatprep.mubr.f32.mxu1 %v6150_v18  ;;  %v6159_v8 = vsub.f32 %v1331_v27, %v6150_v18  ;;  %v6162_v37 = vsub.f32 %v1330_v23, %v6152_v63 }
 0x2b3   : > { %1600 = vmatprep.mubr.f32.mxu0 %v1599_v7  ;;  %2014 = vmatmul.mubr.f32.gmra.mrb[16].mxu1 %v6152_v63 }
 0x2b4   : > { %v6909_v0 = vand.u32 4294901760, %v6159_v8  ;;  %v6908_v29 = vand.u32 4294901760, %v6162_v37 }
 0x2b5   : > { %1606 = vmatmul.mubr.f32.gmra.mrb[14].mxu0 %v1605_v28 }
 0x2b6   : > { %v1234_v17 = vpop.xlane.xlu1 %1233  ;;  %v1613_v23 = vsub.f32 %v6159_v8, %v6909_v0  ;;  %v1619_v26 = vsub.f32 %v6162_v37, %v6908_v29  ;;  %v7238_v0 = vld [vmem:[#allocation11_spill] sm:$0xff] }
 0x2b7   : > { %v1260_v31 = vmax.f32 %v1234_v17, 1e-20  ;;  %vm1302_vm4 = vcmp.eq.f32.partialorder %v5719_v59, %v1234_v17 }
 0x2b8   : > { %v1614_v35 = vand.u32 4294901760, %v1613_v23  ;;  %v1620_v43 = vand.u32 4294901760, %v1619_v26 }
 0x2b9   : > { %v4126_v34 = vpop.eup %4125  ;;  %4127 = vrsqrt.f32 %v1260_v31 }
 0x2ba   : > { %v1333_v27 = vsel %vm1301_vm3, %v4126_v34, %v5739_v50  ;;  %v1332_v12 = vsel %vm1300_vm2, %v4126_v34, %v5733_v39  ;;  %1615 = vmatprep.mubr.f32.mxu0 %v1614_v35  ;;  %v1237_v50 = vpop.xlane.xlu0 %1236 }
 0x2bb   : > { %v6177_v7 = vand.u32 4294901760, %v1333_v27  ;;  %v1373_v44 = vadd.f32 %v1333_v27, %v1332_v12  ;;  %v6179_v19 = vand.u32 4294901760, %v1332_v12  ;;  %1621 = vmatmul.mubr.f32.gmra.mrb[16].mxu0 %v1620_v43  ;;  %v1261_v39 = vmax.f32 %v1237_v50, 1e-20  ;;  %v7237_v43 = vld [vmem:[#allocation10_spill] sm:$0xff] }
 0x2bd   : > { %7234 = vst [vmem:[#allocation56_spill] sm:$0xff] %v6177_v7  ;;  %7235 = vst [vmem:[#allocation57_spill] sm:$0xff] %v6179_v19  ;;  %2019 = vmatprep.mubr.f32.mxu1 %v6177_v7  ;;  %v6183_v31 = vsub.f32 %v1332_v12, %v6179_v19  ;;  %v6186_v28 = vsub.f32 %v1333_v27, %v6177_v7  ;;  %1374 = vadd.xlane.f32.xlu0 %v1373_v44  ;;  %4129 = vrsqrt.f32 %v1261_v39  ;;  %v7236_v12 = vld [vmem:[#allocation7_spill] sm:$0xff] }
 0x2be   : > { %2021 = vmatmul.mubr.f32.gmra.mrb[18].mxu1 %v6179_v19  ;;  %vm1303_vm5 = vcmp.eq.f32.partialorder %v7236_v12, %v1234_v17  ;;  %v7241_v12 = vld [vmem:[#allocation8_spill] sm:$0xff] }
 0x2bf   : > { %v6914_v34 = vand.u32 4294901760, %v6186_v28  ;;  %v6917_v24 = vand.u32 4294901760, %v6183_v31  ;;  %vm1304_vm6 = vcmp.eq.f32.partialorder %v7241_v12, %v1237_v50 }
 0x2c1   : > { %v1628_v23 = vsub.f32 %v6186_v28, %v6914_v34  ;;  %v1634_v26 = vsub.f32 %v6183_v31, %v6917_v24  ;;  %v1240_v63 = vpop.xlane.xlu1 %1239 }
 0x2c3   : > { %v4128_v27 = vpop.eup %4127  ;;  %v1629_v35 = vand.u32 4294901760, %v1628_v23  ;;  %v1635_v44 = vand.u32 4294901760, %v1634_v26  ;;  %v1262_v23 = vmax.f32 %v1240_v63, 1e-20 }
 0x2c4   : > { %v1334_v29 = vsel %vm1302_vm4, %v4128_v27, %v7237_v43  ;;  %v1335_v19 = vsel %vm1303_vm5, %v4128_v27, %v7238_v0 }
 0x2c5   : > { %1630 = vmatprep.mubr.f32.mxu0 %v1629_v35  ;;  %v1376_v39 = vadd.f32 %v1335_v19, %v1334_v29  ;;  %v6201_v7 = vand.u32 4294901760, %v1335_v19  ;;  %v6203_v34 = vand.u32 4294901760, %v1334_v29  ;;  %v7242_v35 = vld [vmem:[#allocation9_spill] sm:$0xff]  ;;  %4131 = vrsqrt.f32 %v1262_v23 }
 0x2c6   : > { %1636 = vmatmul.mubr.f32.gmra.mrb[18].mxu0 %v1635_v44  ;;  %vm1305_vm7 = vcmp.eq.f32.partialorder %v7242_v35, %v1237_v50  ;;  %v7243_v44 = vld [vmem:[#allocation14_spill] sm:$0xff] }
 0x2c7   : > { %7239 = vst [vmem:[#allocation58_spill] sm:$0xff] %v6201_v7  ;;  %7240 = vst [vmem:[#allocation59_spill] sm:$0xff] %v6203_v34  ;;  %1377 = vadd.xlane.f32.xlu1 %v1376_v39  ;;  %2026 = vmatprep.mubr.f32.mxu1 %v6201_v7  ;;  %v6207_v59 = vsub.f32 %v1335_v19, %v6201_v7  ;;  %v6210_v17 = vsub.f32 %v1334_v29, %v6203_v34  ;;  %v4130_v27 = vpop.eup %4129  ;;  %v7244_v19 = vld [vmem:[#allocation15_spill] sm:$0xff] }
 0x2c8   : > { %2028 = vmatmul.mubr.f32.gmra.mrb[20].mxu1 %v6203_v34  ;;  %v1336_v43 = vsel %vm1304_vm6, %v4130_v27, %v7243_v44  ;;  %v1337_v39 = vsel %vm1305_vm7, %v4130_v27, %v7244_v19 }
 0x2c9   : > { %v6925_v0 = vand.u32 4294901760, %v6207_v59  ;;  %v6924_v26 = vand.u32 4294901760, %v6210_v17  ;;  %v6225_v34 = vand.u32 4294901760, %v1337_v39  ;;  %v1379_v7 = vadd.f32 %v1337_v39, %v1336_v43  ;;  %v1243_v35 = vpop.xlane.xlu0 %1242 }
 0x2ca   : > { %v6227_v18 = vand.u32 4294901760, %v1336_v43  ;;  %v1263_v44 = vmax.f32 %v1243_v35, 1e-20 }
 0x2cb   : > { %v1643_v29 = vsub.f32 %v6207_v59, %v6925_v0  ;;  %v1649_v24 = vsub.f32 %v6210_v17, %v6924_v26  ;;  %7245 = vst [vmem:[#allocation60_spill] sm:$0xff] %v6225_v34  ;;  %2033 = vmatprep.mubr.f32.mxu1 %v6225_v34  ;;  %1380 = vadd.xlane.f32.xlu0 %v1379_v7 }
 0x2cc   : > { %7246 = vst [vmem:[#allocation61_spill] sm:$0xff] %v6227_v18  ;;  %v6231_v23 = vsub.f32 %v1337_v39, %v6225_v34  ;;  %v6234_v27 = vsub.f32 %v1336_v43, %v6227_v18  ;;  %2035 = vmatmul.mubr.f32.gmra.mrb[22].mxu1 %v6227_v18  ;;  %4133 = vrsqrt.f32 %v1263_v44  ;;  %v7248_v39 = vld [vmem:[#allocation12_spill] sm:$0xff]  ;;  %v7251_v18 = vld [vmem:[#allocation19_spill] sm:$0xff] }
 0x2cd   : > { %v1644_v12 = vand.u32 4294901760, %v1643_v29  ;;  %v1650_v50 = vand.u32 4294901760, %v1649_v24  ;;  %vm1306_vm8 = vcmp.eq.f32.partialorder %v7248_v39, %v1240_v63 }
 0x2ce   : > { %7247 = vst [vmem:[#allocation65_spill] sm:$0xff] %v6234_v27  ;;  %v6934_v19 = vand.u32 4294901760, %v6231_v23  ;;  %v6935_v29 = vand.u32 4294901760, %v6234_v27 }
 0x2cf   : > { %1645 = vmatprep.mubr.f32.mxu0 %v1644_v12  ;;  %v4132_v43 = vpop.eup %4131  ;;  %v7249_v12 = vld [vmem:[#allocation13_spill] sm:$0xff] }
 0x2d0   : > { %1651 = vmatmul.mubr.f32.gmra.mrb[20].mxu0 %v1650_v50  ;;  %v1658_v7 = vsub.f32 %v6231_v23, %v6934_v19  ;;  %v1664_v24 = vsub.f32 %v6234_v27, %v6935_v29  ;;  %vm1307_vm9 = vcmp.eq.f32.partialorder %v7249_v12, %v1240_v63  ;;  %v7250_v50 = vld [vmem:[#allocation18_spill] sm:$0xff]  ;;  %v7256_v12 = vld [vmem:[#allocation16_spill] sm:$0xff] }
 0x2d1   : > { %v1338_v0 = vsel %vm1306_vm8, %v4132_v43, %v7250_v50  ;;  %v1339_v34 = vsel %vm1307_vm9, %v4132_v43, %v7251_v18  ;;  %vm1308_vm10 = vcmp.eq.f32.partialorder %v7256_v12, %v1243_v35 }
 0x2d2   : > { %v1659_v26 = vand.u32 4294901760, %v1658_v7  ;;  %v1665_v61 = vand.u32 4294901760, %v1664_v24  ;;  %v1382_v44 = vadd.f32 %v1339_v34, %v1338_v0  ;;  %v6249_v51 = vand.u32 4294901760, %v1339_v34 }
 0x2d3   : > { %v6251_v19 = vand.u32 4294901760, %v1338_v0  ;;  %v1246_v7 = vpop.xlane.xlu1 %1245 }
 0x2d4   : > { %1660 = vmatprep.mubr.f32.mxu0 %v1659_v26  ;;  %7252 = vst [vmem:[#allocation66_spill] sm:$0xff] %v6249_v51  ;;  %1383 = vadd.xlane.f32.xlu1 %v1382_v44  ;;  %v6255_v39 = vsub.f32 %v1339_v34, %v6249_v51  ;;  %v1264_v18 = vmax.f32 %v1246_v7, 1e-20  ;;  %v7259_v44 = vld [vmem:[#allocation23_spill] sm:$0xff] }
 0x2d5   : > { %7253 = vst [vmem:[#allocation67_spill] sm:$0xff] %v6251_v19  ;;  %1666 = vmatmul.mubr.f32.gmra.mrb[22].mxu0 %v1665_v61  ;;  %2040 = vmatprep.mubr.f32.mxu1 %v6249_v51  ;;  %v6258_v63 = vsub.f32 %v1338_v0, %v6251_v19  ;;  %v7257_v61 = vld [vmem:[#allocation17_spill] sm:$0xff]  ;;  %v7258_v0 = vld [vmem:[#allocation22_spill] sm:$0xff] }
 0x2d6   : > { %7254 = vst [vmem:[#allocation68_spill] sm:$0xff] %v6255_v39  ;;  %2042 = vmatmul.mubr.f32.gmra.mrb[24].mxu1 %v6251_v19  ;;  %v6945_v26 = vand.u32 4294901760, %v6255_v39  ;;  %v4134_v43 = vpop.eup %4133  ;;  %vm1309_vm11 = vcmp.eq.f32.partialorder %v7257_v61, %v1243_v35  ;;  %4135 = vrsqrt.f32 %v1264_v18 }
 0x2d7   : > { %7255 = vst [vmem:[#allocation76_spill] sm:$0xff] %v6258_v63  ;;  %v6944_v24 = vand.u32 4294901760, %v6258_v63  ;;  %v1340_v50 = vsel %vm1308_vm10, %v4134_v43, %v7258_v0  ;;  %v1341_v29 = vsel %vm1309_vm11, %v4134_v43, %v7259_v44 }
 0x2d8   : > { %v1673_v34 = vsub.f32 %v6255_v39, %v6945_v26  ;;  %v6273_v45 = vand.u32 4294901760, %v1341_v29  ;;  %v1385_v1 = vadd.f32 %v1341_v29, %v1340_v50  ;;  %v6275_v12 = vand.u32 4294901760, %v1340_v50 }
 0x2d9   : > { %v1679_v19 = vsub.f32 %v6258_v63, %v6944_v24  ;;  %v7264_v24 = vld [vmem:[#allocation26_spill] sm:$0xff] }
 0x2da   : > { %v1674_v51 = vand.u32 4294901760, %v1673_v34  ;;  %7260 = vst [vmem:[#allocation77_spill] sm:$0xff] %v6273_v45  ;;  %7261 = vst [vmem:[#allocation2_spill] sm:$0xff] %v6275_v12  ;;  %2047 = vmatprep.mubr.f32.mxu1 %v6273_v45  ;;  %v6279_v18 = vsub.f32 %v1341_v29, %v6273_v45  ;;  %v6282_v61 = vsub.f32 %v1340_v50, %v6275_v12  ;;  %1386 = vadd.xlane.f32.xlu0 %v1385_v1  ;;  %v7262_v50 = vld [vmem:[#allocation20_spill] sm:$0xff]  ;;  %v7263_v1 = vld [vmem:[#allocation21_spill] sm:$0xff] }
 0x2db   : > { %v1680_v35 = vand.u32 4294901760, %v1679_v19  ;;  %2049 = vmatmul.mubr.f32.gmra.mrb[26].mxu1 %v6275_v12  ;;  %vm1310_vm12 = vcmp.eq.f32.partialorder %v7262_v50, %v1246_v7  ;;  %vm1311_vm13 = vcmp.eq.f32.partialorder %v7263_v1, %v1246_v7  ;;  %v7265_v12 = vld [vmem:[#allocation33_spill] sm:$0xff] }
 0x2dc   : > { %1675 = vmatprep.mubr.f32.mxu0 %v1674_v51  ;;  %v6956_v43 = vand.u32 4294901760, %v6279_v18  ;;  %v6957_v34 = vand.u32 4294901760, %v6282_v61 }
 0x2dd   : > { %1681 = vmatmul.mubr.f32.gmra.mrb[24].mxu0 %v1680_v35  ;;  %v1249_v0 = vpop.xlane.xlu0 %1248 }
 0x2de   : > { %v1265_v44 = vmax.f32 %v1249_v0, 1e-20  ;;  %v1688_v51 = vsub.f32 %v6279_v18, %v6956_v43  ;;  %v1694_v19 = vsub.f32 %v6282_v61, %v6957_v34 }
 0x2e0   : > { %v4136_v29 = vpop.eup %4135  ;;  %4137 = vrsqrt.f32 %v1265_v44  ;;  %v1689_v35 = vand.u32 4294901760, %v1688_v51  ;;  %v1695_v63 = vand.u32 4294901760, %v1694_v19  ;;  %v7269_v51 = vld [vmem:[#allocation25_spill] sm:$0xff] }
 0x2e1   : > { %v1342_v26 = vsel %vm1310_vm12, %v4136_v29, %v7264_v24  ;;  %v1343_v45 = vsel %vm1311_vm13, %v4136_v29, %v7265_v12  ;;  %vm1313_vm15 = vcmp.eq.f32.partialorder %v7269_v51, %v1249_v0  ;;  %v7270_v29 = vld [vmem:[#allocation34_spill] sm:$0xff] }
 0x2e2   : > { %1690 = vmatprep.mubr.f32.mxu0 %v1689_v35  ;;  %v1388_v39 = vadd.f32 %v1343_v45, %v1342_v26  ;;  %v6297_v27 = vand.u32 4294901760, %v1343_v45  ;;  %v6299_v43 = vand.u32 4294901760, %v1342_v26  ;;  %v7271_v35 = vld [vmem:[#allocation27_spill] sm:$0xff] }
 0x2e3   : > { %1696 = vmatmul.mubr.f32.gmra.mrb[26].mxu0 %v1695_v63 }
 0x2e4   : > { %7266 = vst [vmem:[#allocation78_spill] sm:$0xff] %v6297_v27  ;;  %7267 = vst [vmem:[#allocation74_spill] sm:$0xff] %v6299_v43  ;;  %1389 = vadd.xlane.f32.xlu1 %v1388_v39  ;;  %2054 = vmatprep.mubr.f32.mxu1 %v6297_v27  ;;  %v6303_v50 = vsub.f32 %v1343_v45, %v6297_v27  ;;  %v6306_v7 = vsub.f32 %v1342_v26, %v6299_v43  ;;  %v7268_v45 = vld [vmem:[#allocation24_spill] sm:$0xff] }
 0x2e5   : > { %2056 = vmatmul.mubr.f32.gmra.mrb[28].mxu1 %v6299_v43  ;;  %vm1312_vm14 = vcmp.eq.f32.partialorder %v7268_v45, %v1249_v0 }
 0x2e6   : > { %v6962_v24 = vand.u32 4294901760, %v6303_v50  ;;  %v6965_v12 = vand.u32 4294901760, %v6306_v7 }
 0x2e8   : > { %v1703_v44 = vsub.f32 %v6303_v50, %v6962_v24  ;;  %v1709_v39 = vsub.f32 %v6306_v7, %v6965_v12 }
 0x2ea   : > { %v4138_v63 = vpop.eup %4137  ;;  %v1704_v26 = vand.u32 4294901760, %v1703_v44  ;;  %v1710_v19 = vand.u32 4294901760, %v1709_v39  ;;  %v7273_v44 = vand.u32 4294901760, %v5885_v33 }
 0x2eb   : > { %v1344_v1 = vsel %vm1312_vm14, %v4138_v63, %v7270_v29  ;;  %v1345_v34 = vsel %vm1313_vm15, %v4138_v63, %v7271_v35  ;;  %v7277_v35 = vand.u32 4294901760, %v5937_v36 }
 0x2ec   : > { %1705 = vmatprep.mubr.f32.mxu0 %v1704_v26  ;;  %v6321_v43 = vand.u32 4294901760, %v1345_v34  ;;  %v1391_v27 = vadd.f32 %v1345_v34, %v1344_v1  ;;  %v6323_v24 = vand.u32 4294901760, %v1344_v1  ;;  %v7275_v26 = vand.u32 4294901760, %v5942_v14 }
 0x2ed   : > { %1711 = vmatmul.mubr.f32.gmra.mrb[28].mxu0 %v1710_v19 }
 0x2ee   : > { %7272 = vst [vmem:[#allocation75_spill] sm:$0xff] %v6323_v24  ;;  %2061 = vmatprep.mubr.f32.mxu1 %v6321_v43  ;;  %1392 = vadd.xlane.f32.xlu0 %v1391_v27  ;;  %v6327_v45 = vsub.f32 %v1345_v34, %v6321_v43  ;;  %v6330_v0 = vsub.f32 %v1344_v1, %v6323_v24  ;;  %v7274_v34 = vand.u32 4294901760, %v5891_v60  ;;  %v7276_v1 = vld [vmem:[#allocation46_spill] sm:$0xff] }
 0x2ef   : > { %2063 = vmatmul.mubr.f32.gmra.mrb[30].mxu1 %v6323_v24 }
 0x2f0   : > { %2440 = vmatprep.mubr.f32.mxu1 %v7273_v44  ;;  %v6964_v39 = vand.u32 4294901760, %v6327_v45  ;;  %v6963_v63 = vand.u32 4294901760, %v6330_v0  ;;  %v7278_v44 = vand.u32 4294901760, %v5913_v55 }
 0x2f2   : > { %v1718_v51 = vsub.f32 %v6327_v45, %v6964_v39  ;;  %v1724_v27 = vsub.f32 %v6330_v0, %v6963_v63  ;;  %v7281_v39 = vld [vmem:[#allocation36_spill] sm:$0xff] }
 0x2f3   : > { %2444 = vmatmul.mubr.f32.vlgmr.msra.gmra.mrb[32].mxu1 %v7274_v34  ;;  %v7279_v34 = vld [vmem:[#allocation35_spill] sm:$0xff] }
 0x2f4   : > { %2451 = vmatprep.mubr.f32.mxu1 %v7275_v26  ;;  %v1719_v19 = vand.u32 4294901760, %v1718_v51  ;;  %v1725_v29 = vand.u32 4294901760, %v1724_v27  ;;  %3937 = vmatpush3.bf16.msra.mxu1 %v7276_v1  ;;  %v7280_v63 = vand.u32 4294901760, %v7279_v34  ;;  %v7282_v26 = vand.u32 4294901760, %v7281_v39  ;;  %v7283_v27 = vld [vmem:[#allocation37_spill] sm:$0xff]  ;;  %v7285_v1 = vld [vmem:[#allocation38_spill] sm:$0xff] }
 0x2f5   : > { %3939 = vmatprep.subr.bf16.mxu1 %v5193_v16  ;;  %v7284_v12 = vand.u32 4294901760, %v7283_v27  ;;  %v7286_v24 = vand.u32 4294901760, %v7285_v1  ;;  %v7289_v39 = vand.u32 4294901760, %v5977_v47  ;;  %v7305_v27 = vand.u32 4294901760, %v6069_v53 }
 0x2f6   : > { %1720 = vmatprep.mubr.f32.mxu0 %v1719_v19  ;;  %v3904_v51 = vpack.c.bf16 %v7282_v26, %v7280_v63  ;;  %v7287_v19 = vld [vmem:[#allocation54_spill] sm:$0xff]  ;;  %v7290_v63 = vand.u32 4294901760, %v7173_v62  ;;  %v7296_v62 = vld [vmem:[#allocation51_spill] sm:$0xff]  ;;  %v7306_v1 = vand.u32 4294901760, %v7197_v49  ;;  %v7312_v49 = vand.u32 4294901760, %v6110_v48 }
 0x2f7   : > { %1726 = vmatmul.mubr.f32.gmra.mrb[30].mxu0 %v1725_v29  ;;  %2455 = vmatmul.mubr.f32.gmra.mrb[34].mxu1 %v7277_v35  ;;  %v3906_v16 = vpack.c.bf16 %v7286_v24, %v7284_v12  ;;  %v7291_v24 = vand.u32 4294901760, %v7174_v25  ;;  %v7292_v29 = vand.u32 4294901760, %v5100_v58  ;;  %v7295_v35 = vand.u32 4294901760, %v5985_v54 }
 0x2f8   : > { %2198 = vmatprep.mubr.f32.mxu0 %v5885_v33  ;;  %2462 = vmatprep.mubr.f32.mxu1 %v7278_v44  ;;  %v7288_v33 = vand.u32 4294901760, %v5921_v9  ;;  %v7297_v25 = vand.u32 4294901760, %v7296_v62  ;;  %v7298_v44 = vld [vmem:[#allocation52_spill] sm:$0xff]  ;;  %v7326_v62 = vld [vmem:[#allocation73_spill] sm:$0xff] }
 0x2f9   : > { %3941 = vmatpush3.bf16.msra.mxu1 %v7287_v19  ;;  %v3908_v12 = vpack.c.bf16 %v7291_v24, %v7290_v63  ;;  %v7299_v58 = vand.u32 4294901760, %v7298_v44  ;;  %v7309_v19 = vand.u32 4294901760, %v7200_v21  ;;  %v7315_v63 = vld [vmem:[#allocation63_spill] sm:$0xff]  ;;  %v7328_v44 = vld [vmem:[#allocation6_spill] sm:$0xff] }
 0x2fa   : > { %3943 = vmatprep.subr.bf16.mxu1 %v5289_v41  ;;  %v7293_v41 = vand.u32 4294901760, %v7183_v30  ;;  %v7300_v30 = vld [vmem:[#allocation64_spill] sm:$0xff]  ;;  %v7316_v21 = vand.u32 4294901760, %v7315_v63  ;;  %v7371_v63 = vld [vmem:[#allocation39_spill] sm:$0xff] }
 0x2fb   : > { %2201 = vmatmul.mubr.f32.vlgmr.msra.gmra.mrb[32].mxu0 %v5891_v60  ;;  %2466 = vmatmul.mubr.f32.gmra.mrb[36].mxu1 %v7288_v33  ;;  %v3912_v34 = vpack.c.bf16 %v7299_v58, %v7297_v25  ;;  %v7329_v58 = vld [vmem:[#allocation79_spill] sm:$0xff] }
 0x2fc   : > { %3905 = vmatpush3.bf16.msra.mxu0 %v3904_v51  ;;  %2207 = vmatprep.mubr.f32.mxu0 %v5942_v14  ;;  %v3910_v60 = vpack.c.bf16 %v7293_v41, %v7292_v29  ;;  %v7294_v14 = vand.u32 4294901760, %v5980_v38  ;;  %v7303_v51 = vld [vmem:[#allocation69_spill] sm:$0xff]  ;;  %v7321_v41 = vld [vmem:[#allocation84_spill] sm:$0xff] }
 0x2fd   : > { %2473 = vmatprep.mubr.f32.mxu1 %v7289_v39  ;;  %3907 = vmatprep.subr.bf16.mxu0 %v3906_v16 }
 0x2fe   : > { %3945 = vmatpush3.bf16.msra.mxu1 %v5341_v40  ;;  %v7301_v40 = vand.u32 4294901760, %v7195_v56  ;;  %v7307_v56 = vand.u32 4294901760, %v7198_v57  ;;  %v7313_v57 = vld [vmem:[#allocation62_spill] sm:$0xff] }
 0x2ff   : > { %2210 = vmatmul.mubr.f32.gmra.mrb[34].mxu0 %v5937_v36  ;;  %2477 = vmatmul.mubr.f32.gmra.mrb[38].mxu1 %v7294_v14  ;;  %v7302_v36 = vand.u32 4294901760, %v7196_v42  ;;  %v7308_v42 = vld [vmem:[#allocation72_spill] sm:$0xff]  ;;  %v7314_v39 = vand.u32 4294901760, %v7313_v57  ;;  %v7324_v14 = vld [vmem:[#allocation71_spill] sm:$0xff]  ;;  %v7363_v57 = vld [vmem:[#allocation29_spill] sm:$0xff] }
 0x300   : > { %2216 = vmatprep.mubr.f32.mxu0 %v5913_v55  ;;  %2484 = vmatprep.mubr.f32.mxu1 %v7295_v35  ;;  %v7304_v55 = vand.u32 4294901760, %v6000_v15  ;;  %v3916_v16 = vpack.c.bf16 %v7307_v56, %v7306_v1  ;;  %v7325_v35 = vand.u32 4294901760, %v7324_v14  ;;  %v7381_v14 = vld [vmem:[#allocation57_spill] sm:$0xff] }
 0x301   : > { %3909 = vmatpush3.bf16.msra.mxu0 %v3908_v12  ;;  %3947 = vmatprep.subr.bf16.mxu1 %v7300_v30  ;;  %v3914_v26 = vpack.c.bf16 %v7302_v36, %v7301_v40  ;;  %v3920_v24 = vpack.c.bf16 %v7316_v21, %v7314_v39  ;;  %v7333_v36 = vld [vmem:[#allocation85_spill] sm:$0xff]  ;;  %v7364_v39 = vld [vmem:[#allocation32_spill] sm:$0xff] }
 0x302   : > { %3911 = vmatprep.subr.bf16.mxu0 %v3910_v60  ;;  %3949 = vmatpush3.bf16.msra.mxu1 %v7303_v51  ;;  %v7323_v60 = vand.u32 4294901760, %v6121_v20  ;;  %v7336_v51 = vld [vmem:[#allocation82_spill] sm:$0xff]  ;;  %v7372_v21 = vld [vmem:[#allocation44_spill] sm:$0xff] }
 0x303   : > { %2219 = vmatmul.mubr.f32.gmra.mrb[36].mxu0 %v5921_v9  ;;  %2488 = vmatmul.mubr.f32.gmra.mrb[40].mxu1 %v7304_v55  ;;  %v7310_v9 = vand.u32 4294901760, %v7201_v2  ;;  %v7317_v2 = vld [vmem:[#allocation80_spill] sm:$0xff]  ;;  %v7337_v55 = vand.u32 4294901760, %v7336_v51 }
 0x304   : > { %2225 = vmatprep.mubr.f32.mxu0 %v5977_v47  ;;  %2495 = vmatprep.mubr.f32.mxu1 %v7305_v27  ;;  %v7311_v47 = vand.u32 4294901760, %v6077_v5  ;;  %v7338_v27 = vld [vmem:[#allocation83_spill] sm:$0xff] }
 0x305   : > { %3913 = vmatpush3.bf16.msra.mxu0 %v3912_v34  ;;  %3951 = vmatprep.subr.bf16.mxu1 %v7308_v42  ;;  %v3918_v33 = vpack.c.bf16 %v7310_v9, %v7309_v19  ;;  %v7330_v34 = vand.u32 4294901760, %v7329_v58  ;;  %v7339_v1 = vand.u32 4294901760, %v7338_v27  ;;  %v7343_v19 = vand.u32 4294901760, %v6186_v28 }
 0x306   : > { %3915 = vmatprep.subr.bf16.mxu0 %v3914_v26  ;;  %3953 = vmatpush3.bf16.msra.mxu1 %v5600_v13  ;;  %v7318_v13 = vand.u32 4294901760, %v5477_v4  ;;  %v7327_v4 = vand.u32 4294901760, %v7326_v62  ;;  %v7335_v26 = vand.u32 4294901760, %v6159_v8  ;;  %v7382_v62 = vld [vmem:[#allocation58_spill] sm:$0xff] }
 0x307   : > { %2228 = vmatmul.mubr.f32.gmra.mrb[38].mxu0 %v5980_v38  ;;  %2499 = vmatmul.mubr.f32.gmra.mrb[42].mxu1 %v7311_v47  ;;  %v7319_v38 = vld [vmem:[#allocation70_spill] sm:$0xff]  ;;  %v3928_v56 = vpack.c.bf16 %v7339_v1, %v7337_v55  ;;  %v7361_v47 = vand.u32 4294901760, %v6330_v0  ;;  %v7387_v55 = vld [vmem:[#allocation67_spill] sm:$0xff]  ;;  %v7388_v1 = vld [vmem:[#allocation77_spill] sm:$0xff] }
 0x308   : > { %2234 = vmatprep.mubr.f32.mxu0 %v5985_v54  ;;  %2506 = vmatprep.mubr.f32.mxu1 %v7312_v49  ;;  %v7320_v12 = vand.u32 4294901760, %v7319_v38  ;;  %v7322_v54 = vand.u32 4294901760, %v6113_v46  ;;  %v3924_v25 = vpack.c.bf16 %v7327_v4, %v7325_v35  ;;  %v7362_v49 = vld [vmem:[#allocation28_spill] sm:$0xff]  ;;  %v7376_v38 = vld [vmem:[#allocation49_spill] sm:$0xff] }
 0x309   : > { %3917 = vmatpush3.bf16.msra.mxu0 %v3916_v16  ;;  %3955 = vmatprep.subr.bf16.mxu1 %v7317_v2  ;;  %v7341_v16 = vand.u32 4294901760, %v5667_v11  ;;  %v7347_v11 = vand.u32 4294901760, %v6207_v59  ;;  %v7374_v2 = vld [vmem:[#allocation48_spill] sm:$0xff] }
 0x30a   : > { %3919 = vmatprep.subr.bf16.mxu0 %v3918_v33  ;;  %v3922_v29 = vpack.c.bf16 %v7320_v12, %v7318_v13  ;;  %3957 = vmatpush3.bf16.msra.mxu1 %v7321_v41  ;;  %v7375_v13 = vld [vmem:[#allocation45_spill] sm:$0xff]  ;;  %v7377_v12 = vld [vmem:[#allocation50_spill] sm:$0xff]  ;;  %v7379_v41 = vld [vmem:[#allocation55_spill] sm:$0xff] }
 0x30b   : > { %2237 = vmatmul.mubr.f32.gmra.mrb[40].mxu0 %v6000_v15  ;;  %2510 = vmatmul.mubr.f32.gmra.mrb[44].mxu1 %v7322_v54  ;;  %v7331_v15 = vld [vmem:[#allocation81_spill] sm:$0xff]  ;;  %v7380_v54 = vld [vmem:[#allocation56_spill] sm:$0xff] }
 0x30c   : > { %2243 = vmatprep.mubr.f32.mxu0 %v6069_v53  ;;  %2517 = vmatprep.mubr.f32.mxu1 %v7323_v60  ;;  %v7332_v30 = vand.u32 4294901760, %v7331_v15  ;;  %v7334_v53 = vand.u32 4294901760, %v6118_v32 }
 0x30d   : > { %3921 = vmatpush3.bf16.msra.mxu0 %v3920_v24  ;;  %3959 = vmatprep.subr.bf16.mxu1 %v7328_v44  ;;  %v7373_v24 = vld [vmem:[#allocation47_spill] sm:$0xff]  ;;  %v7384_v44 = vld [vmem:[#allocation60_spill] sm:$0xff] }
 0x30e   : > { %3923 = vmatprep.subr.bf16.mxu0 %v3922_v29  ;;  %v3926_v40 = vpack.c.bf16 %v7332_v30, %v7330_v34  ;;  %3961 = vmatpush3.bf16.msra.mxu1 %v7333_v36  ;;  %v7378_v29 = vld [vmem:[#allocation53_spill] sm:$0xff] }
 0x30f   : > { %2246 = vmatmul.mubr.f32.gmra.mrb[42].mxu0 %v6077_v5  ;;  %2521 = vmatmul.mubr.f32.gmra.mrb[46].mxu1 %v7334_v53  ;;  %v7340_v5 = vand.u32 4294901760, %v5664_v22  ;;  %v7346_v22 = vand.u32 4294901760, %v6183_v31  ;;  %v7385_v34 = vld [vmem:[#allocation61_spill] sm:$0xff] }
 0x310   : > { %2252 = vmatprep.mubr.f32.mxu0 %v6110_v48  ;;  %2528 = vmatprep.mubr.f32.mxu1 %v7335_v26  ;;  %v7342_v48 = vand.u32 4294901760, %v6162_v37 }
 0x311   : > { %3925 = vmatpush3.bf16.msra.mxu0 %v3924_v25  ;;  %3963 = vmatprep.subr.bf16.mxu1 %v5705_v52  ;;  %v3930_v42 = vpack.c.bf16 %v7341_v16, %v7340_v5  ;;  %v7344_v52 = vand.u32 4294901760, %v5687_v3  ;;  %v7349_v3 = vand.u32 4294901760, %v6231_v23  ;;  %v7383_v25 = vld [vmem:[#allocation59_spill] sm:$0xff]  ;;  %v7389_v16 = vld [vmem:[#allocation2_spill] sm:$0xff] }
 0x312   : > { %3927 = vmatprep.subr.bf16.mxu0 %v3926_v40  ;;  %3965 = vmatpush3.bf16.msra.mxu1 %v5708_v6  ;;  %v7345_v6 = vand.u32 4294901760, %v5702_v10  ;;  %v7350_v10 = vld [vmem:[#allocation65_spill] sm:$0xff]  ;;  %v7386_v40 = vld [vmem:[#allocation66_spill] sm:$0xff] }
 0x313   : > { %2255 = vmatmul.mubr.f32.gmra.mrb[44].mxu0 %v6113_v46  ;;  %2532 = vmatmul.mubr.f32.gmra.mrb[48].mxu1 %v7342_v48  ;;  %v7351_v46 = vand.u32 4294901760, %v7350_v10 }
 0x314   : > { %2261 = vmatprep.mubr.f32.mxu0 %v6121_v20  ;;  %2539 = vmatprep.mubr.f32.mxu1 %v7343_v19  ;;  %v3932_v9 = vpack.c.bf16 %v7345_v6, %v7344_v52  ;;  %v7348_v20 = vand.u32 4294901760, %v6210_v17  ;;  %v7390_v19 = vld [vmem:[#allocation78_spill] sm:$0xff] }
 0x315   : > { %3929 = vmatpush3.bf16.msra.mxu0 %v3928_v56 }
 0x316   : > { %3931 = vmatprep.subr.bf16.mxu0 %v3930_v42 }
 0x317   : > { %2264 = vmatmul.mubr.f32.gmra.mrb[46].mxu0 %v6118_v32  ;;  %2543 = vmatmul.mubr.f32.gmra.mrb[50].mxu1 %v7346_v22  ;;  %v7352_v32 = vld [vmem:[#allocation68_spill] sm:$0xff] }
 0x318   : > { %2270 = vmatprep.mubr.f32.mxu0 %v6159_v8  ;;  %2550 = vmatprep.mubr.f32.mxu1 %v7347_v11  ;;  %v7353_v8 = vand.u32 4294901760, %v7352_v32  ;;  %v7391_v11 = vld [vmem:[#allocation74_spill] sm:$0xff] }
 0x319   : > { %3933 = vmatpush3.bf16.msra.mxu0 %v3932_v9 }
 0x31b   : > { %2273 = vmatmul.mubr.f32.gmra.mrb[48].mxu0 %v6162_v37  ;;  %2554 = vmatmul.mubr.f32.gmra.mrb[52].mxu1 %v7348_v20  ;;  %v7354_v37 = vld [vmem:[#allocation76_spill] sm:$0xff] }
 0x31c   : > { %2279 = vmatprep.mubr.f32.mxu0 %v6186_v28  ;;  %2561 = vmatprep.mubr.f32.mxu1 %v7349_v3  ;;  %v7355_v33 = vand.u32 4294901760, %v7354_v37  ;;  %v7356_v28 = vand.u32 4294901760, %v6279_v18 }
 0x31f   : > { %2282 = vmatmul.mubr.f32.gmra.mrb[50].mxu0 %v6183_v31  ;;  %2565 = vmatmul.mubr.f32.gmra.mrb[54].mxu1 %v7351_v46  ;;  %v7357_v31 = vand.u32 4294901760, %v6282_v61 }
 0x320   : > { %2288 = vmatprep.mubr.f32.mxu0 %v6207_v59  ;;  %2572 = vmatprep.mubr.f32.mxu1 %v7353_v8  ;;  %v7358_v59 = vand.u32 4294901760, %v6303_v50 }
 0x323   : > { %2291 = vmatmul.mubr.f32.gmra.mrb[52].mxu0 %v6210_v17  ;;  %2576 = vmatmul.mubr.f32.gmra.mrb[56].mxu1 %v7355_v33  ;;  %v7359_v17 = vand.u32 4294901760, %v6306_v7  ;;  %v7392_v33 = vld [vmem:[#allocation75_spill] sm:$0xff] }
 0x324   : > { %2297 = vmatprep.mubr.f32.mxu0 %v6231_v23  ;;  %2583 = vmatprep.mubr.f32.mxu1 %v7356_v28  ;;  %v7360_v23 = vand.u32 4294901760, %v6327_v45 }
 0x327   : > { %2300 = vmatmul.mubr.f32.gmra.mrb[54].mxu0 %v7350_v10  ;;  %2587 = vmatmul.mubr.f32.gmra.mrb[58].mxu1 %v7357_v31 }
 0x328   : > { %2306 = vmatprep.mubr.f32.mxu0 %v7352_v32  ;;  %2594 = vmatprep.mubr.f32.mxu1 %v7358_v59 }
 0x32b   : > { %2309 = vmatmul.mubr.f32.gmra.mrb[56].mxu0 %v7354_v37  ;;  %2598 = vmatmul.mubr.f32.gmra.mrb[60].mxu1 %v7359_v17 }
 0x32c   : > { %2315 = vmatprep.mubr.f32.mxu0 %v6279_v18  ;;  %2605 = vmatprep.mubr.f32.mxu1 %v7360_v23  ;;  %v7365_v18 = vld [vmem:[#allocation41_spill] sm:$0xff] }
 0x32f   : > { %2318 = vmatmul.mubr.f32.gmra.mrb[58].mxu0 %v6282_v61  ;;  %2609 = vmatmul.mubr.f32.gmra.mrb[62].mxu1 %v7361_v47  ;;  %v7366_v61 = vld [vmem:[#allocation30_spill] sm:$0xff] }
 0x330   : > { %2324 = vmatprep.mubr.f32.mxu0 %v6303_v50  ;;  %2984 = vmatprep.mubr.f32.mxu1 %v7362_v49  ;;  %v7367_v50 = vld [vmem:[#allocation31_spill] sm:$0xff] }
 0x333   : > { %2327 = vmatmul.mubr.f32.gmra.mrb[60].mxu0 %v6306_v7  ;;  %2986 = vmatmul.mubr.f32.vlgmr.msra.gmra.mrb[64].mxu1 %v7363_v57  ;;  %v7368_v7 = vld [vmem:[#allocation40_spill] sm:$0xff] }
 0x334   : > { %2333 = vmatprep.mubr.f32.mxu0 %v6327_v45  ;;  %2991 = vmatprep.mubr.f32.mxu1 %v7364_v39  ;;  %v7369_v45 = vld [vmem:[#allocation43_spill] sm:$0xff] }
 0x337   : > { %2336 = vmatmul.mubr.f32.gmra.mrb[62].mxu0 %v6330_v0  ;;  %2993 = vmatmul.mubr.f32.gmra.mrb[66].mxu1 %v7365_v18  ;;  %v7370_v0 = vld [vmem:[#allocation42_spill] sm:$0xff] }
 0x338   : > { %2775 = vmatprep.mubr.f32.mxu0 %v7362_v49  ;;  %2998 = vmatprep.mubr.f32.mxu1 %v7366_v61 }
 0x33b   : > { %2777 = vmatmul.mubr.f32.vlgmr.msra.gmra.mrb[64].mxu0 %v7363_v57  ;;  %3000 = vmatmul.mubr.f32.gmra.mrb[68].mxu1 %v7367_v50 }
 0x33c   : > { %2782 = vmatprep.mubr.f32.mxu0 %v7364_v39  ;;  %3005 = vmatprep.mubr.f32.mxu1 %v7368_v7 }
 0x33f   : > { %2784 = vmatmul.mubr.f32.gmra.mrb[66].mxu0 %v7365_v18  ;;  %3007 = vmatmul.mubr.f32.gmra.mrb[70].mxu1 %v7369_v45 }
 0x340   : > { %2789 = vmatprep.mubr.f32.mxu0 %v7366_v61  ;;  %3012 = vmatprep.mubr.f32.mxu1 %v7370_v0 }
 0x343   : > { %2791 = vmatmul.mubr.f32.gmra.mrb[68].mxu0 %v7367_v50  ;;  %3014 = vmatmul.mubr.f32.gmra.mrb[72].mxu1 %v7371_v63 }
 0x344   : > { %2796 = vmatprep.mubr.f32.mxu0 %v7368_v7  ;;  %3019 = vmatprep.mubr.f32.mxu1 %v7372_v21 }
 0x347   : > { %2798 = vmatmul.mubr.f32.gmra.mrb[70].mxu0 %v7369_v45  ;;  %3021 = vmatmul.mubr.f32.gmra.mrb[74].mxu1 %v7373_v24 }
 0x348   : > { %2803 = vmatprep.mubr.f32.mxu0 %v7370_v0  ;;  %3026 = vmatprep.mubr.f32.mxu1 %v7374_v2 }
 0x34b   : > { %2805 = vmatmul.mubr.f32.gmra.mrb[72].mxu0 %v7371_v63  ;;  %3028 = vmatmul.mubr.f32.gmra.mrb[76].mxu1 %v7375_v13 }
 0x34c   : > { %2810 = vmatprep.mubr.f32.mxu0 %v7372_v21  ;;  %3033 = vmatprep.mubr.f32.mxu1 %v7376_v38 }
 0x34f   : > { %2812 = vmatmul.mubr.f32.gmra.mrb[74].mxu0 %v7373_v24  ;;  %3035 = vmatmul.mubr.f32.gmra.mrb[78].mxu1 %v7377_v12 }
 0x350   : > { %2817 = vmatprep.mubr.f32.mxu0 %v7374_v2  ;;  %3040 = vmatprep.mubr.f32.mxu1 %v7378_v29 }
 0x353   : > { %2819 = vmatmul.mubr.f32.gmra.mrb[76].mxu0 %v7375_v13  ;;  %3042 = vmatmul.mubr.f32.gmra.mrb[80].mxu1 %v7379_v41 }
 0x354   : > { %2824 = vmatprep.mubr.f32.mxu0 %v7376_v38  ;;  %3047 = vmatprep.mubr.f32.mxu1 %v7380_v54 }
 0x357   : > { %v3406_v60 = vpop.f32.mrb[0].mxu1  ;;  %2826 = vmatmul.mubr.f32.gmra.mrb[78].mxu0 %v7377_v12  ;;  %3049 = vmatmul.mubr.f32.gmra.mrb[82].mxu1 %v7381_v14 }
 0x358   : > { %v3407_v35 = vpop.f32.mrb[1].mxu1  ;;  %2831 = vmatprep.mubr.f32.mxu0 %v7378_v29  ;;  %3054 = vmatprep.mubr.f32.mxu1 %v7382_v62 }
 0x359   : > { %v3408_v4 = vadd.f32 %v3407_v35, %v3406_v60 }
 0x35b   : > { %2833 = vmatmul.mubr.f32.gmra.mrb[80].mxu0 %v7379_v41  ;;  %3056 = vmatmul.mubr.f32.gmra.mrb[84].mxu1 %v7383_v25 }
 0x35c   : > { %2838 = vmatprep.mubr.f32.mxu0 %v7380_v54  ;;  %3061 = vmatprep.mubr.f32.mxu1 %v7384_v44 }
 0x35f   : > { %2840 = vmatmul.mubr.f32.gmra.mrb[82].mxu0 %v7381_v14  ;;  %3063 = vmatmul.mubr.f32.gmra.mrb[86].mxu1 %v7385_v34  ;;  %v3409_v15 = vpop.f32.mrb[2].mxu1 }
 0x360   : > { %v3326_v58 = vpop.f32.mrb[0].mxu0  ;;  %2845 = vmatprep.mubr.f32.mxu0 %v7382_v62  ;;  %3068 = vmatprep.mubr.f32.mxu1 %v7386_v40  ;;  %v3410_v53 = vpop.f32.mrb[3].mxu1 }
 0x361   : > { %v3327_v30 = vpop.f32.mrb[1].mxu0  ;;  %v3411_v26 = vadd.f32 %v3410_v53, %v3409_v15 }
 0x362   : > { %v3328_v36 = vadd.f32 %v3327_v30, %v3326_v58 }
 0x363   : > { %2847 = vmatmul.mubr.f32.gmra.mrb[84].mxu0 %v7383_v25  ;;  %3070 = vmatmul.mubr.f32.gmra.mrb[88].mxu1 %v7387_v55  ;;  %v3412_v27 = vpop.f32.mrb[4].mxu1 }
 0x364   : > { %v6558_v51 = vadd.f32 %v3408_v4, %v3328_v36  ;;  %2852 = vmatprep.mubr.f32.mxu0 %v7384_v44  ;;  %3075 = vmatprep.mubr.f32.mxu1 %v7388_v1  ;;  %v3413_v56 = vpop.f32.mrb[5].mxu1 }
 0x365   : > { %v3414_v5 = vadd.f32 %v3413_v56, %v3412_v27 }
 0x367   : > { %2854 = vmatmul.mubr.f32.gmra.mrb[86].mxu0 %v7385_v34  ;;  %3077 = vmatmul.mubr.f32.gmra.mrb[90].mxu1 %v7389_v16 }
 0x368   : > { %v3329_v42 = vpop.f32.mrb[2].mxu0  ;;  %2859 = vmatprep.mubr.f32.mxu0 %v7386_v40  ;;  %3082 = vmatprep.mubr.f32.mxu1 %v7390_v19 }
 0x369   : > { %v3415_v48 = vpop.f32.mrb[6].mxu1  ;;  %v3330_v52 = vpop.f32.mrb[3].mxu0 }
 0x36a   : > { %v3416_v6 = vpop.f32.mrb[7].mxu1  ;;  %v3331_v9 = vadd.f32 %v3330_v52, %v3329_v42 }
 0x36b   : > { %v3417_v22 = vadd.f32 %v3416_v6, %v3415_v48  ;;  %2861 = vmatmul.mubr.f32.gmra.mrb[88].mxu0 %v7387_v55  ;;  %3084 = vmatmul.mubr.f32.gmra.mrb[92].mxu1 %v7391_v11 }
 0x36c   : > { %v6570_v20 = vadd.f32 %v3411_v26, %v3331_v9  ;;  %v3332_v3 = vpop.f32.mrb[4].mxu0  ;;  %2866 = vmatprep.mubr.f32.mxu0 %v7388_v1  ;;  %3089 = vmatprep.mubr.f32.mxu1 %v6321_v43 }
 0x36d   : > { %v3418_v10 = vpop.f32.mrb[8].mxu1  ;;  %v3333_v46 = vpop.f32.mrb[5].mxu0 }
 0x36e   : > { %v3419_v32 = vpop.f32.mrb[9].mxu1  ;;  %v3334_v8 = vadd.f32 %v3333_v46, %v3332_v3 }
 0x36f   : > { %v3420_v37 = vadd.f32 %v3419_v32, %v3418_v10  ;;  %2868 = vmatmul.mubr.f32.gmra.mrb[90].mxu0 %v7389_v16  ;;  %3091 = vmatmul.mubr.f32.gmra.mrb[94].mxu1 %v7392_v33 }
 0x370   : > { %v6576_v28 = vadd.f32 %v3414_v5, %v3334_v8  ;;  %v3335_v31 = vpop.f32.mrb[6].mxu0  ;;  %2873 = vmatprep.mubr.f32.mxu0 %v7390_v19 }
 0x371   : > { %v3336_v59 = vpop.f32.mrb[7].mxu0 }
 0x372   : > { %v3337_v17 = vadd.f32 %v3336_v59, %v3335_v31 }
 0x373   : > { %2875 = vmatmul.mubr.f32.gmra.mrb[92].mxu0 %v7391_v11 }
 0x374   : > { %v6580_v23 = vadd.f32 %v3417_v22, %v3337_v17  ;;  %2880 = vmatprep.mubr.f32.mxu0 %v6321_v43 }
 0x375   : > { %v3338_v47 = vpop.f32.mrb[8].mxu0 }
 0x376   : > { %v3339_v49 = vpop.f32.mrb[9].mxu0 }
 0x377   : > { %v3421_v57 = vpop.f32.mrb[10].mxu1  ;;  %v3340_v39 = vadd.f32 %v3339_v49, %v3338_v47  ;;  %2882 = vmatmul.mubr.f32.gmra.mrb[94].mxu0 %v7392_v33 }
 0x378   : > { %v3422_v18 = vpop.f32.mrb[11].mxu1 }
 0x379   : > { %v3423_v61 = vadd.f32 %v3422_v18, %v3421_v57  ;;  %v6584_v50 = vadd.f32 %v3420_v37, %v3340_v39 }
 0x37b   : > { %v3424_v7 = vpop.f32.mrb[12].mxu1 }
 0x37c   : > { %v3425_v45 = vpop.f32.mrb[13].mxu1 }
 0x37d   : > { %v3426_v0 = vadd.f32 %v3425_v45, %v3424_v7 }
 0x37f   : > { %v3427_v21 = vpop.f32.mrb[14].mxu1 }
 0x380   : > { %v3341_v63 = vpop.f32.mrb[10].mxu0  ;;  %v3428_v13 = vpop.f32.mrb[15].mxu1 }
 0x381   : > { %v3342_v24 = vpop.f32.mrb[11].mxu0  ;;  %v3429_v38 = vadd.f32 %v3428_v13, %v3427_v21 }
 0x382   : > { %v3343_v2 = vadd.f32 %v3342_v24, %v3341_v63 }
 0x384   : > { %v6586_v12 = vadd.f32 %v3423_v61, %v3343_v2  ;;  %v3344_v43 = vpop.f32.mrb[12].mxu0 }
 0x385   : > { %v3345_v29 = vpop.f32.mrb[13].mxu0 }
 0x386   : > { %v3430_v41 = vpop.f32.mrb[16].mxu1  ;;  %v3346_v54 = vadd.f32 %v3345_v29, %v3344_v43 }
 0x387   : > { %v3431_v60 = vpop.f32.mrb[17].mxu1 }
 0x388   : > { %v3432_v14 = vadd.f32 %v3431_v60, %v3430_v41  ;;  %v6588_v35 = vadd.f32 %v3426_v0, %v3346_v54  ;;  %v3347_v62 = vpop.f32.mrb[14].mxu0 }
 0x389   : > { %v3348_v4 = vpop.f32.mrb[15].mxu0 }
 0x38a   : > { %v3349_v25 = vadd.f32 %v3348_v4, %v3347_v62 }
 0x38c   : > { %v6590_v44 = vadd.f32 %v3429_v38, %v3349_v25 }
 0x38e   : > { %v3350_v58 = vpop.f32.mrb[16].mxu0 }
 0x38f   : > { %v3351_v34 = vpop.f32.mrb[17].mxu0 }
 0x390   : > { %v3352_v30 = vadd.f32 %v3351_v34, %v3350_v58 }
 0x391   : > { %v3433_v15 = vpop.f32.mrb[18].mxu1 }
 0x392   : > { %v3434_v40 = vpop.f32.mrb[19].mxu1  ;;  %v6592_v53 = vadd.f32 %v3432_v14, %v3352_v30 }
 0x393   : > { %v3435_v36 = vadd.f32 %v3434_v40, %v3433_v15 }
 0x399   : > { %v3353_v26 = vpop.f32.mrb[18].mxu0 }
 0x39a   : > { %v3354_v55 = vpop.f32.mrb[19].mxu0 }
 0x39b   : > { %v3355_v27 = vadd.f32 %v3354_v55, %v3353_v26  ;;  %v3436_v1 = vpop.f32.mrb[20].mxu1 }
 0x39c   : > { %v3437_v56 = vpop.f32.mrb[21].mxu1 }
 0x39d   : > { %v6594_v5 = vadd.f32 %v3435_v36, %v3355_v27  ;;  %v3438_v16 = vadd.f32 %v3437_v56, %v3436_v1 }
 0x39f   : > { %v3439_v42 = vpop.f32.mrb[22].mxu1 }
 0x3a0   : > { %v3440_v19 = vpop.f32.mrb[23].mxu1 }
 0x3a1   : > { %v3441_v52 = vadd.f32 %v3440_v19, %v3439_v42 }
 0x3a3   : > { %v3356_v48 = vpop.f32.mrb[20].mxu0 }
 0x3a4   : > { %v3357_v6 = vpop.f32.mrb[21].mxu0 }
 0x3a5   : > { %v3358_v9 = vadd.f32 %v3357_v6, %v3356_v48 }
 0x3a7   : > { %v6596_v22 = vadd.f32 %v3438_v16, %v3358_v9 }
 0x3a8   : > { %v3359_v11 = vpop.f32.mrb[22].mxu0 }
 0x3a9   : > { %v3360_v3 = vpop.f32.mrb[23].mxu0  ;;  %v3442_v46 = vpop.f32.mrb[24].mxu1 }
 0x3aa   : > { %v3361_v10 = vadd.f32 %v3360_v3, %v3359_v11  ;;  %v3443_v32 = vpop.f32.mrb[25].mxu1 }
 0x3ab   : > { %v3444_v37 = vadd.f32 %v3443_v32, %v3442_v46 }
 0x3ac   : > { %v6598_v8 = vadd.f32 %v3441_v52, %v3361_v10 }
 0x3ae   : > { %v3445_v31 = vpop.f32.mrb[26].mxu1 }
 0x3af   : > { %v3446_v47 = vpop.f32.mrb[27].mxu1 }
 0x3b0   : > { %v3362_v33 = vpop.f32.mrb[24].mxu0  ;;  %v3447_v49 = vadd.f32 %v3446_v47, %v3445_v31 }
 0x3b1   : > { %v3363_v59 = vpop.f32.mrb[25].mxu0 }
 0x3b2   : > { %v3364_v17 = vadd.f32 %v3363_v59, %v3362_v33 }
 0x3b4   : > { %v6600_v57 = vadd.f32 %v3444_v37, %v3364_v17 }
 0x3b6   : > { %v3365_v39 = vpop.f32.mrb[26].mxu0 }
 0x3b7   : > { %v3366_v18 = vpop.f32.mrb[27].mxu0 }
 0x3b8   : > { %v3367_v61 = vadd.f32 %v3366_v18, %v3365_v39  ;;  %v3448_v7 = vpop.f32.mrb[28].mxu1 }
 0x3b9   : > { %v3449_v45 = vpop.f32.mrb[29].mxu1 }
 0x3ba   : > { %v6602_v0 = vadd.f32 %v3447_v49, %v3367_v61  ;;  %v3450_v63 = vadd.f32 %v3449_v45, %v3448_v7 }
 0x3c0   : > { %v3368_v21 = vpop.f32.mrb[28].mxu0 }
 0x3c1   : > { %v3369_v24 = vpop.f32.mrb[29].mxu0 }
 0x3c2   : > { %v3370_v2 = vadd.f32 %v3369_v24, %v3368_v21  ;;  %v3451_v13 = vpop.f32.mrb[30].mxu1 }
 0x3c3   : > { %v3452_v38 = vpop.f32.mrb[31].mxu1 }
 0x3c4   : > { %v6604_v43 = vadd.f32 %v3450_v63, %v3370_v2  ;;  %v3453_v29 = vadd.f32 %v3452_v38, %v3451_v13 }
 0x3c6   : > { %v3566_v41 = vpop.f32.mrb[32].mxu1 }
 0x3c7   : > { %v3567_v54 = vpop.f32.mrb[33].mxu1 }
 0x3c8   : > { %v3568_v60 = vadd.f32 %v3567_v54, %v3566_v41 }
 0x3ca   : > { %v3371_v14 = vpop.f32.mrb[30].mxu0  ;;  %v3569_v62 = vpop.f32.mrb[34].mxu1 }
 0x3cb   : > { %v3372_v4 = vpop.f32.mrb[31].mxu0  ;;  %v3570_v25 = vpop.f32.mrb[35].mxu1 }
 0x3cc   : > { %v3373_v58 = vadd.f32 %v3372_v4, %v3371_v14  ;;  %v3571_v34 = vadd.f32 %v3570_v25, %v3569_v62 }
 0x3ce   : > { %v6606_v15 = vadd.f32 %v3453_v29, %v3373_v58  ;;  %v3486_v30 = vpop.f32.mrb[32].mxu0  ;;  %v3572_v40 = vpop.f32.mrb[36].mxu1 }
 0x3cf   : > { %v3487_v36 = vpop.f32.mrb[33].mxu0  ;;  %v3573_v26 = vpop.f32.mrb[37].mxu1 }
 0x3d0   : > { %v3488_v55 = vadd.f32 %v3487_v36, %v3486_v30  ;;  %v3574_v27 = vadd.f32 %v3573_v26, %v3572_v40 }
 0x3d2   : > { %v2203_v1 = vadd.f32 %v3488_v55, %v6558_v51  ;;  %v3489_v56 = vpop.f32.mrb[34].mxu0  ;;  %v3575_v16 = vpop.f32.mrb[38].mxu1 }
 0x3d3   : > { %v3490_v42 = vpop.f32.mrb[35].mxu0  ;;  %v3576_v48 = vpop.f32.mrb[39].mxu1 }
 0x3d4   : > { %v3491_v19 = vadd.f32 %v3490_v42, %v3489_v56  ;;  %v3577_v52 = vadd.f32 %v3576_v48, %v3575_v16  ;;  %v6609_v6 = vadd.f32 %v3568_v60, %v2203_v1 }
 0x3d6   : > { %v2212_v9 = vadd.f32 %v3491_v19, %v6570_v20  ;;  %v3492_v11 = vpop.f32.mrb[36].mxu0  ;;  %v3578_v3 = vpop.f32.mrb[40].mxu1 }
 0x3d7   : > { %v3493_v10 = vpop.f32.mrb[37].mxu0  ;;  %v3579_v46 = vpop.f32.mrb[41].mxu1 }
 0x3d8   : > { %v3494_v32 = vadd.f32 %v3493_v10, %v3492_v11  ;;  %v3580_v37 = vadd.f32 %v3579_v46, %v3578_v3  ;;  %v6612_v33 = vadd.f32 %v3571_v34, %v2212_v9 }
 0x3da   : > { %v2221_v51 = vadd.f32 %v3494_v32, %v6576_v28  ;;  %v3495_v31 = vpop.f32.mrb[38].mxu0  ;;  %v3581_v59 = vpop.f32.mrb[42].mxu1 }
 0x3db   : > { %v3496_v17 = vpop.f32.mrb[39].mxu0  ;;  %v3582_v47 = vpop.f32.mrb[43].mxu1 }
 0x3dc   : > { %v3497_v49 = vadd.f32 %v3496_v17, %v3495_v31  ;;  %v3583_v39 = vadd.f32 %v3582_v47, %v3581_v59  ;;  %v6615_v18 = vadd.f32 %v3574_v27, %v2221_v51 }
 0x3de   : > { %v2230_v20 = vadd.f32 %v3497_v49, %v6580_v23  ;;  %v3498_v61 = vpop.f32.mrb[40].mxu0  ;;  %v3584_v7 = vpop.f32.mrb[44].mxu1 }
 0x3df   : > { %v3499_v45 = vpop.f32.mrb[41].mxu0  ;;  %v3585_v63 = vpop.f32.mrb[45].mxu1 }
 0x3e0   : > { %v3500_v21 = vadd.f32 %v3499_v45, %v3498_v61  ;;  %v3586_v24 = vadd.f32 %v3585_v63, %v3584_v7  ;;  %v6618_v2 = vadd.f32 %v3577_v52, %v2230_v20 }
 0x3e2   : > { %v2239_v28 = vadd.f32 %v3500_v21, %v6584_v50  ;;  %v3501_v13 = vpop.f32.mrb[42].mxu0  ;;  %v3587_v38 = vpop.f32.mrb[46].mxu1 }
 0x3e3   : > { %v3502_v29 = vpop.f32.mrb[43].mxu0  ;;  %v3588_v41 = vpop.f32.mrb[47].mxu1 }
 0x3e4   : > { %v3503_v54 = vadd.f32 %v3502_v29, %v3501_v13  ;;  %v3589_v60 = vadd.f32 %v3588_v41, %v3587_v38  ;;  %v6621_v14 = vadd.f32 %v3580_v37, %v2239_v28 }
 0x3e6   : > { %v2248_v23 = vadd.f32 %v3503_v54, %v6586_v12  ;;  %v3504_v62 = vpop.f32.mrb[44].mxu0  ;;  %v3590_v4 = vpop.f32.mrb[48].mxu1 }
 0x3e7   : > { %v3505_v25 = vpop.f32.mrb[45].mxu0  ;;  %v3591_v58 = vpop.f32.mrb[49].mxu1 }
 0x3e8   : > { %v3506_v34 = vadd.f32 %v3505_v25, %v3504_v62  ;;  %v3592_v30 = vadd.f32 %v3591_v58, %v3590_v4  ;;  %v6624_v40 = vadd.f32 %v3583_v39, %v2248_v23 }
 0x3ea   : > { %v2257_v50 = vadd.f32 %v3506_v34, %v6588_v35  ;;  %v3507_v36 = vpop.f32.mrb[46].mxu0  ;;  %v3593_v26 = vpop.f32.mrb[50].mxu1 }
 0x3eb   : > { %v3508_v55 = vpop.f32.mrb[47].mxu0  ;;  %v3594_v27 = vpop.f32.mrb[51].mxu1 }
 0x3ec   : > { %v3509_v1 = vadd.f32 %v3508_v55, %v3507_v36  ;;  %v3595_v56 = vadd.f32 %v3594_v27, %v3593_v26  ;;  %v6627_v16 = vadd.f32 %v3586_v24, %v2257_v50 }
 0x3ee   : > { %v2266_v12 = vadd.f32 %v3509_v1, %v6590_v44  ;;  %v3510_v42 = vpop.f32.mrb[48].mxu0  ;;  %v3596_v48 = vpop.f32.mrb[52].mxu1 }
 0x3ef   : > { %v3511_v19 = vpop.f32.mrb[49].mxu0  ;;  %v3597_v52 = vpop.f32.mrb[53].mxu1 }
 0x3f0   : > { %v3512_v9 = vadd.f32 %v3511_v19, %v3510_v42  ;;  %v3598_v11 = vadd.f32 %v3597_v52, %v3596_v48  ;;  %v6630_v3 = vadd.f32 %v3589_v60, %v2266_v12  ;;  %v1348_v12 = vpop.xlane.xlu1 %1347 }
 0x3f1   : > { %4139 = vrcp.f32 %v1348_v12 }
 0x3f2   : > { %v2275_v35 = vadd.f32 %v3512_v9, %v6592_v53  ;;  %v3513_v10 = vpop.f32.mrb[50].mxu0  ;;  %v3599_v46 = vpop.f32.mrb[54].mxu1 }
 0x3f3   : > { %v3514_v32 = vpop.f32.mrb[51].mxu0  ;;  %v3600_v37 = vpop.f32.mrb[55].mxu1 }
 0x3f4   : > { %v3515_v51 = vadd.f32 %v3514_v32, %v3513_v10  ;;  %v3601_v31 = vadd.f32 %v3600_v37, %v3599_v46  ;;  %v6633_v59 = vadd.f32 %v3592_v30, %v2275_v35  ;;  %v1351_v10 = vpop.xlane.xlu0 %1350 }
 0x3f5   : > { %4141 = vrcp.f32 %v1351_v10 }
 0x3f6   : > { %v2284_v44 = vadd.f32 %v3515_v51, %v6594_v5  ;;  %v3516_v17 = vpop.f32.mrb[52].mxu0  ;;  %v3602_v47 = vpop.f32.mrb[56].mxu1 }
 0x3f7   : > { %v3517_v49 = vpop.f32.mrb[53].mxu0  ;;  %v3603_v39 = vpop.f32.mrb[57].mxu1 }
 0x3f8   : > { %v3518_v20 = vadd.f32 %v3517_v49, %v3516_v17  ;;  %v3604_v61 = vadd.f32 %v3603_v39, %v3602_v47  ;;  %v6636_v7 = vadd.f32 %v3595_v56, %v2284_v44  ;;  %v1354_v47 = vpop.xlane.xlu1 %1353 }
 0x3f9   : > { %4143 = vrcp.f32 %v1354_v47 }
 0x3fa   : > { %v2293_v53 = vadd.f32 %v3518_v20, %v6596_v22  ;;  %v3519_v45 = vpop.f32.mrb[54].mxu0  ;;  %v3605_v63 = vpop.f32.mrb[58].mxu1 }
 0x3fb   : > { %v3520_v21 = vpop.f32.mrb[55].mxu0  ;;  %v3606_v24 = vpop.f32.mrb[59].mxu1 }
 0x3fc   : > { %v3521_v28 = vadd.f32 %v3520_v21, %v3519_v45  ;;  %v3607_v13 = vadd.f32 %v3606_v24, %v3605_v63  ;;  %v6639_v38 = vadd.f32 %v3598_v11, %v2293_v53  ;;  %v1357_v21 = vpop.xlane.xlu0 %1356 }
 0x3fd   : > { %4145 = vrcp.f32 %v1357_v21 }
 0x3fe   : > { %v2302_v5 = vadd.f32 %v3521_v28, %v6598_v8  ;;  %v3522_v29 = vpop.f32.mrb[56].mxu0  ;;  %v3608_v41 = vpop.f32.mrb[60].mxu1 }
 0x3ff   : > { %v3523_v54 = vpop.f32.mrb[57].mxu0  ;;  %v3609_v60 = vpop.f32.mrb[61].mxu1 }
 0x400   : > { %v3524_v23 = vadd.f32 %v3523_v54, %v3522_v29  ;;  %v3610_v62 = vadd.f32 %v3609_v60, %v3608_v41  ;;  %v6642_v4 = vadd.f32 %v3601_v31, %v2302_v5 }
 0x402   : > { %v2311_v22 = vadd.f32 %v3524_v23, %v6600_v57  ;;  %v3525_v25 = vpop.f32.mrb[58].mxu0  ;;  %v3611_v58 = vpop.f32.mrb[62].mxu1 }
 0x403   : > { %v3526_v34 = vpop.f32.mrb[59].mxu0  ;;  %v3612_v30 = vpop.f32.mrb[63].mxu1 }
 0x404   : > { %v3527_v50 = vadd.f32 %v3526_v34, %v3525_v25  ;;  %v3613_v36 = vadd.f32 %v3612_v30, %v3611_v58  ;;  %v6645_v26 = vadd.f32 %v3604_v61, %v2311_v22  ;;  %v1360_v23 = vpop.xlane.xlu1 %1359 }
 0x405   : > { %4147 = vrcp.f32 %v1360_v23 }
 0x406   : > { %v2320_v8 = vadd.f32 %v3527_v50, %v6602_v0  ;;  %v3528_v55 = vpop.f32.mrb[60].mxu0  ;;  %v3726_v27 = vpop.f32.mrb[64].mxu1 }
 0x407   : > { %v3529_v1 = vpop.f32.mrb[61].mxu0  ;;  %v3727_v56 = vpop.f32.mrb[65].mxu1 }
 0x408   : > { %v3530_v42 = vadd.f32 %v3529_v1, %v3528_v55  ;;  %v3728_v48 = vadd.f32 %v3727_v56, %v3726_v27  ;;  %v6648_v19 = vadd.f32 %v3607_v13, %v2320_v8  ;;  %v4140_v13 = vpop.eup %4139  ;;  %v1363_v55 = vpop.xlane.xlu0 %1362 }
 0x409   : > { %v4142_v58 = vpop.eup %4141  ;;  %4149 = vrcp.f32 %v1363_v55 }
 0x40a   : > { %v2329_v57 = vadd.f32 %v3530_v42, %v6604_v43  ;;  %v3531_v52 = vpop.f32.mrb[62].mxu0  ;;  %v3729_v9 = vpop.f32.mrb[66].mxu1 }
 0x40b   : > { %v3532_v11 = vpop.f32.mrb[63].mxu0  ;;  %v3730_v35 = vpop.f32.mrb[67].mxu1 }
 0x40c   : > { %v3533_v46 = vadd.f32 %v3532_v11, %v3531_v52  ;;  %v3731_v32 = vadd.f32 %v3730_v35, %v3729_v9  ;;  %v6651_v0 = vadd.f32 %v3610_v62, %v2329_v57  ;;  %v4144_v12 = vpop.eup %4143  ;;  %v1366_v11 = vpop.xlane.xlu1 %1365 }
 0x40d   : > { %4151 = vrcp.f32 %v1366_v11  ;;  %v1369_v47 = vpop.xlane.xlu0 %1368 }
 0x40e   : > { %v2338_v37 = vadd.f32 %v3533_v46, %v6606_v15  ;;  %v3646_v51 = vpop.f32.mrb[64].mxu0  ;;  %v3732_v31 = vpop.f32.mrb[68].mxu1  ;;  %4153 = vrcp.f32 %v1369_v47 }
 0x40f   : > { %v3647_v44 = vpop.f32.mrb[65].mxu0  ;;  %v3733_v17 = vpop.f32.mrb[69].mxu1 }
 0x410   : > { %v3648_v43 = vadd.f32 %v3647_v44, %v3646_v51  ;;  %v3734_v49 = vadd.f32 %v3733_v17, %v3732_v31  ;;  %v6654_v39 = vadd.f32 %v3613_v36, %v2338_v37 }
 0x412   : > { %v2779_v20 = vadd.f32 %v3648_v43, %v6609_v6  ;;  %v3649_v61 = vpop.f32.mrb[66].mxu0  ;;  %v3735_v53 = vpop.f32.mrb[70].mxu1 }
 0x413   : > { %v3650_v45 = vpop.f32.mrb[67].mxu0  ;;  %v3736_v63 = vpop.f32.mrb[71].mxu1 }
 0x414   : > { %v2988_v15 = vadd.f32 %v3728_v48, %v2779_v20  ;;  %v3651_v24 = vadd.f32 %v3650_v45, %v3649_v61  ;;  %v3737_v28 = vadd.f32 %v3736_v63, %v3735_v53 }
 0x416   : > { %v3128_v5 = vmul.f32 %v4140_v13, %v2988_v15  ;;  %v2786_v6 = vadd.f32 %v3651_v24, %v6612_v33  ;;  %v3652_v29 = vpop.f32.mrb[68].mxu0  ;;  %v3738_v41 = vpop.f32.mrb[72].mxu1 }
 0x417   : > { %v3653_v54 = vpop.f32.mrb[69].mxu0  ;;  %v3739_v60 = vpop.f32.mrb[73].mxu1 }
 0x418   : > { %3145 = vst.msk [vmem:[%s6662_s9] sm:$0xff] %vm3144_vm0, %v3128_v5  ;;  %v2995_v62 = vadd.f32 %v3731_v32, %v2786_v6  ;;  %v3654_v22 = vadd.f32 %v3653_v54, %v3652_v29  ;;  %v3740_v25 = vadd.f32 %v3739_v60, %v3738_v41  ;;  %v4146_v32 = vpop.eup %4145  ;;  %v1372_v24 = vpop.xlane.xlu1 %1371 }
 0x419   : > { %v4148_v61 = vpop.eup %4147  ;;  %4155 = vrcp.f32 %v1372_v24 }
 0x41a   : > { %v3129_v34 = vmul.f32 %v4142_v58, %v2995_v62  ;;  %v2793_v30 = vadd.f32 %v3654_v22, %v6615_v18  ;;  %v3655_v50 = vpop.f32.mrb[70].mxu0  ;;  %v3741_v36 = vpop.f32.mrb[74].mxu1 }
 0x41b   : > { %v3656_v33 = vpop.f32.mrb[71].mxu0  ;;  %v3742_v8 = vpop.f32.mrb[75].mxu1 }
 0x41c   : > { %3146 = vst.msk [vmem:[%s6662_s9 + $0x8] sm:$0xff] %vm3144_vm0, %v3129_v34  ;;  %v3002_v27 = vadd.f32 %v3734_v49, %v2793_v30  ;;  %v3657_v1 = vadd.f32 %v3656_v33, %v3655_v50  ;;  %v3743_v56 = vadd.f32 %v3742_v8, %v3741_v36  ;;  %v4150_v6 = vpop.eup %4149  ;;  %v1375_v62 = vpop.xlane.xlu0 %1374 }
 0x41d   : > { %v4152_v34 = vpop.eup %4151  ;;  %4157 = vrcp.f32 %v1375_v62  ;;  %v1378_v55 = vpop.xlane.xlu1 %1377 }
 0x41e   : > { %v3130_v42 = vmul.f32 %v4144_v12, %v3002_v27  ;;  %v2800_v48 = vadd.f32 %v3657_v1, %v6618_v2  ;;  %v3658_v57 = vpop.f32.mrb[72].mxu0  ;;  %v3744_v52 = vpop.f32.mrb[76].mxu1  ;;  %4159 = vrcp.f32 %v1378_v55 }
 0x41f   : > { %v3659_v18 = vpop.f32.mrb[73].mxu0  ;;  %v3745_v9 = vpop.f32.mrb[77].mxu1 }
 0x420   : > { %3147 = vst.msk [vmem:[%s6662_s9 + $0x10] sm:$0xff] %vm3144_vm0, %v3130_v42  ;;  %v3009_v35 = vadd.f32 %v3737_v28, %v2800_v48  ;;  %v3660_v10 = vadd.f32 %v3659_v18, %v3658_v57  ;;  %v3746_v46 = vadd.f32 %v3745_v9, %v3744_v52  ;;  %v4154_v12 = vpop.eup %4153  ;;  %v1381_v9 = vpop.xlane.xlu0 %1380 }
 0x421   : > { %4161 = vrcp.f32 %v1381_v9 }
 0x422   : > { %v3131_v37 = vmul.f32 %v4146_v32, %v3009_v35  ;;  %v2807_v51 = vadd.f32 %v3660_v10, %v6621_v14  ;;  %v3661_v31 = vpop.f32.mrb[74].mxu0  ;;  %v3747_v44 = vpop.f32.mrb[78].mxu1 }
 0x423   : > { %v3662_v2 = vpop.f32.mrb[75].mxu0  ;;  %v3748_v17 = vpop.f32.mrb[79].mxu1 }
 0x424   : > { %3148 = vst.msk [vmem:[%s6662_s9 + $0x18] sm:$0xff] %vm3144_vm0, %v3131_v37  ;;  %v3016_v43 = vadd.f32 %v3740_v25, %v2807_v51  ;;  %v3663_v49 = vadd.f32 %v3662_v2, %v3661_v31  ;;  %v3749_v20 = vadd.f32 %v3748_v17, %v3747_v44  ;;  %v1384_v2 = vpop.xlane.xlu1 %1383 }
 0x425   : > { %4163 = vrcp.f32 %v1384_v2 }
 0x426   : > { %v3132_v53 = vmul.f32 %v4148_v61, %v3016_v43  ;;  %v2814_v45 = vadd.f32 %v3663_v49, %v6624_v40  ;;  %v3664_v63 = vpop.f32.mrb[76].mxu0  ;;  %v3750_v21 = vpop.f32.mrb[80].mxu1 }
 0x427   : > { %v3665_v14 = vpop.f32.mrb[77].mxu0  ;;  %v3751_v15 = vpop.f32.mrb[81].mxu1 }
 0x428   : > { %3149 = vst.msk [vmem:[%s6662_s9 + $0x20] sm:$0xff] %vm3144_vm0, %v3132_v53  ;;  %v3023_v28 = vadd.f32 %v3743_v56, %v2814_v45  ;;  %v3666_v13 = vadd.f32 %v3665_v14, %v3664_v63  ;;  %v3752_v5 = vadd.f32 %v3751_v15, %v3750_v21  ;;  %v1387_v21 = vpop.xlane.xlu0 %1386 }
 0x429   : > { %4165 = vrcp.f32 %v1387_v21 }
 0x42a   : > { %v3133_v29 = vmul.f32 %v4150_v6, %v3023_v28  ;;  %v2821_v41 = vadd.f32 %v3666_v13, %v6627_v16  ;;  %v3667_v54 = vpop.f32.mrb[78].mxu0  ;;  %v3753_v60 = vpop.f32.mrb[82].mxu1 }
 0x42b   : > { %v3668_v40 = vpop.f32.mrb[79].mxu0  ;;  %v3754_v23 = vpop.f32.mrb[83].mxu1 }
 0x42c   : > { %3150 = vst.msk [vmem:[%s6662_s9 + $0x28] sm:$0xff] %vm3144_vm0, %v3133_v29  ;;  %v3030_v22 = vadd.f32 %v3746_v46, %v2821_v41  ;;  %v3669_v25 = vadd.f32 %v3668_v40, %v3667_v54  ;;  %v3755_v58 = vadd.f32 %v3754_v23, %v3753_v60  ;;  %v4156_v46 = vpop.eup %4155  ;;  %v1390_v54 = vpop.xlane.xlu1 %1389 }
 0x42d   : > { %v4158_v49 = vpop.eup %4157  ;;  %4167 = vrcp.f32 %v1390_v54 }
 0x42e   : > { %v3134_v30 = vmul.f32 %v4152_v34, %v3030_v22  ;;  %v2828_v50 = vadd.f32 %v3669_v25, %v6630_v3  ;;  %v3670_v36 = vpop.f32.mrb[80].mxu0  ;;  %v3756_v33 = vpop.f32.mrb[84].mxu1 }
 0x42f   : > { %v3671_v16 = vpop.f32.mrb[81].mxu0  ;;  %v3757_v8 = vpop.f32.mrb[85].mxu1 }
 0x430   : > { %3151 = vst.msk [vmem:[%s6662_s9 + $0x30] sm:$0xff] %vm3144_vm0, %v3134_v30  ;;  %v3037_v27 = vadd.f32 %v3749_v20, %v2828_v50  ;;  %v3672_v1 = vadd.f32 %v3671_v16, %v3670_v36  ;;  %v3758_v56 = vadd.f32 %v3757_v8, %v3756_v33  ;;  %v4160_v28 = vpop.eup %4159  ;;  %v1393_v50 = vpop.xlane.xlu0 %1392 }
 0x431   : > { %v4162_v62 = vpop.eup %4161  ;;  %4169 = vrcp.f32 %v1393_v50 }
 0x432   : > { %v3135_v42 = vmul.f32 %v4154_v12, %v3037_v27  ;;  %v2835_v48 = vadd.f32 %v3672_v1, %v6633_v59  ;;  %v3673_v57 = vpop.f32.mrb[82].mxu0  ;;  %v3759_v52 = vpop.f32.mrb[86].mxu1 }
 0x433   : > { %v3674_v3 = vpop.f32.mrb[83].mxu0  ;;  %v3760_v18 = vpop.f32.mrb[87].mxu1 }
 0x434   : > { %3152 = vst.msk [vmem:[%s6662_s9 + $0x38] sm:$0xff] %vm3144_vm0, %v3135_v42  ;;  %v3044_v11 = vadd.f32 %v3752_v5, %v2835_v48  ;;  %v3675_v35 = vadd.f32 %v3674_v3, %v3673_v57  ;;  %v3761_v10 = vadd.f32 %v3760_v18, %v3759_v52  ;;  %v4164_v8 = vpop.eup %4163 }
 0x435   : > { %v4166_v42 = vpop.eup %4165 }
 0x436   : > { %v3136_v32 = vmul.f32 %v4156_v46, %v3044_v11  ;;  %v2842_v37 = vadd.f32 %v3675_v35, %v6636_v7  ;;  %v3676_v51 = vpop.f32.mrb[84].mxu0  ;;  %v3762_v31 = vpop.f32.mrb[88].mxu1 }
 0x437   : > { %v3677_v59 = vpop.f32.mrb[85].mxu0  ;;  %v3763_v44 = vpop.f32.mrb[89].mxu1 }
 0x438   : > { %3153 = vst.msk [vmem:[%s6662_s9 + $0x40] sm:$0xff] %vm3144_vm0, %v3136_v32  ;;  %v3051_v17 = vadd.f32 %v3755_v58, %v2842_v37  ;;  %v3678_v47 = vadd.f32 %v3677_v59, %v3676_v51  ;;  %v3764_v43 = vadd.f32 %v3763_v44, %v3762_v31 }
 0x43a   : > { %v3137_v20 = vmul.f32 %v4158_v49, %v3051_v17  ;;  %v2849_v61 = vadd.f32 %v3678_v47, %v6639_v38  ;;  %v3679_v53 = vpop.f32.mrb[86].mxu0  ;;  %v3765_v45 = vpop.f32.mrb[90].mxu1 }
 0x43b   : > { %v3680_v7 = vpop.f32.mrb[87].mxu0  ;;  %v3766_v63 = vpop.f32.mrb[91].mxu1 }
 0x43c   : > { %3154 = vst.msk [vmem:[%s6662_s9 + $0x48] sm:$0xff] %vm3144_vm0, %v3137_v20  ;;  %v3058_v14 = vadd.f32 %v3758_v56, %v2849_v61  ;;  %v3681_v15 = vadd.f32 %v3680_v7, %v3679_v53  ;;  %v3767_v24 = vadd.f32 %v3766_v63, %v3765_v45 }
 0x43e   : > { %v3138_v13 = vmul.f32 %v4160_v28, %v3058_v14  ;;  %v2856_v5 = vadd.f32 %v3681_v15, %v6642_v4  ;;  %v3682_v6 = vpop.f32.mrb[88].mxu0  ;;  %v3768_v29 = vpop.f32.mrb[92].mxu1 }
 0x43f   : > { %v3683_v38 = vpop.f32.mrb[89].mxu0  ;;  %v3769_v41 = vpop.f32.mrb[93].mxu1 }
 0x440   : > { %3155 = vst.msk [vmem:[%s6662_s9 + $0x50] sm:$0xff] %vm3144_vm0, %v3138_v13  ;;  %v3065_v60 = vadd.f32 %v3761_v10, %v2856_v5  ;;  %v3684_v40 = vadd.f32 %v3683_v38, %v3682_v6  ;;  %v3770_v23 = vadd.f32 %v3769_v41, %v3768_v29 }
 0x442   : > { %v3139_v22 = vmul.f32 %v4162_v62, %v3065_v60  ;;  %v2863_v25 = vadd.f32 %v3684_v40, %v6645_v26  ;;  %v3685_v58 = vpop.f32.mrb[90].mxu0  ;;  %v3771_v34 = vpop.f32.mrb[94].mxu1 }
 0x443   : > { %v3686_v4 = vpop.f32.mrb[91].mxu0  ;;  %v3772_v30 = vpop.f32.mrb[95].mxu1 }
 0x444   : > { %3156 = vst.msk [vmem:[%s6662_s9 + $0x58] sm:$0xff] %vm3144_vm0, %v3139_v22  ;;  %v3072_v36 = vadd.f32 %v3764_v43, %v2863_v25  ;;  %v3687_v33 = vadd.f32 %v3686_v4, %v3685_v58  ;;  %v3773_v16 = vadd.f32 %v3772_v30, %v3771_v34 }
 0x446   : > { %v3140_v55 = vmul.f32 %v4164_v8, %v3072_v36  ;;  %v2870_v27 = vadd.f32 %v3687_v33, %v6648_v19  ;;  %v3688_v1 = vpop.f32.mrb[92].mxu0  ;;  %v4168_v19 = vpop.eup %4167 }
 0x447   : > { %v3689_v26 = vpop.f32.mrb[93].mxu0  ;;  %v4170_v46 = vpop.eup %4169 }
 0x448   : > { %3157 = vst.msk [vmem:[%s6662_s9 + $0x60] sm:$0xff] %vm3144_vm0, %v3140_v55  ;;  %v3079_v56 = vadd.f32 %v3767_v24, %v2870_v27  ;;  %v3690_v12 = vadd.f32 %v3689_v26, %v3688_v1 }
 0x44a   : > { %v3141_v48 = vmul.f32 %v4166_v42, %v3079_v56  ;;  %v2877_v57 = vadd.f32 %v3690_v12, %v6651_v0  ;;  %v3691_v52 = vpop.f32.mrb[94].mxu0 }
 0x44b   : > { %v3692_v3 = vpop.f32.mrb[95].mxu0 }
 0x44c   : > { %3158 = vst.msk [vmem:[%s6662_s9 + $0x68] sm:$0xff] %vm3144_vm0, %v3141_v48  ;;  %v3086_v18 = vadd.f32 %v3770_v23, %v2877_v57  ;;  %v3693_v9 = vadd.f32 %v3692_v3, %v3691_v52 }
 0x44e   : > { %v3142_v11 = vmul.f32 %v4168_v19, %v3086_v18  ;;  %v2884_v35 = vadd.f32 %v3693_v9, %v6654_v39 }
 0x450   : > { %3159 = vst.msk [vmem:[%s6662_s9 + $0x70] sm:$0xff] %vm3144_vm0, %v3142_v11  ;;  %v3093_v10 = vadd.f32 %v3773_v16, %v2884_v35 }
 0x452   : > { %v3143_v32 = vmul.f32 %v4170_v46, %v3093_v10 }
 0x454   : > { %3160 = vst.msk [vmem:[%s6662_s9 + $0x78] sm:$0xff] %vm3144_vm0, %v3143_v32 }
 0x455 PF: > { %s13_s16 = sadd.s32 1, %s4209_s16   ;;  %s7393_s12 = smov %s4201_s14 }
 0x456   : > { %p10_p7 = scmp.ge.s32.totalorder %s13_s16, 6   ;;  %s7394_s13 = smov %s4205_s15 }
 0x457   : > { %s7395_s14 = smov %s7398_s17  ;;  %s7396_s15 = smov %s7402_s18 }
 0x458   :  { %12 = sbr.rel (!%p10_p7) target bundleno = 3 (0x3), region = 68 }

</bundles_post_ra>
